<compile_context>
chip_gen: v7x
topology: tpu7x:2x2x1
jax: 0.10.0
libtpu: 0.0.40
codegen_flags: <defaults>
</compile_context>

<pallas_src>
import math

import jax
import jax.numpy as jnp
from jax.experimental import pallas as pl
from jax.experimental.pallas import tpu as pltpu

D_WORD = 32                 # args.embed_size
D_MODEL = 32                # args.hidden_size
SEQ = 8
BATCH = 2
KS = (3, 5, 7)
D3 = 3 * D_MODEL            # 96
D3P = 128                   # lane-padded encoder width
NBLK = 12                   # pooled feature blocks (4 pools x 3 pieces)
DFEAT = 36 * D_MODEL        # 1152 (reference feature width)
DFEATP = NBLK * D3P         # 1536 (128-lane aligned feature width)
H1 = 12 * D_MODEL           # 384
H2 = 6 * D_MODEL            # 192
LN_EPS = 1e-5
BN_EPS = 1e-5
BN_SCALE = 1.0 / math.sqrt(1.0 + BN_EPS)   # eval-mode BN with running stats (0, 1)
PAD = 3                     # max k//2
NSEQ = 2 * BATCH            # sequences per call (a0, b0, a1, b1)
SLOT = 2 * SEQ              # 16-row slot per sequence inside the conv slab
SLAB = NSEQ * SLOT + SEQ    # 72 slab rows (>=8 zero rows between sequences)
CONV_ROWS = SLAB - 2 * SEQ  # 56 conv-output rows (slab rows 8..63)
NEG = -1e30                 # block mask value for the fused attention


def _elu(x):
    # ELU(alpha=1)
    return jnp.where(x > 0, x, jnp.exp(jnp.minimum(x, 0.0)) - 1.0)


# ------------------------- fused forward-pass kernel -------------------------
def sim_kernel(texta_ref, textb_ref, enc_pack_ref, pw_blk_ref, aux_ref, red_ref,
               fc_small_ref, w1_hbm, w2_hbm, w3_ref, w4_ref, out_ref,
               w1_buf, w2_buf, dma_sem):
    # Start the big fc-weight DMAs immediately; they complete under the
    # encoder / attention compute and are only waited on before the head.
    cp_w1 = pltpu.make_async_copy(w1_hbm, w1_buf, dma_sem.at[0])
    cp_w2 = pltpu.make_async_copy(w2_hbm, w2_buf, dma_sem.at[1])
    cp_w1.start()
    cp_w2.start()

    ep = enc_pack_ref[...]                     # (16, 128) packed encoder params
    dw_w = ep[0:7, :]                          # combined depthwise taps
    dw_b = ep[7:8, :]                          # [dw3_b | dw5_b | dw7_b | 0]
    pw_b = ep[8:9, :]                          # [pw3_b | pw5_b | pw7_b | 0]
    ln_g = ep[9:10, :]
    ln_b = ep[10:11, :]
    pw_blk = pw_blk_ref[...]                   # (128, 128) block-diag pointwise
    aux = aux_ref[...]                         # packed small constants
    pool_mat = aux[0:BATCH, 0:BATCH * SEQ]     # (2, 16) per-batch mean-pool
    blkmask = aux[8:8 + BATCH * SEQ, 0:BATCH * SEQ]   # (16, 16) 0 / -1e30
    red8 = red_ref[...]                        # (128, 8), col 0 = 1/96 over lanes<96

    a_in = texta_ref[...]
    b_in = textb_ref[...]

    # ---- embedding: dropout (identity in eval) + parameter-free Highway,
    #      all 4 sequences stacked into one (32, 32) tile ----
    pieces = []
    for bi in range(BATCH):
        pieces.append(a_in[bi])
        pieces.append(b_in[bi])
    x = jnp.concatenate(pieces, axis=0)                         # (32, 32)
    g = jax.nn.sigmoid(x)
    h = g * jnp.maximum(x, 0.0) + (1.0 - g) * x
    # replicate channels for the 3 depthwise branches + zero pad to 128 lanes
    zc = jnp.zeros((NSEQ * SEQ, D3P - D3), jnp.float32)
    hr = jnp.concatenate([h, h, h, zc], axis=-1)                # (32, 128)

    # ---- zero-padded slab: sequence si at rows 16*si+8 .. 16*si+15, with
    #      8 zero rows between sequences so the 7-tap window never bleeds ----
    z8 = jnp.zeros((SEQ, D3P), jnp.float32)
    slab_parts = []
    for si in range(NSEQ):
        slab_parts.append(z8)
        slab_parts.append(hr[si * SEQ:(si + 1) * SEQ])
    slab_parts.append(z8)
    xp = jnp.concatenate(slab_parts, axis=0)                    # (72, 128)

    # ---- combined 7-tap depthwise conv (k=3/5/7 in disjoint 32-lane groups),
    #      value slices + pairwise-tree accumulation ----
    base = SEQ - PAD                       # conv output rows == slab rows 8..63
    taps = [xp[base + t:base + t + CONV_ROWS, :] * dw_w[t:t + 1, :]
            for t in range(7)]
    cv = (((taps[0] + taps[1]) + (taps[2] + taps[3]))
          + ((taps[4] + taps[5]) + taps[6])) + dw_b             # (56, 128)

    # ---- block-diagonal pointwise conv == one matmul producing the concat ----
    y = jnp.dot(cv, pw_blk, preferred_element_type=jnp.float32) + pw_b

    # ---- LayerNorm(96) with mean / mean-of-squares computed on the MXU ----
    stats = jnp.dot(jnp.concatenate([y, y * y], axis=0), red8,
                    preferred_element_type=jnp.float32)         # (112, 8)
    mu = stats[0:CONV_ROWS, 0:1]
    msq = stats[CONV_ROWS:2 * CONV_ROWS, 0:1]
    var = jnp.maximum(msq - mu * mu, 0.0)
    enc = (y - mu) * jax.lax.rsqrt(var + LN_EPS) * ln_g + ln_b
    enc = jnp.maximum(enc, 0.0)           # (56, 128); pad lanes stay exactly 0

    # ---- stack the texta / textb encodings of both batch rows ----
    SA = jnp.concatenate([enc[(2 * bi) * SLOT:(2 * bi) * SLOT + SEQ]
                          for bi in range(BATCH)], axis=0)      # (16, 128)
    SB = jnp.concatenate([enc[(2 * bi + 1) * SLOT:(2 * bi + 1) * SLOT + SEQ]
                          for bi in range(BATCH)], axis=0)      # (16, 128)

    # ---- soft_attention_align for both batch rows via one masked Gram ----
    G = jax.lax.dot_general(SA, SB, (((1,), (1,)), ((), ())),
                            preferred_element_type=jnp.float32) + blkmask
    m1 = jnp.max(G, axis=-1, keepdims=True)
    e1 = jnp.exp(G - m1)
    wt1 = e1 / jnp.sum(e1, axis=-1, keepdims=True)
    AA = jnp.dot(wt1, SB, preferred_element_type=jnp.float32)   # a_attn (16,128)
    m0 = jnp.max(G, axis=0, keepdims=True)
    e0 = jnp.exp(G - m0)
    wt2 = e0 / jnp.sum(e0, axis=0, keepdims=True)
    BB = jax.lax.dot_general(wt2, SA, (((0,), (0,)), ((), ())),
                             preferred_element_type=jnp.float32)  # b_attn

    CA = jnp.concatenate([SA, AA, SA * AA], axis=-1)            # (16, 384)
    CB = jnp.concatenate([SB, BB, SB * BB], axis=-1)            # (16, 384)

    # avg pools on the MXU (per-batch mean = pool_mat @ X); max pools on XLU
    avg_a = jnp.dot(pool_mat, CA, preferred_element_type=jnp.float32)
    avg_b = jnp.dot(pool_mat, CB, preferred_element_type=jnp.float32)
    max_a = jnp.concatenate(
        [jnp.max(CA[bi * SEQ:(bi + 1) * SEQ], axis=0, keepdims=True)
         for bi in range(BATCH)], axis=0)
    max_b = jnp.concatenate(
        [jnp.max(CB[bi * SEQ:(bi + 1) * SEQ], axis=0, keepdims=True)
         for bi in range(BATCH)], axis=0)
    # 12 pooled 96-wide blocks, each in its own 128-lane slot (pads are 0)
    feat = jnp.concatenate([avg_a, max_a, avg_b, max_b], axis=-1)  # (2, 1536)

    # ---- fc head ----
    fcs = fc_small_ref[...]                                     # (8, 1536)
    bn1_g = fcs[0:1, :]
    bn1_b = fcs[1:2, :]
    b1 = fcs[2:3, 0:H1]
    b2 = fcs[3:4, 0:H2]
    b3 = fcs[4:5, 0:D_MODEL]
    bn2_g = fcs[5:6, 0:D_MODEL]
    bn2_b = fcs[6:7, 0:D_MODEL]
    b4 = fcs[7:8, 0:D3P]

    # TODO(synk): BatchNorm1d implemented in eval mode (running_mean=0, var=1);
    # PyTorch training-mode batch statistics are not reproduced.
    xh = feat * (bn1_g * BN_SCALE) + bn1_b

    cp_w1.wait()
    cp_w2.wait()
    xh = _elu(jnp.dot(xh, w1_buf[...], preferred_element_type=jnp.float32) + b1)
    xh = _elu(jnp.dot(xh, w2_buf[...], preferred_element_type=jnp.float32) + b2)
    xh = jnp.dot(xh, w3_ref[...], preferred_element_type=jnp.float32) + b3
    xh = _elu(xh * (bn2_g * BN_SCALE) + bn2_b)
    xh = _elu(jnp.dot(xh, w4_ref[...], preferred_element_type=jnp.float32) + b4)
    out_ref[...] = jax.nn.sigmoid(xh)                           # (2, 128)


def sim_model_forward(texta, textb, pk):
    vmem = pl.BlockSpec(memory_space=pltpu.MemorySpace.VMEM)
    hbm = pl.BlockSpec(memory_space=pl.ANY)
    out = pl.pallas_call(
        sim_kernel,
        out_shape=jax.ShapeDtypeStruct((BATCH, D3P), jnp.float32),
        in_specs=[vmem, vmem, vmem, vmem, vmem, vmem, vmem, hbm, hbm, vmem, vmem],
        out_specs=vmem,
        scratch_shapes=[
            pltpu.VMEM((DFEATP, H1), jnp.float32),   # w1 landing buffer
            pltpu.VMEM((H1, H2), jnp.float32),       # w2 landing buffer
            pltpu.SemaphoreType.DMA((2,)),
        ],
    )(texta, textb, pk["enc_pack"], pk["pw_blk"], pk["aux_small"],
      pk["red_cols"], pk["fc_small"], pk["w1p"], pk["w2"], pk["w3"], pk["w4p"])
    return out[:, :2]


# --------------------------- deterministic parameters ------------------------
def init_params(key):
    p = {}
    keys = iter(jax.random.split(key, 32))

    def nrm(shape, scale=0.1):
        return scale * jax.random.normal(next(keys), shape, dtype=jnp.float32)

    for k in KS:
        p[f"dw{k}_w"] = nrm((k, D_WORD))              # depthwise weight (taps, ch)
        p[f"dw{k}_b"] = nrm((1, D_WORD))
        p[f"pw{k}_w"] = nrm((D_WORD, D_MODEL))        # pointwise weight (in, out)
        p[f"pw{k}_b"] = nrm((1, D_MODEL))
    p["ln_g"] = jnp.ones((1, D3), jnp.float32)
    p["ln_b"] = jnp.zeros((1, D3), jnp.float32)
    p["bn1_g"] = jnp.ones((1, DFEAT), jnp.float32)
    p["bn1_b"] = jnp.zeros((1, DFEAT), jnp.float32)
    p["w1"] = nrm((DFEAT, H1), 0.05)
    p["b1"] = nrm((1, H1), 0.05)
    p["w2"] = nrm((H1, H2), 0.05)
    p["b2"] = nrm((1, H2), 0.05)
    p["w3"] = nrm((H2, D_MODEL), 0.05)
    p["b3"] = nrm((1, D_MODEL), 0.05)
    p["bn2_g"] = jnp.ones((1, D_MODEL), jnp.float32)
    p["bn2_b"] = jnp.zeros((1, D_MODEL), jnp.float32)
    p["w4"] = nrm((D_MODEL, 2), 0.05)
    p["b4"] = nrm((1, 2), 0.05)
    return p


def pack_params(p):
    """Pack the many tiny parameter tensors into a few lane-aligned operands."""
    # combined depthwise taps (7, 128): each k occupies a 32-lane group with
    # zero rows outside its window (matches 'same' zero padding); lanes 96-127
    # are a zero pad group.
    dw = jnp.zeros((7, D3P), jnp.float32)
    dw = dw.at[2:5, 0:32].set(p["dw3_w"])
    dw = dw.at[1:6, 32:64].set(p["dw5_w"])
    dw = dw.at[0:7, 64:96].set(p["dw7_w"])
    dw_b = jnp.concatenate([p["dw3_b"], p["dw5_b"], p["dw7_b"]], axis=-1)
    pw_b = jnp.concatenate([p["pw3_b"], p["pw5_b"], p["pw7_b"]], axis=-1)

    def pad_lanes(v, width):
        return jnp.zeros((v.shape[0], width), jnp.float32).at[:, :v.shape[1]].set(v)

    enc_pack = jnp.zeros((16, D3P), jnp.float32)
    enc_pack = enc_pack.at[0:7].set(dw)
    enc_pack = enc_pack.at[7:8].set(pad_lanes(dw_b, D3P))
    enc_pack = enc_pack.at[8:9].set(pad_lanes(pw_b, D3P))
    enc_pack = enc_pack.at[9:10].set(pad_lanes(p["ln_g"], D3P))
    enc_pack = enc_pack.at[10:11].set(pad_lanes(p["ln_b"], D3P))

    # block-diagonal pointwise weight: one matmul produces the concat directly
    pw_blk = jnp.zeros((D3P, D3P), jnp.float32)
    pw_blk = pw_blk.at[0:32, 0:32].set(p["pw3_w"])
    pw_blk = pw_blk.at[32:64, 32:64].set(p["pw5_w"])
    pw_blk = pw_blk.at[64:96, 64:96].set(p["pw7_w"])

    # small host-built constants: per-batch mean-pool matrix, block mask for
    # the fused attention Gram matrix, LayerNorm reduction column.
    pool = jnp.zeros((BATCH, BATCH * SEQ), jnp.float32)
    blk = jnp.full((BATCH * SEQ, BATCH * SEQ), NEG, jnp.float32)
    for bi in range(BATCH):
        pool = pool.at[bi, bi * SEQ:(bi + 1) * SEQ].set(1.0 / SEQ)
        blk = blk.at[bi * SEQ:(bi + 1) * SEQ, bi * SEQ:(bi + 1) * SEQ].set(0.0)
    aux_small = jnp.zeros((32, D3P), jnp.float32)
    aux_small = aux_small.at[0:BATCH, 0:BATCH * SEQ].set(pool)
    aux_small = aux_small.at[8:8 + BATCH * SEQ, 0:BATCH * SEQ].set(blk)
    red_cols = jnp.zeros((D3P, 8), jnp.float32).at[0:D3, 0].set(1.0 / D3)

    def expand_cols(v):          # (1, 1152) -> (1, 1536): 96-blocks -> 128-slots
        out = jnp.zeros((v.shape[0], DFEATP), jnp.float32)
        for j in range(NBLK):
            out = out.at[:, j * D3P:j * D3P + D3].set(v[:, j * D3:(j + 1) * D3])
        return out

    def expand_rows(m):          # (1152, N) -> (1536, N): matching zero rows
        out = jnp.zeros((DFEATP, m.shape[1]), jnp.float32)
        for j in range(NBLK):
            out = out.at[j * D3P:j * D3P + D3, :].set(m[j * D3:(j + 1) * D3, :])
        return out

    fc_small = jnp.zeros((8, DFEATP), jnp.float32)
    fc_small = fc_small.at[0:1, :].set(expand_cols(p["bn1_g"]))
    fc_small = fc_small.at[1:2, :].set(expand_cols(p["bn1_b"]))
    fc_small = fc_small.at[2:3, 0:H1].set(p["b1"])
    fc_small = fc_small.at[3:4, 0:H2].set(p["b2"])
    fc_small = fc_small.at[4:5, 0:D_MODEL].set(p["b3"])
    fc_small = fc_small.at[5:6, 0:D_MODEL].set(p["bn2_g"])
    fc_small = fc_small.at[6:7, 0:D_MODEL].set(p["bn2_b"])
    fc_small = fc_small.at[7:8, 0:2].set(p["b4"])

    w4p = jnp.zeros((D_MODEL, D3P), jnp.float32).at[:, 0:2].set(p["w4"])

    return {"enc_pack": enc_pack, "pw_blk": pw_blk, "aux_small": aux_small,
            "red_cols": red_cols, "fc_small": fc_small,
            "w1p": expand_rows(p["w1"]), "w2": p["w2"], "w3": p["w3"],
            "w4p": w4p}


# ------------------------------ plain-JAX reference --------------------------
def ref_forward(texta, textb, p):
    def embed(x):
        g = jax.nn.sigmoid(x)
        return g * jnp.maximum(x, 0.0) + (1.0 - g) * x

    def dsconv(x, k):
        pad = k // 2
        xp = jnp.pad(x, ((0, 0), (pad, pad), (0, 0)))
        y = jnp.zeros_like(x)
        for t in range(k):
            y = y + xp[:, t:t + SEQ, :] * p[f"dw{k}_w"][t][None, None, :]
        y = y + p[f"dw{k}_b"][None]
        return jnp.einsum("bsc,cd->bsd", y, p[f"pw{k}_w"]) + p[f"pw{k}_b"][None]

    def encoder(x):
        x = embed(x)
        out = jnp.concatenate([dsconv(x, k) for k in KS], axis=-1)
        mu = out.mean(-1, keepdims=True)
        var = ((out - mu) ** 2).mean(-1, keepdims=True)
        out = (out - mu) / jnp.sqrt(var + LN_EPS)
        out = out * p["ln_g"][None] + p["ln_b"][None]
        return jnp.maximum(out, 0.0)

    a = encoder(texta)
    b = encoder(textb)
    attn = jnp.einsum("bsd,btd->bst", a, b)
    w1 = jax.nn.softmax(attn, axis=-1)
    w2 = jax.nn.softmax(jnp.swapaxes(attn, 1, 2), axis=-1)
    a_attn = jnp.einsum("bst,btd->bsd", w1, b)
    b_attn = jnp.einsum("bst,btd->bsd", w2, a)
    a_out = jnp.concatenate([a, a_attn, a * a_attn], -1)
    b_out = jnp.concatenate([b, b_attn, b * b_attn], -1)
    feat = jnp.concatenate([a_out.mean(1), a_out.max(1),
                            b_out.mean(1), b_out.max(1)], axis=-1)

    x = feat * p["bn1_g"] * BN_SCALE + p["bn1_b"]
    x = _elu(x @ p["w1"] + p["b1"])
    x = _elu(x @ p["w2"] + p["b2"])
    x = x @ p["w3"] + p["b3"]
    x = x * p["bn2_g"] * BN_SCALE + p["bn2_b"]
    x = _elu(x)
    x = x @ p["w4"] + p["b4"]
    x = _elu(x)
    return jax.nn.sigmoid(x)


if __name__ == "__main__":
    key = jax.random.PRNGKey(0)
    kp, ka, kb = jax.random.split(key, 3)
    params = init_params(kp)
    packed = pack_params(params)
    texta = jax.random.normal(ka, (BATCH, SEQ, D_WORD), jnp.float32)
    textb = jax.random.normal(kb, (BATCH, SEQ, D_WORD), jnp.float32)

    out = jax.block_until_ready(sim_model_forward(texta, textb, packed))
    ref = jax.block_until_ready(ref_forward(texta, textb, params))

    assert out.shape == (BATCH, 2), out.shape
    assert bool(jnp.all(jnp.isfinite(out)))
    max_err = float(jnp.max(jnp.abs(out - ref)))
    assert max_err < 5e-3, f"mismatch vs plain-JAX reference: {max_err}"
    print("KERNEL_OK")
</pallas_src>

<mosaic_0001>
module attributes {stable_mosaic.version = 11 : i64} {
  func.func @sim_kernel(%arg0: memref<2x8x32xf32, #tpu.memory_space<vmem>>, %arg1: memref<2x8x32xf32, #tpu.memory_space<vmem>>, %arg2: memref<16x128xf32, #tpu.memory_space<vmem>>, %arg3: memref<128x128xf32, #tpu.memory_space<vmem>>, %arg4: memref<32x128xf32, #tpu.memory_space<vmem>>, %arg5: memref<128x8xf32, #tpu.memory_space<vmem>>, %arg6: memref<8x1536xf32, #tpu.memory_space<vmem>>, %arg7: memref<1536x384xf32, #tpu.memory_space<any>>, %arg8: memref<384x192xf32, #tpu.memory_space<any>>, %arg9: memref<192x32xf32, #tpu.memory_space<vmem>>, %arg10: memref<32x128xf32, #tpu.memory_space<vmem>>, %arg11: memref<2x128xf32, #tpu.memory_space<vmem>>, %arg12: memref<1536x384xf32, #tpu.memory_space<vmem>>, %arg13: memref<384x192xf32, #tpu.memory_space<vmem>>, %arg14: memref<2x!tpu.dma_semaphore, #tpu.memory_space<semaphore_mem>>) attributes {dimension_semantics = [], scalar_prefetch = 0 : i64, scratch_operands = 3 : i64, tpu.core_type = #tpu.core_type<tc>} {
    %c0_i32 = arith.constant 0 : i32
    %0 = tpu.memref_slice %arg14[%c0_i32] : memref<2x!tpu.dma_semaphore, #tpu.memory_space<semaphore_mem>> -> memref<1x!tpu.dma_semaphore, #tpu.memory_space<semaphore_mem>>
    %1 = tpu.memref_squeeze %0 : memref<1x!tpu.dma_semaphore, #tpu.memory_space<semaphore_mem>> -> memref<!tpu.dma_semaphore, #tpu.memory_space<semaphore_mem>>
    tpu.enqueue_dma source(%arg7 : memref<1536x384xf32, #tpu.memory_space<any>>) target(%arg12 : memref<1536x384xf32, #tpu.memory_space<vmem>>) target_semaphore(%1 : memref<!tpu.dma_semaphore, #tpu.memory_space<semaphore_mem>>)
    %c1_i32 = arith.constant 1 : i32
    %2 = tpu.memref_slice %arg14[%c1_i32] : memref<2x!tpu.dma_semaphore, #tpu.memory_space<semaphore_mem>> -> memref<1x!tpu.dma_semaphore, #tpu.memory_space<semaphore_mem>>
    %3 = tpu.memref_squeeze %2 : memref<1x!tpu.dma_semaphore, #tpu.memory_space<semaphore_mem>> -> memref<!tpu.dma_semaphore, #tpu.memory_space<semaphore_mem>>
    tpu.enqueue_dma source(%arg8 : memref<384x192xf32, #tpu.memory_space<any>>) target(%arg13 : memref<384x192xf32, #tpu.memory_space<vmem>>) target_semaphore(%3 : memref<!tpu.dma_semaphore, #tpu.memory_space<semaphore_mem>>)
    %c0 = arith.constant 0 : index
    %c0_0 = arith.constant 0 : index
    %4 = vector.load %arg2[%c0, %c0_0] : memref<16x128xf32, #tpu.memory_space<vmem>>, vector<16x128xf32>
    %5 = vector.extract_strided_slice %4 {offsets = [0, 0], sizes = [7, 128], strides = [1, 1]} : vector<16x128xf32> to vector<7x128xf32>
    %6 = vector.extract_strided_slice %4 {offsets = [7, 0], sizes = [1, 128], strides = [1, 1]} : vector<16x128xf32> to vector<1x128xf32>
    %7 = vector.extract_strided_slice %4 {offsets = [8, 0], sizes = [1, 128], strides = [1, 1]} : vector<16x128xf32> to vector<1x128xf32>
    %8 = vector.extract_strided_slice %4 {offsets = [9, 0], sizes = [1, 128], strides = [1, 1]} : vector<16x128xf32> to vector<1x128xf32>
    %9 = vector.extract_strided_slice %4 {offsets = [10, 0], sizes = [1, 128], strides = [1, 1]} : vector<16x128xf32> to vector<1x128xf32>
    %c0_1 = arith.constant 0 : index
    %c0_2 = arith.constant 0 : index
    %10 = vector.load %arg3[%c0_1, %c0_2] : memref<128x128xf32, #tpu.memory_space<vmem>>, vector<128x128xf32>
    %c0_3 = arith.constant 0 : index
    %c0_4 = arith.constant 0 : index
    %11 = vector.load %arg4[%c0_3, %c0_4] : memref<32x128xf32, #tpu.memory_space<vmem>>, vector<32x128xf32>
    %12 = vector.extract_strided_slice %11 {offsets = [0, 0], sizes = [2, 16], strides = [1, 1]} : vector<32x128xf32> to vector<2x16xf32>
    %13 = vector.extract_strided_slice %11 {offsets = [8, 0], sizes = [16, 16], strides = [1, 1]} : vector<32x128xf32> to vector<16x16xf32>
    %c0_5 = arith.constant 0 : index
    %c0_6 = arith.constant 0 : index
    %14 = vector.load %arg5[%c0_5, %c0_6] : memref<128x8xf32, #tpu.memory_space<vmem>>, vector<128x8xf32>
    %c0_7 = arith.constant 0 : index
    %c0_8 = arith.constant 0 : index
    %c0_9 = arith.constant 0 : index
    %15 = vector.load %arg0[%c0_7, %c0_8, %c0_9] : memref<2x8x32xf32, #tpu.memory_space<vmem>>, vector<2x8x32xf32>
    %c0_10 = arith.constant 0 : index
    %c0_11 = arith.constant 0 : index
    %c0_12 = arith.constant 0 : index
    %16 = vector.load %arg1[%c0_10, %c0_11, %c0_12] : memref<2x8x32xf32, #tpu.memory_space<vmem>>, vector<2x8x32xf32>
    %17 = vector.extract_strided_slice %15 {offsets = [0, 0, 0], sizes = [1, 8, 32], strides = [1, 1, 1]} : vector<2x8x32xf32> to vector<1x8x32xf32>
    %18 = vector.shape_cast %17 : vector<1x8x32xf32> to vector<8x32xf32>
    %19 = vector.extract_strided_slice %16 {offsets = [0, 0, 0], sizes = [1, 8, 32], strides = [1, 1, 1]} : vector<2x8x32xf32> to vector<1x8x32xf32>
    %20 = vector.shape_cast %19 : vector<1x8x32xf32> to vector<8x32xf32>
    %21 = vector.extract_strided_slice %15 {offsets = [1, 0, 0], sizes = [1, 8, 32], strides = [1, 1, 1]} : vector<2x8x32xf32> to vector<1x8x32xf32>
    %22 = vector.shape_cast %21 : vector<1x8x32xf32> to vector<8x32xf32>
    %23 = vector.extract_strided_slice %16 {offsets = [1, 0, 0], sizes = [1, 8, 32], strides = [1, 1, 1]} : vector<2x8x32xf32> to vector<1x8x32xf32>
    %24 = vector.shape_cast %23 : vector<1x8x32xf32> to vector<8x32xf32>
    %25 = tpu.concatenate %18, %20, %22, %24 in 0 : vector<8x32xf32>, vector<8x32xf32>, vector<8x32xf32>, vector<8x32xf32> -> vector<32x32xf32>
    %26 = arith.negf %25 : vector<32x32xf32>
    %27 = math.exp %26 : vector<32x32xf32>
    %cst = arith.constant 1.000000e+00 : f32
    %28 = vector.broadcast %cst : f32 to vector<32x32xf32>
    %29 = arith.addf %28, %27 : vector<32x32xf32>
    %30 = arith.divf %28, %29 : vector<32x32xf32>
    %cst_13 = arith.constant 0.000000e+00 : f32
    %31 = vector.broadcast %cst_13 : f32 to vector<32x32xf32>
    %32 = arith.maximumf %25, %31 : vector<32x32xf32>
    %33 = arith.mulf %30, %32 : vector<32x32xf32>
    %cst_14 = arith.constant 1.000000e+00 : f32
    %34 = vector.broadcast %cst_14 : f32 to vector<32x32xf32>
    %35 = arith.subf %34, %30 : vector<32x32xf32>
    %36 = arith.mulf %35, %25 : vector<32x32xf32>
    %37 = arith.addf %33, %36 : vector<32x32xf32>
    %cst_15 = arith.constant 0.000000e+00 : f32
    %38 = vector.broadcast %cst_15 : f32 to vector<32x32xf32>
    %39 = tpu.concatenate %37, %37, %37, %38 in 1 : vector<32x32xf32>, vector<32x32xf32>, vector<32x32xf32>, vector<32x32xf32> -> vector<32x128xf32>
    %cst_16 = arith.constant 0.000000e+00 : f32
    %40 = vector.broadcast %cst_16 : f32 to vector<8x128xf32>
    %41 = vector.extract_strided_slice %39 {offsets = [0, 0], sizes = [8, 128], strides = [1, 1]} : vector<32x128xf32> to vector<8x128xf32>
    %42 = vector.extract_strided_slice %39 {offsets = [8, 0], sizes = [8, 128], strides = [1, 1]} : vector<32x128xf32> to vector<8x128xf32>
    %43 = vector.extract_strided_slice %39 {offsets = [16, 0], sizes = [8, 128], strides = [1, 1]} : vector<32x128xf32> to vector<8x128xf32>
    %44 = vector.extract_strided_slice %39 {offsets = [24, 0], sizes = [8, 128], strides = [1, 1]} : vector<32x128xf32> to vector<8x128xf32>
    %45 = tpu.concatenate %40, %41, %40, %42, %40, %43, %40, %44, %40 in 0 : vector<8x128xf32>, vector<8x128xf32>, vector<8x128xf32>, vector<8x128xf32>, vector<8x128xf32>, vector<8x128xf32>, vector<8x128xf32>, vector<8x128xf32>, vector<8x128xf32> -> vector<72x128xf32>
    %46 = vector.extract_strided_slice %45 {offsets = [5, 0], sizes = [56, 128], strides = [1, 1]} : vector<72x128xf32> to vector<56x128xf32>
    %47 = vector.extract_strided_slice %5 {offsets = [0, 0], sizes = [1, 128], strides = [1, 1]} : vector<7x128xf32> to vector<1x128xf32>
    %48 = vector.broadcast %47 : vector<1x128xf32> to vector<56x128xf32>
    %49 = arith.mulf %46, %48 : vector<56x128xf32>
    %50 = vector.extract_strided_slice %45 {offsets = [6, 0], sizes = [56, 128], strides = [1, 1]} : vector<72x128xf32> to vector<56x128xf32>
    %51 = vector.extract_strided_slice %5 {offsets = [1, 0], sizes = [1, 128], strides = [1, 1]} : vector<7x128xf32> to vector<1x128xf32>
    %52 = vector.broadcast %51 : vector<1x128xf32> to vector<56x128xf32>
    %53 = arith.mulf %50, %52 : vector<56x128xf32>
    %54 = vector.extract_strided_slice %45 {offsets = [7, 0], sizes = [56, 128], strides = [1, 1]} : vector<72x128xf32> to vector<56x128xf32>
    %55 = vector.extract_strided_slice %5 {offsets = [2, 0], sizes = [1, 128], strides = [1, 1]} : vector<7x128xf32> to vector<1x128xf32>
    %56 = vector.broadcast %55 : vector<1x128xf32> to vector<56x128xf32>
    %57 = arith.mulf %54, %56 : vector<56x128xf32>
    %58 = vector.extract_strided_slice %45 {offsets = [8, 0], sizes = [56, 128], strides = [1, 1]} : vector<72x128xf32> to vector<56x128xf32>
    %59 = vector.extract_strided_slice %5 {offsets = [3, 0], sizes = [1, 128], strides = [1, 1]} : vector<7x128xf32> to vector<1x128xf32>
    %60 = vector.broadcast %59 : vector<1x128xf32> to vector<56x128xf32>
    %61 = arith.mulf %58, %60 : vector<56x128xf32>
    %62 = vector.extract_strided_slice %45 {offsets = [9, 0], sizes = [56, 128], strides = [1, 1]} : vector<72x128xf32> to vector<56x128xf32>
    %63 = vector.extract_strided_slice %5 {offsets = [4, 0], sizes = [1, 128], strides = [1, 1]} : vector<7x128xf32> to vector<1x128xf32>
    %64 = vector.broadcast %63 : vector<1x128xf32> to vector<56x128xf32>
    %65 = arith.mulf %62, %64 : vector<56x128xf32>
    %66 = vector.extract_strided_slice %45 {offsets = [10, 0], sizes = [56, 128], strides = [1, 1]} : vector<72x128xf32> to vector<56x128xf32>
    %67 = vector.extract_strided_slice %5 {offsets = [5, 0], sizes = [1, 128], strides = [1, 1]} : vector<7x128xf32> to vector<1x128xf32>
    %68 = vector.broadcast %67 : vector<1x128xf32> to vector<56x128xf32>
    %69 = arith.mulf %66, %68 : vector<56x128xf32>
    %70 = vector.extract_strided_slice %45 {offsets = [11, 0], sizes = [56, 128], strides = [1, 1]} : vector<72x128xf32> to vector<56x128xf32>
    %71 = vector.extract_strided_slice %5 {offsets = [6, 0], sizes = [1, 128], strides = [1, 1]} : vector<7x128xf32> to vector<1x128xf32>
    %72 = vector.broadcast %71 : vector<1x128xf32> to vector<56x128xf32>
    %73 = arith.mulf %70, %72 : vector<56x128xf32>
    %74 = arith.addf %49, %53 : vector<56x128xf32>
    %75 = arith.addf %57, %61 : vector<56x128xf32>
    %76 = arith.addf %74, %75 : vector<56x128xf32>
    %77 = arith.addf %65, %69 : vector<56x128xf32>
    %78 = arith.addf %77, %73 : vector<56x128xf32>
    %79 = arith.addf %76, %78 : vector<56x128xf32>
    %80 = vector.broadcast %6 : vector<1x128xf32> to vector<56x128xf32>
    %81 = arith.addf %79, %80 : vector<56x128xf32>
    %cst_17 = arith.constant dense<0.000000e+00> : vector<56x128xf32>
    %82 = tpu.matmul %81, %10, %cst_17 {dimension_numbers = #tpu.dot_dimension_numbers<[1], [0], [0], [1], [0, 0, 1, 1], [], []>} : vector<56x128xf32>, vector<128x128xf32>, vector<56x128xf32> -> vector<56x128xf32>
    %83 = vector.broadcast %7 : vector<1x128xf32> to vector<56x128xf32>
    %84 = arith.addf %82, %83 : vector<56x128xf32>
    %85 = arith.mulf %84, %84 : vector<56x128xf32>
    %86 = tpu.concatenate %84, %85 in 0 : vector<56x128xf32>, vector<56x128xf32> -> vector<112x128xf32>
    %cst_18 = arith.constant dense<0.000000e+00> : vector<112x8xf32>
    %87 = tpu.matmul %86, %14, %cst_18 {dimension_numbers = #tpu.dot_dimension_numbers<[1], [0], [0], [1], [0, 0, 1, 1], [], []>} : vector<112x128xf32>, vector<128x8xf32>, vector<112x8xf32> -> vector<112x8xf32>
    %88 = vector.extract_strided_slice %87 {offsets = [0, 0], sizes = [56, 1], strides = [1, 1]} : vector<112x8xf32> to vector<56x1xf32>
    %89 = vector.extract_strided_slice %87 {offsets = [56, 0], sizes = [56, 1], strides = [1, 1]} : vector<112x8xf32> to vector<56x1xf32>
    %90 = arith.mulf %88, %88 : vector<56x1xf32>
    %91 = arith.subf %89, %90 : vector<56x1xf32>
    %cst_19 = arith.constant 0.000000e+00 : f32
    %92 = vector.broadcast %cst_19 : f32 to vector<56x1xf32>
    %93 = arith.maximumf %91, %92 : vector<56x1xf32>
    %94 = vector.broadcast %88 : vector<56x1xf32> to vector<56x128xf32>
    %95 = arith.subf %84, %94 : vector<56x128xf32>
    %cst_20 = arith.constant 9.99999974E-6 : f32
    %96 = vector.broadcast %cst_20 : f32 to vector<56x1xf32>
    %97 = arith.addf %93, %96 : vector<56x1xf32>
    %98 = math.rsqrt %97 : vector<56x1xf32>
    %99 = vector.broadcast %98 : vector<56x1xf32> to vector<56x128xf32>
    %100 = arith.mulf %95, %99 : vector<56x128xf32>
    %101 = vector.broadcast %8 : vector<1x128xf32> to vector<56x128xf32>
    %102 = arith.mulf %100, %101 : vector<56x128xf32>
    %103 = vector.broadcast %9 : vector<1x128xf32> to vector<56x128xf32>
    %104 = arith.addf %102, %103 : vector<56x128xf32>
    %cst_21 = arith.constant 0.000000e+00 : f32
    %105 = vector.broadcast %cst_21 : f32 to vector<56x128xf32>
    %106 = arith.maximumf %104, %105 : vector<56x128xf32>
    %107 = vector.extract_strided_slice %106 {offsets = [0, 0], sizes = [8, 128], strides = [1, 1]} : vector<56x128xf32> to vector<8x128xf32>
    %108 = vector.extract_strided_slice %106 {offsets = [32, 0], sizes = [8, 128], strides = [1, 1]} : vector<56x128xf32> to vector<8x128xf32>
    %109 = tpu.concatenate %107, %108 in 0 : vector<8x128xf32>, vector<8x128xf32> -> vector<16x128xf32>
    %110 = vector.extract_strided_slice %106 {offsets = [16, 0], sizes = [8, 128], strides = [1, 1]} : vector<56x128xf32> to vector<8x128xf32>
    %111 = vector.extract_strided_slice %106 {offsets = [48, 0], sizes = [8, 128], strides = [1, 1]} : vector<56x128xf32> to vector<8x128xf32>
    %112 = tpu.concatenate %110, %111 in 0 : vector<8x128xf32>, vector<8x128xf32> -> vector<16x128xf32>
    %cst_22 = arith.constant dense<0.000000e+00> : vector<16x16xf32>
    %113 = tpu.matmul %109, %112, %cst_22 {dimension_numbers = #tpu.dot_dimension_numbers<[1], [1], [0], [0], [0, 0, 1, 0], [], []>} : vector<16x128xf32>, vector<16x128xf32>, vector<16x16xf32> -> vector<16x16xf32>
    %114 = arith.addf %113, %13 : vector<16x16xf32>
    %cst_23 = arith.constant dense<0xFF800000> : vector<16xf32>
    %115 = vector.multi_reduction <maximumf>, %114, %cst_23 [1] : vector<16x16xf32> to vector<16xf32>
    %116 = vector.shape_cast %115 : vector<16xf32> to vector<16x1xf32>
    %117 = vector.broadcast %116 : vector<16x1xf32> to vector<16x16xf32>
    %118 = arith.subf %114, %117 : vector<16x16xf32>
    %119 = math.exp %118 : vector<16x16xf32>
    %cst_24 = arith.constant dense<0.000000e+00> : vector<16xf32>
    %120 = vector.multi_reduction <add>, %119, %cst_24 [1] : vector<16x16xf32> to vector<16xf32>
    %121 = vector.shape_cast %120 : vector<16xf32> to vector<16x1xf32>
    %122 = vector.broadcast %121 : vector<16x1xf32> to vector<16x16xf32>
    %123 = arith.divf %119, %122 : vector<16x16xf32>
    %cst_25 = arith.constant dense<0.000000e+00> : vector<16x128xf32>
    %124 = tpu.matmul %123, %112, %cst_25 {dimension_numbers = #tpu.dot_dimension_numbers<[1], [0], [0], [1], [0, 0, 1, 1], [], []>} : vector<16x16xf32>, vector<16x128xf32>, vector<16x128xf32> -> vector<16x128xf32>
    %cst_26 = arith.constant dense<0xFF800000> : vector<16xf32>
    %125 = vector.multi_reduction <maximumf>, %114, %cst_26 [0] : vector<16x16xf32> to vector<16xf32>
    %126 = vector.shape_cast %125 : vector<16xf32> to vector<1x16xf32>
    %127 = vector.broadcast %126 : vector<1x16xf32> to vector<16x16xf32>
    %128 = arith.subf %114, %127 : vector<16x16xf32>
    %129 = math.exp %128 : vector<16x16xf32>
    %cst_27 = arith.constant dense<0.000000e+00> : vector<16xf32>
    %130 = vector.multi_reduction <add>, %129, %cst_27 [0] : vector<16x16xf32> to vector<16xf32>
    %131 = vector.shape_cast %130 : vector<16xf32> to vector<1x16xf32>
    %132 = vector.broadcast %131 : vector<1x16xf32> to vector<16x16xf32>
    %133 = arith.divf %129, %132 : vector<16x16xf32>
    %cst_28 = arith.constant dense<0.000000e+00> : vector<16x128xf32>
    %134 = tpu.matmul %133, %109, %cst_28 {dimension_numbers = #tpu.dot_dimension_numbers<[0], [0], [1], [1], [0, 1, 1, 1], [], []>} : vector<16x16xf32>, vector<16x128xf32>, vector<16x128xf32> -> vector<16x128xf32>
    %135 = arith.mulf %109, %124 : vector<16x128xf32>
    %136 = tpu.concatenate %109, %124, %135 in 1 : vector<16x128xf32>, vector<16x128xf32>, vector<16x128xf32> -> vector<16x384xf32>
    %137 = arith.mulf %112, %134 : vector<16x128xf32>
    %138 = tpu.concatenate %112, %134, %137 in 1 : vector<16x128xf32>, vector<16x128xf32>, vector<16x128xf32> -> vector<16x384xf32>
    %cst_29 = arith.constant dense<0.000000e+00> : vector<2x384xf32>
    %139 = tpu.matmul %12, %136, %cst_29 {dimension_numbers = #tpu.dot_dimension_numbers<[1], [0], [0], [1], [0, 0, 1, 1], [], []>} : vector<2x16xf32>, vector<16x384xf32>, vector<2x384xf32> -> vector<2x384xf32>
    %cst_30 = arith.constant dense<0.000000e+00> : vector<2x384xf32>
    %140 = tpu.matmul %12, %138, %cst_30 {dimension_numbers = #tpu.dot_dimension_numbers<[1], [0], [0], [1], [0, 0, 1, 1], [], []>} : vector<2x16xf32>, vector<16x384xf32>, vector<2x384xf32> -> vector<2x384xf32>
    %141 = vector.extract_strided_slice %136 {offsets = [0, 0], sizes = [8, 384], strides = [1, 1]} : vector<16x384xf32> to vector<8x384xf32>
    %cst_31 = arith.constant dense<0xFF800000> : vector<384xf32>
    %142 = vector.multi_reduction <maximumf>, %141, %cst_31 [0] : vector<8x384xf32> to vector<384xf32>
    %143 = vector.shape_cast %142 : vector<384xf32> to vector<1x384xf32>
    %144 = vector.extract_strided_slice %136 {offsets = [8, 0], sizes = [8, 384], strides = [1, 1]} : vector<16x384xf32> to vector<8x384xf32>
    %cst_32 = arith.constant dense<0xFF800000> : vector<384xf32>
    %145 = vector.multi_reduction <maximumf>, %144, %cst_32 [0] : vector<8x384xf32> to vector<384xf32>
    %146 = vector.shape_cast %145 : vector<384xf32> to vector<1x384xf32>
    %147 = tpu.concatenate %143, %146 in 0 : vector<1x384xf32>, vector<1x384xf32> -> vector<2x384xf32>
    %148 = vector.extract_strided_slice %138 {offsets = [0, 0], sizes = [8, 384], strides = [1, 1]} : vector<16x384xf32> to vector<8x384xf32>
    %cst_33 = arith.constant dense<0xFF800000> : vector<384xf32>
    %149 = vector.multi_reduction <maximumf>, %148, %cst_33 [0] : vector<8x384xf32> to vector<384xf32>
    %150 = vector.shape_cast %149 : vector<384xf32> to vector<1x384xf32>
    %151 = vector.extract_strided_slice %138 {offsets = [8, 0], sizes = [8, 384], strides = [1, 1]} : vector<16x384xf32> to vector<8x384xf32>
    %cst_34 = arith.constant dense<0xFF800000> : vector<384xf32>
    %152 = vector.multi_reduction <maximumf>, %151, %cst_34 [0] : vector<8x384xf32> to vector<384xf32>
    %153 = vector.shape_cast %152 : vector<384xf32> to vector<1x384xf32>
    %154 = tpu.concatenate %150, %153 in 0 : vector<1x384xf32>, vector<1x384xf32> -> vector<2x384xf32>
    %155 = tpu.concatenate %139, %147, %140, %154 in 1 : vector<2x384xf32>, vector<2x384xf32>, vector<2x384xf32>, vector<2x384xf32> -> vector<2x1536xf32>
    %c0_35 = arith.constant 0 : index
    %c0_36 = arith.constant 0 : index
    %156 = vector.load %arg6[%c0_35, %c0_36] : memref<8x1536xf32, #tpu.memory_space<vmem>>, vector<8x1536xf32>
    %157 = vector.extract_strided_slice %156 {offsets = [0, 0], sizes = [1, 1536], strides = [1, 1]} : vector<8x1536xf32> to vector<1x1536xf32>
    %158 = vector.extract_strided_slice %156 {offsets = [1, 0], sizes = [1, 1536], strides = [1, 1]} : vector<8x1536xf32> to vector<1x1536xf32>
    %159 = vector.extract_strided_slice %156 {offsets = [2, 0], sizes = [1, 384], strides = [1, 1]} : vector<8x1536xf32> to vector<1x384xf32>
    %160 = vector.extract_strided_slice %156 {offsets = [3, 0], sizes = [1, 192], strides = [1, 1]} : vector<8x1536xf32> to vector<1x192xf32>
    %161 = vector.extract_strided_slice %156 {offsets = [4, 0], sizes = [1, 32], strides = [1, 1]} : vector<8x1536xf32> to vector<1x32xf32>
    %162 = vector.extract_strided_slice %156 {offsets = [5, 0], sizes = [1, 32], strides = [1, 1]} : vector<8x1536xf32> to vector<1x32xf32>
    %163 = vector.extract_strided_slice %156 {offsets = [6, 0], sizes = [1, 32], strides = [1, 1]} : vector<8x1536xf32> to vector<1x32xf32>
    %164 = vector.extract_strided_slice %156 {offsets = [7, 0], sizes = [1, 128], strides = [1, 1]} : vector<8x1536xf32> to vector<1x128xf32>
    %cst_37 = arith.constant 0.999994993 : f32
    %165 = vector.broadcast %cst_37 : f32 to vector<1x1536xf32>
    %166 = arith.mulf %157, %165 : vector<1x1536xf32>
    %167 = vector.broadcast %166 : vector<1x1536xf32> to vector<2x1536xf32>
    %168 = arith.mulf %155, %167 : vector<2x1536xf32>
    %169 = vector.broadcast %158 : vector<1x1536xf32> to vector<2x1536xf32>
    %170 = arith.addf %168, %169 : vector<2x1536xf32>
    %c0_i32_38 = arith.constant 0 : i32
    %171 = tpu.memref_slice %arg14[%c0_i32_38] : memref<2x!tpu.dma_semaphore, #tpu.memory_space<semaphore_mem>> -> memref<1x!tpu.dma_semaphore, #tpu.memory_space<semaphore_mem>>
    %172 = tpu.memref_squeeze %171 : memref<1x!tpu.dma_semaphore, #tpu.memory_space<semaphore_mem>> -> memref<!tpu.dma_semaphore, #tpu.memory_space<semaphore_mem>>
    tpu.wait_dma2 semaphore(%172 : memref<!tpu.dma_semaphore, #tpu.memory_space<semaphore_mem>>) src(%arg7 : memref<1536x384xf32, #tpu.memory_space<any>>) dst(%arg12 : memref<1536x384xf32, #tpu.memory_space<vmem>>)
    %c1_i32_39 = arith.constant 1 : i32
    %173 = tpu.memref_slice %arg14[%c1_i32_39] : memref<2x!tpu.dma_semaphore, #tpu.memory_space<semaphore_mem>> -> memref<1x!tpu.dma_semaphore, #tpu.memory_space<semaphore_mem>>
    %174 = tpu.memref_squeeze %173 : memref<1x!tpu.dma_semaphore, #tpu.memory_space<semaphore_mem>> -> memref<!tpu.dma_semaphore, #tpu.memory_space<semaphore_mem>>
    tpu.wait_dma2 semaphore(%174 : memref<!tpu.dma_semaphore, #tpu.memory_space<semaphore_mem>>) src(%arg8 : memref<384x192xf32, #tpu.memory_space<any>>) dst(%arg13 : memref<384x192xf32, #tpu.memory_space<vmem>>)
    %c0_40 = arith.constant 0 : index
    %c0_41 = arith.constant 0 : index
    %175 = vector.load %arg12[%c0_40, %c0_41] : memref<1536x384xf32, #tpu.memory_space<vmem>>, vector<1536x384xf32>
    %cst_42 = arith.constant dense<0.000000e+00> : vector<2x384xf32>
    %176 = tpu.matmul %170, %175, %cst_42 {dimension_numbers = #tpu.dot_dimension_numbers<[1], [0], [0], [1], [0, 0, 1, 1], [], []>} : vector<2x1536xf32>, vector<1536x384xf32>, vector<2x384xf32> -> vector<2x384xf32>
    %177 = vector.broadcast %159 : vector<1x384xf32> to vector<2x384xf32>
    %178 = arith.addf %176, %177 : vector<2x384xf32>
    %cst_43 = arith.constant 0.000000e+00 : f32
    %179 = vector.broadcast %cst_43 : f32 to vector<2x384xf32>
    %180 = arith.cmpf ogt, %178, %179 : vector<2x384xf32>
    %cst_44 = arith.constant 0.000000e+00 : f32
    %181 = vector.broadcast %cst_44 : f32 to vector<2x384xf32>
    %182 = arith.minimumf %178, %181 : vector<2x384xf32>
    %183 = math.exp %182 : vector<2x384xf32>
    %cst_45 = arith.constant 1.000000e+00 : f32
    %184 = vector.broadcast %cst_45 : f32 to vector<2x384xf32>
    %185 = arith.subf %183, %184 : vector<2x384xf32>
    %186 = arith.select %180, %178, %185 : vector<2x384xi1>, vector<2x384xf32>
    %c0_46 = arith.constant 0 : index
    %c0_47 = arith.constant 0 : index
    %187 = vector.load %arg13[%c0_46, %c0_47] : memref<384x192xf32, #tpu.memory_space<vmem>>, vector<384x192xf32>
    %cst_48 = arith.constant dense<0.000000e+00> : vector<2x192xf32>
    %188 = tpu.matmul %186, %187, %cst_48 {dimension_numbers = #tpu.dot_dimension_numbers<[1], [0], [0], [1], [0, 0, 1, 1], [], []>} : vector<2x384xf32>, vector<384x192xf32>, vector<2x192xf32> -> vector<2x192xf32>
    %189 = vector.broadcast %160 : vector<1x192xf32> to vector<2x192xf32>
    %190 = arith.addf %188, %189 : vector<2x192xf32>
    %cst_49 = arith.constant 0.000000e+00 : f32
    %191 = vector.broadcast %cst_49 : f32 to vector<2x192xf32>
    %192 = arith.cmpf ogt, %190, %191 : vector<2x192xf32>
    %cst_50 = arith.constant 0.000000e+00 : f32
    %193 = vector.broadcast %cst_50 : f32 to vector<2x192xf32>
    %194 = arith.minimumf %190, %193 : vector<2x192xf32>
    %195 = math.exp %194 : vector<2x192xf32>
    %cst_51 = arith.constant 1.000000e+00 : f32
    %196 = vector.broadcast %cst_51 : f32 to vector<2x192xf32>
    %197 = arith.subf %195, %196 : vector<2x192xf32>
    %198 = arith.select %192, %190, %197 : vector<2x192xi1>, vector<2x192xf32>
    %c0_52 = arith.constant 0 : index
    %c0_53 = arith.constant 0 : index
    %199 = vector.load %arg9[%c0_52, %c0_53] : memref<192x32xf32, #tpu.memory_space<vmem>>, vector<192x32xf32>
    %cst_54 = arith.constant dense<0.000000e+00> : vector<2x32xf32>
    %200 = tpu.matmul %198, %199, %cst_54 {dimension_numbers = #tpu.dot_dimension_numbers<[1], [0], [0], [1], [0, 0, 1, 1], [], []>} : vector<2x192xf32>, vector<192x32xf32>, vector<2x32xf32> -> vector<2x32xf32>
    %201 = vector.broadcast %161 : vector<1x32xf32> to vector<2x32xf32>
    %202 = arith.addf %200, %201 : vector<2x32xf32>
    %cst_55 = arith.constant 0.999994993 : f32
    %203 = vector.broadcast %cst_55 : f32 to vector<1x32xf32>
    %204 = arith.mulf %162, %203 : vector<1x32xf32>
    %205 = vector.broadcast %204 : vector<1x32xf32> to vector<2x32xf32>
    %206 = arith.mulf %202, %205 : vector<2x32xf32>
    %207 = vector.broadcast %163 : vector<1x32xf32> to vector<2x32xf32>
    %208 = arith.addf %206, %207 : vector<2x32xf32>
    %cst_56 = arith.constant 0.000000e+00 : f32
    %209 = vector.broadcast %cst_56 : f32 to vector<2x32xf32>
    %210 = arith.cmpf ogt, %208, %209 : vector<2x32xf32>
    %cst_57 = arith.constant 0.000000e+00 : f32
    %211 = vector.broadcast %cst_57 : f32 to vector<2x32xf32>
    %212 = arith.minimumf %208, %211 : vector<2x32xf32>
    %213 = math.exp %212 : vector<2x32xf32>
    %cst_58 = arith.constant 1.000000e+00 : f32
    %214 = vector.broadcast %cst_58 : f32 to vector<2x32xf32>
    %215 = arith.subf %213, %214 : vector<2x32xf32>
    %216 = arith.select %210, %208, %215 : vector<2x32xi1>, vector<2x32xf32>
    %c0_59 = arith.constant 0 : index
    %c0_60 = arith.constant 0 : index
    %217 = vector.load %arg10[%c0_59, %c0_60] : memref<32x128xf32, #tpu.memory_space<vmem>>, vector<32x128xf32>
    %cst_61 = arith.constant dense<0.000000e+00> : vector<2x128xf32>
    %218 = tpu.matmul %216, %217, %cst_61 {dimension_numbers = #tpu.dot_dimension_numbers<[1], [0], [0], [1], [0, 0, 1, 1], [], []>} : vector<2x32xf32>, vector<32x128xf32>, vector<2x128xf32> -> vector<2x128xf32>
    %219 = vector.broadcast %164 : vector<1x128xf32> to vector<2x128xf32>
    %220 = arith.addf %218, %219 : vector<2x128xf32>
    %cst_62 = arith.constant 0.000000e+00 : f32
    %221 = vector.broadcast %cst_62 : f32 to vector<2x128xf32>
    %222 = arith.cmpf ogt, %220, %221 : vector<2x128xf32>
    %cst_63 = arith.constant 0.000000e+00 : f32
    %223 = vector.broadcast %cst_63 : f32 to vector<2x128xf32>
    %224 = arith.minimumf %220, %223 : vector<2x128xf32>
    %225 = math.exp %224 : vector<2x128xf32>
    %cst_64 = arith.constant 1.000000e+00 : f32
    %226 = vector.broadcast %cst_64 : f32 to vector<2x128xf32>
    %227 = arith.subf %225, %226 : vector<2x128xf32>
    %228 = arith.select %222, %220, %227 : vector<2x128xi1>, vector<2x128xf32>
    %229 = arith.negf %228 : vector<2x128xf32>
    %230 = math.exp %229 : vector<2x128xf32>
    %cst_65 = arith.constant 1.000000e+00 : f32
    %231 = vector.broadcast %cst_65 : f32 to vector<2x128xf32>
    %232 = arith.addf %231, %230 : vector<2x128xf32>
    %233 = arith.divf %231, %232 : vector<2x128xf32>
    %c0_66 = arith.constant 0 : index
    %c0_67 = arith.constant 0 : index
    %234 = vector.load %arg11[%c0_66, %c0_67] : memref<2x128xf32, #tpu.memory_space<vmem>>, vector<2x128xf32>
    tpu.vector_store %arg11[%c0_66, %c0_67], %233 {strides = array<i32>} : memref<2x128xf32, #tpu.memory_space<vmem>>, vector<2x128xf32>,
    return
  }
}

</mosaic_0001>

<bundles_post_ra>
// kernel: tpu_custom_call.1
= control target key start
LH: loop header
LB: loop body
LE: loop exit
PB: predicated region body
PF: predicated region fallthrough
CT: control target
= control target key end

     0   :  { %16 = vsyncpa [#allocation6], 0  ;;  %s7114_s0 = inlined_call_operand.hbm [shape: f32[2,8,32], index: 0, kind: input, shape index: {}]   ;;  %s7115_s1 = inlined_call_operand.hbm [shape: f32[2,8,32], index: 1, kind: input, shape index: {}]   ;;  %s7116_s2 = inlined_call_operand.hbm [shape: f32[16,128], index: 2, kind: input, shape index: {}]   ;;  %s7117_s3 = inlined_call_operand.hbm [shape: f32[128,128], index: 3, kind: input, shape index: {}]   ;;  %s7118_s4 = inlined_call_operand.hbm [shape: f32[32,128], index: 4, kind: input, shape index: {}]   ;;  %s7119_s5 = inlined_call_operand.vmem [shape: f32[128,8], index: 5, kind: input, shape index: {}]   ;;  %s7120_s6 = inlined_call_operand.hbm [shape: f32[8,1536], index: 6, kind: input, shape index: {}]   ;;  %s7121_s7 = inlined_call_operand.hbm [shape: f32[1536,384], index: 7, kind: input, shape index: {}]   ;;  %s7122_s8 = inlined_call_operand.vmem [shape: f32[384,192], index: 8, kind: input, shape index: {}]   ;;  %s7123_s9 = inlined_call_operand.vmem [shape: f32[192,32], index: 9, kind: input, shape index: {}]   ;;  %s7124_s10 = inlined_call_operand.hbm [shape: f32[32,128], index: 10, kind: input, shape index: {}]   ;;  %s7125_s11 = inlined_call_operand.hbm [shape: f32[2,128], index: 11, kind: output, shape index: {}]  }
   0x1   :  { %17 = vsyncpa [#allocation9], 0 }
   0x2   :  { %18 = vsyncpa [#allocation12], 0 }
   0x3   :  { %19 = vsyncpa [#allocation15], 0 }
   0x4   :  { %20 = vsyncpa [#allocation7], 0  ;;  %s5520_s17 = smov [#allocation8]   ;;  %s5521_s19 = smov [#allocation11]  }
   0x5   :  { %s38_s18 = sshll.u32 %s5520_s17, 4  ;;  %s62_s20 = sshll.u32 %s5521_s19, 4  ;;  %s39_s18 = int_to_ptr.vmem [resolvable:$true] %s38_s18  ;;  %s5597_s20 = int_to_ptr.vmem [resolvable:$true] %s62_s20 }
   0x6   :  { %s5308_s23 = scalar_lea.hbm %s7115_s1, 256 }
   0x7   :  { %p5309_p0 = scmp.ne.s32.totalorder %s7115_s1, %s5308_s23  ;;  %p5312_p1 = scmp.lt.u32.totalorder %s5308_s23, %s7115_s1 }
   0x9   :  { %p5314_p2 = pnand %p5312_p1, %p5309_p0 }
   0xb   :  { %5317 = shalt.err (!%p5314_p2)
}
   0xc   :  { %s5318_s28 = scalar_lea.vmem %s39_s18, 256  ;;  %p5323_p4 = scmp.lt.s32.totalorder %s39_s18, %s39_s18 }
   0xd   :  { %p5319_p3 = scmp.ne.s32.totalorder %s39_s18, %s5318_s28  ;;  %p5324_p5 = scmp.lt.s32.totalorder %s5318_s28, %s5318_s28 }
   0xf   :  { %p5325_p6 = por %p5324_p5, %p5323_p4 }
  0x11   :  { %p5326_p7 = pnand %p5325_p6, %p5319_p3 }
  0x13   :  { %5329 = shalt.err (!%p5326_p7)
}
  0x14   :  { %s5522_s29 = smov 128   ;;  %s5523_s30 = smov 8  }
  0x15   :  { %44 = dma.hbm_to_vmem [thread:$0]  %s7115_s1, 256, %s39_s18, [#allocation9], %s5522_s29, %s5522_s29, %s5523_s30  }
  0x16   :  { %s5330_s16 = scalar_lea.hbm %s7117_s3, 2048 }
  0x17   :  { %p5331_p8 = scmp.ne.s32.totalorder %s7117_s3, %s5330_s16  ;;  %p5334_p9 = scmp.lt.u32.totalorder %s5330_s16, %s7117_s3 }
  0x19   :  { %p5336_p10 = pnand %p5334_p9, %p5331_p8 }
  0x1b   :  { %5339 = shalt.err (!%p5336_p10)
}
  0x1c   :  { %s5340_s23 = scalar_lea.vmem %s5597_s20, 2048  ;;  %p5345_p12 = scmp.lt.s32.totalorder %s5597_s20, %s5597_s20 }
  0x1d   :  { %p5341_p11 = scmp.ne.s32.totalorder %s5597_s20, %s5340_s23  ;;  %p5346_p13 = scmp.lt.s32.totalorder %s5340_s23, %s5340_s23 }
  0x1f   :  { %p5347_p0 = por %p5346_p13, %p5345_p12 }
  0x21   :  { %p5348_p1 = pnand %p5347_p0, %p5341_p11 }
  0x23   :  { %5351 = shalt.err (!%p5348_p1)
}
  0x24   :  { %68 = dma.hbm_to_vmem [thread:$0]  %s7117_s3, 2048, %s5597_s20, [#allocation12], %s5522_s29, %s5522_s29, %s5523_s30  }
  0x25   :  { %s5524_s24 = smov [#allocation14]   ;;  %s5525_s26 = smov [#allocation5]  }
  0x26   :  { %s89_s25 = sshll.u32 %s5524_s24, 4  ;;  %s26_s27 = sshll.u32 %s5525_s26, 4  ;;  %s90_s25 = int_to_ptr.vmem [resolvable:$true] %s89_s25  ;;  %s5634_s27 = int_to_ptr.vmem [resolvable:$true] %s26_s27 }
  0x27   :  { %s5352_s13 = scalar_lea.hbm %s7120_s6, 1536 }
  0x28   :  { %p5353_p2 = scmp.ne.s32.totalorder %s7120_s6, %s5352_s13  ;;  %p5356_p3 = scmp.lt.u32.totalorder %s5352_s13, %s7120_s6 }
  0x2a   :  { %p5358_p4 = pnand %p5356_p3, %p5353_p2 }
  0x2c   :  { %5361 = shalt.err (!%p5358_p4)
}
  0x2d   :  { %s5362_s3 = scalar_lea.vmem %s90_s25, 1536  ;;  %p5367_p6 = scmp.lt.s32.totalorder %s90_s25, %s90_s25 }
  0x2e   :  { %p5363_p5 = scmp.ne.s32.totalorder %s90_s25, %s5362_s3  ;;  %p5368_p7 = scmp.lt.s32.totalorder %s5362_s3, %s5362_s3 }
  0x30   :  { %p5369_p8 = por %p5368_p7, %p5367_p6 }
  0x32   :  { %p5370_p9 = pnand %p5369_p8, %p5363_p5 }
  0x34   :  { %5373 = shalt.err (!%p5370_p9)
}
  0x35   :  { %92 = dma.hbm_to_vmem [thread:$0]  %s7120_s6, 1536, %s90_s25, [#allocation15]  }
  0x36   :  { %s5374_s23 = scalar_lea.hbm %s7114_s0, 256 }
  0x37   :  { %p5375_p10 = scmp.ne.s32.totalorder %s7114_s0, %s5374_s23  ;;  %p5378_p11 = scmp.lt.u32.totalorder %s5374_s23, %s7114_s0 }
  0x39   :  { %p5380_p12 = pnand %p5378_p11, %p5375_p10 }
  0x3b   :  { %5383 = shalt.err (!%p5380_p12)
}
  0x3c   :  { %s5384_s28 = scalar_lea.vmem %s5634_s27, 256  ;;  %p5389_p0 = scmp.lt.s32.totalorder %s5634_s27, %s5634_s27 }
  0x3d   :  { %p5385_p13 = scmp.ne.s32.totalorder %s5634_s27, %s5384_s28  ;;  %p5390_p1 = scmp.lt.s32.totalorder %s5384_s28, %s5384_s28 }
  0x3f   :  { %p5391_p2 = por %p5390_p1, %p5389_p0 }
  0x41   :  { %p5392_p3 = pnand %p5391_p2, %p5385_p13 }
  0x43   :  { %5395 = shalt.err (!%p5392_p3)
}
  0x44   :  { %32 = dma.hbm_to_vmem [thread:$0]  %s7114_s0, 256, %s5634_s27, [#allocation6], %s5522_s29, %s5522_s29, %s5523_s30  }
  0x45   :  { %s5526_s12 = smov [#allocation10]   ;;  %s5527_s14 = smov [#allocation13]  }
  0x46   :  { %s50_s13 = sshll.u32 %s5526_s12, 4  ;;  %s74_s15 = sshll.u32 %s5527_s14, 4  ;;  %s51_s13 = int_to_ptr.vmem [resolvable:$true] %s50_s13  ;;  %s5668_s15 = int_to_ptr.vmem [resolvable:$true] %s74_s15 }
  0x47   :  { %s5396_s3 = scalar_lea.hbm %s7116_s2, 256 }
  0x48   :  { %p5397_p4 = scmp.ne.s32.totalorder %s7116_s2, %s5396_s3  ;;  %p5400_p5 = scmp.lt.u32.totalorder %s5396_s3, %s7116_s2 }
  0x4a   :  { %p5402_p6 = pnand %p5400_p5, %p5397_p4 }
  0x4c   :  { %5405 = shalt.err (!%p5402_p6)
}
  0x4d   :  { %s5406_s0 = scalar_lea.vmem %s51_s13, 256  ;;  %p5411_p8 = scmp.lt.s32.totalorder %s51_s13, %s51_s13 }
  0x4e   :  { %p5407_p7 = scmp.ne.s32.totalorder %s51_s13, %s5406_s0  ;;  %p5412_p9 = scmp.lt.s32.totalorder %s5406_s0, %s5406_s0 }
  0x50   :  { %p5413_p10 = por %p5412_p9, %p5411_p8 }
  0x52   :  { %p5414_p11 = pnand %p5413_p10, %p5407_p7 }
  0x54   :  { %5417 = shalt.err (!%p5414_p11)
}
  0x55   :  { %56 = dma.hbm_to_vmem [thread:$0]  %s7116_s2, 256, %s51_s13, [#allocation9], %s5522_s29, %s5522_s29, %s5523_s30  }
  0x56   :  { %s5418_s24 = scalar_lea.hbm %s7118_s4, 512 }
  0x57   :  { %p5419_p12 = scmp.ne.s32.totalorder %s7118_s4, %s5418_s24  ;;  %p5422_p13 = scmp.lt.u32.totalorder %s5418_s24, %s7118_s4 }
  0x59   :  { %p5424_p0 = pnand %p5422_p13, %p5419_p12 }
  0x5b   :  { %5427 = shalt.err (!%p5424_p0)
}
  0x5c   :  { %s5428_s12 = scalar_lea.vmem %s5668_s15, 512  ;;  %p5433_p2 = scmp.lt.s32.totalorder %s5668_s15, %s5668_s15 }
  0x5d   :  { %p5429_p1 = scmp.ne.s32.totalorder %s5668_s15, %s5428_s12  ;;  %p5434_p3 = scmp.lt.s32.totalorder %s5428_s12, %s5428_s12 }
  0x5f   :  { %p5435_p4 = por %p5434_p3, %p5433_p2 }
  0x61   :  { %p5436_p5 = pnand %p5435_p4, %p5429_p1 }
  0x63   :  { %5439 = shalt.err (!%p5436_p5)
}
  0x64   :  { %80 = dma.hbm_to_vmem [thread:$0]  %s7118_s4, 512, %s5668_s15, [#allocation12], %s5522_s29, %s5522_s29, %s5523_s30  }
  0x65   :  { %s5528_s14 = smov [#allocation16]   ;;  %s5440_s20 = scalar_lea.hbm %s7124_s10, 512 }
  0x66   :  { %s100_s16 = sshll.u32 %s5528_s14, 4  ;;  %p5441_p6 = scmp.ne.s32.totalorder %s7124_s10, %s5440_s20  ;;  %s101_s16 = int_to_ptr.vmem [resolvable:$true] %s100_s16 }
  0x67   :  { %p5444_p7 = scmp.lt.u32.totalorder %s5440_s20, %s7124_s10 }
  0x69   :  { %p5446_p8 = pnand %p5444_p7, %p5441_p6 }
  0x6b   :  { %5449 = shalt.err (!%p5446_p8)
}
  0x6c   :  { %s5450_s27 = scalar_lea.vmem %s101_s16, 512  ;;  %p5455_p10 = scmp.lt.s32.totalorder %s101_s16, %s101_s16 }
  0x6d   :  { %p5451_p9 = scmp.ne.s32.totalorder %s101_s16, %s5450_s27  ;;  %p5456_p11 = scmp.lt.s32.totalorder %s5450_s27, %s5450_s27 }
  0x6f   :  { %p5457_p12 = por %p5456_p11, %p5455_p10 }
  0x71   :  { %p5458_p13 = pnand %p5457_p12, %p5451_p9 }
  0x73   :  { %5461 = shalt.err (!%p5458_p13)
}
  0x74   :  { %106 = dma.hbm_to_vmem [thread:$0]  %s7124_s10, 512, %s101_s16, [#allocation15], %s5522_s29, %s5522_s29, %s5523_s30  }
  0x75   :  { %5506 = dma.done.wait [#allocation6], 256  }
  0x76   :  { %5507 = vsyncadd [#allocation6], 4294967040 }
  0x77   :  { %5508 = dma.done.wait [#allocation9], 512  }
  0x78   :  { %5509 = vsyncadd [#allocation9], 4294966784 }
  0x79   :  { %5510 = dma.done.wait [#allocation12], 2560  }
  0x7a   :  { %5511 = vsyncadd [#allocation12], 4294964736 }
  0x7b   :  { %5512 = dma.done.wait [#allocation15], 2048  }
  0x7c   :  { %5513 = vsyncadd [#allocation15], 4294965248  ;;  %s5529_s23 = smov [#allocation2]   ;;  %s5462_s26 = scalar_lea.hbm %s7121_s7, 73728 }
  0x7d   :  { %s135_s1 = sshll.u32 %s5529_s23, 4  ;;  %p5463_p0 = scmp.ne.s32.totalorder %s7121_s7, %s5462_s26  ;;  %s136_s1 = int_to_ptr.vmem [resolvable:$true] %s135_s1 }
  0x7e   :  { %p5466_p1 = scmp.lt.u32.totalorder %s5462_s26, %s7121_s7 }
  0x80   :  { %p5468_p2 = pnand %p5466_p1, %p5463_p0 }
  0x82   :  { %5471 = shalt.err (!%p5468_p2)  }
  0x83   :  { %s5472_s30 = scalar_lea.vmem %s136_s1, 73728  ;;  %p5477_p4 = scmp.lt.s32.totalorder %s136_s1, %s136_s1 }
  0x84   :  { %p5473_p3 = scmp.ne.s32.totalorder %s136_s1, %s5472_s30  ;;  %p5478_p5 = scmp.lt.s32.totalorder %s5472_s30, %s5472_s30 }
  0x86   :  { %p5479_p6 = por %p5478_p5, %p5477_p4 }
  0x88   :  { %p5480_p7 = pnand %p5479_p6, %p5473_p3 }
  0x8a   :  { %5483 = shalt.err (!%p5480_p7)  }
  0x8b   :  { %138 = dma.hbm_to_vmem [thread:$0]  %s7121_s7, 73728, %s136_s1, [#allocation4]  ;;  %v5735_v0 = vld [vmem:[%s7122_s8] sm:$0xff]  ;;  %v5740_v1 = vld [vmem:[%s7122_s8 + $0x8] sm:$0xff]  ;;  %v5745_v2 = vld [vmem:[%s7122_s8 + $0x10] sm:$0xff] }
  0x8c   :  { %7137 = vst [vmem:[#allocation30_spill] sm:$0xff] %v5735_v0  ;;  %7138 = vst [vmem:[#allocation31_spill] sm:$0xff] %v5745_v2  ;;  %v5750_v3 = vld [vmem:[%s7122_s8 + $0x18] sm:$0xff]  ;;  %v5755_v4 = vld [vmem:[%s7122_s8 + $0x20] sm:$0xff] }
  0x8d   :  { %7139 = vst [vmem:[#allocation32_spill] sm:$0xff] %v5755_v4  ;;  %v5760_v5 = vld [vmem:[%s7122_s8 + $0x28] sm:$0xff]  ;;  %v5765_v6 = vld [vmem:[%s7122_s8 + $0x30] sm:$0xff]  ;;  %v5770_v7 = vld [vmem:[%s7122_s8 + $0x38] sm:$0xff] }
  0x8e   :  { %7140 = vst [vmem:[#allocation33_spill] sm:$0xff] %v5760_v5  ;;  %7141 = vst [vmem:[#allocation34_spill] sm:$0xff] %v5765_v6  ;;  %v5775_v8 = vld [vmem:[%s7122_s8 + $0x40] sm:$0xff]  ;;  %v5780_v9 = vld [vmem:[%s7122_s8 + $0x48] sm:$0xff] }
  0x8f   :  { %7142 = vst [vmem:[#allocation35_spill] sm:$0xff] %v5770_v7  ;;  %7143 = vst [vmem:[#allocation36_spill] sm:$0xff] %v5775_v8  ;;  %v5785_v10 = vld [vmem:[%s7122_s8 + $0x50] sm:$0xff]  ;;  %v5790_v11 = vld [vmem:[%s7122_s8 + $0x58] sm:$0xff] }
  0x90   :  { %7144 = vst [vmem:[#allocation37_spill] sm:$0xff] %v5780_v9  ;;  %7145 = vst [vmem:[#allocation38_spill] sm:$0xff] %v5785_v10  ;;  %v5795_v12 = vld [vmem:[%s7122_s8 + $0x60] sm:$0xff]  ;;  %v5800_v13 = vld [vmem:[%s7122_s8 + $0x68] sm:$0xff] }
  0x91   :  { %7146 = vst [vmem:[#allocation39_spill] sm:$0xff] %v5790_v11  ;;  %7147 = vst [vmem:[#allocation40_spill] sm:$0xff] %v5795_v12  ;;  %v5805_v14 = vld [vmem:[%s7122_s8 + $0x70] sm:$0xff]  ;;  %v5810_v15 = vld [vmem:[%s7122_s8 + $0x78] sm:$0xff] }
  0x92   :  { %7148 = vst [vmem:[#allocation41_spill] sm:$0xff] %v5800_v13  ;;  %7149 = vst [vmem:[#allocation42_spill] sm:$0xff] %v5805_v14  ;;  %v5815_v16 = vld [vmem:[%s7122_s8 + $0x80] sm:$0xff]  ;;  %v5820_v17 = vld [vmem:[%s7122_s8 + $0x88] sm:$0xff] }
  0x93   :  { %7150 = vst [vmem:[#allocation43_spill] sm:$0xff] %v5810_v15  ;;  %7151 = vst [vmem:[#allocation44_spill] sm:$0xff] %v5815_v16  ;;  %v5825_v18 = vld [vmem:[%s7122_s8 + $0x90] sm:$0xff]  ;;  %v5830_v19 = vld [vmem:[%s7122_s8 + $0x98] sm:$0xff] }
  0x94   :  { %7152 = vst [vmem:[#allocation45_spill] sm:$0xff] %v5820_v17  ;;  %7153 = vst [vmem:[#allocation46_spill] sm:$0xff] %v5825_v18  ;;  %v5835_v20 = vld [vmem:[%s7122_s8 + $0xa0] sm:$0xff]  ;;  %v5840_v21 = vld [vmem:[%s7122_s8 + $0xa8] sm:$0xff] }
  0x95   :  { %7154 = vst [vmem:[#allocation47_spill] sm:$0xff] %v5830_v19  ;;  %7155 = vst [vmem:[#allocation48_spill] sm:$0xff] %v5835_v20  ;;  %v5845_v22 = vld [vmem:[%s7122_s8 + $0xb0] sm:$0xff]  ;;  %v5850_v23 = vld [vmem:[%s7122_s8 + $0xb8] sm:$0xff] }
  0x96   :  { %7156 = vst [vmem:[#allocation49_spill] sm:$0xff] %v5840_v21  ;;  %7157 = vst [vmem:[#allocation50_spill] sm:$0xff] %v5845_v22  ;;  %v5855_v24 = vld [vmem:[%s7122_s8 + $0xc0] sm:$0xff]  ;;  %v5860_v25 = vld [vmem:[%s7122_s8 + $0xc8] sm:$0xff] }
  0x97   :  { %7158 = vst [vmem:[#allocation51_spill] sm:$0xff] %v5850_v23  ;;  %7159 = vst [vmem:[#allocation52_spill] sm:$0xff] %v5855_v24  ;;  %v5865_v26 = vld [vmem:[%s7122_s8 + $0xd0] sm:$0xff]  ;;  %v5870_v27 = vld [vmem:[%s7122_s8 + $0xd8] sm:$0xff] }
  0x98   :  { %7160 = vst [vmem:[#allocation53_spill] sm:$0xff] %v5860_v25  ;;  %7161 = vst [vmem:[#allocation54_spill] sm:$0xff] %v5865_v26  ;;  %v5875_v28 = vld [vmem:[%s7122_s8 + $0xe0] sm:$0xff]  ;;  %v5880_v29 = vld [vmem:[%s7122_s8 + $0xe8] sm:$0xff] }
  0x99   :  { %7162 = vst [vmem:[#allocation55_spill] sm:$0xff] %v5870_v27  ;;  %7163 = vst [vmem:[#allocation56_spill] sm:$0xff] %v5875_v28  ;;  %v5885_v30 = vld [vmem:[%s7122_s8 + $0xf0] sm:$0xff]  ;;  %v5890_v31 = vld [vmem:[%s7122_s8 + $0xf8] sm:$0xff] }
  0x9a   :  { %7164 = vst [vmem:[#allocation57_spill] sm:$0xff] %v5880_v29  ;;  %7165 = vst [vmem:[#allocation58_spill] sm:$0xff] %v5885_v30  ;;  %v5895_v32 = vld [vmem:[%s7122_s8 + $0x100] sm:$0xff]  ;;  %v5900_v33 = vld [vmem:[%s7122_s8 + $0x108] sm:$0xff] }
  0x9b   :  { %7166 = vst [vmem:[#allocation59_spill] sm:$0xff] %v5890_v31  ;;  %7167 = vst [vmem:[#allocation60_spill] sm:$0xff] %v5895_v32  ;;  %v5905_v34 = vld [vmem:[%s7122_s8 + $0x110] sm:$0xff]  ;;  %v5910_v35 = vld [vmem:[%s7122_s8 + $0x118] sm:$0xff] }
  0x9c   :  { %7168 = vst [vmem:[#allocation61_spill] sm:$0xff] %v5900_v33  ;;  %7169 = vst [vmem:[#allocation62_spill] sm:$0xff] %v5905_v34  ;;  %v5915_v36 = vld [vmem:[%s7122_s8 + $0x120] sm:$0xff]  ;;  %v5920_v37 = vld [vmem:[%s7122_s8 + $0x128] sm:$0xff] }
  0x9d   :  { %7170 = vst [vmem:[#allocation63_spill] sm:$0xff] %v5910_v35  ;;  %7171 = vst [vmem:[#allocation64_spill] sm:$0xff] %v5915_v36  ;;  %v5925_v38 = vld [vmem:[%s7122_s8 + $0x130] sm:$0xff]  ;;  %v5930_v39 = vld [vmem:[%s7122_s8 + $0x138] sm:$0xff] }
  0x9e   :  { %7172 = vst [vmem:[#allocation65_spill] sm:$0xff] %v5920_v37  ;;  %7173 = vst [vmem:[#allocation66_spill] sm:$0xff] %v5925_v38  ;;  %v5935_v40 = vld [vmem:[%s7122_s8 + $0x140] sm:$0xff]  ;;  %v5940_v41 = vld [vmem:[%s7122_s8 + $0x148] sm:$0xff] }
  0x9f   :  { %7174 = vst [vmem:[#allocation67_spill] sm:$0xff] %v5930_v39  ;;  %7175 = vst [vmem:[#allocation68_spill] sm:$0xff] %v5935_v40  ;;  %v5945_v42 = vld [vmem:[%s7122_s8 + $0x150] sm:$0xff]  ;;  %v5950_v43 = vld [vmem:[%s7122_s8 + $0x158] sm:$0xff] }
  0xa0   :  { %7176 = vst [vmem:[#allocation69_spill] sm:$0xff] %v5940_v41  ;;  %7177 = vst [vmem:[#allocation70_spill] sm:$0xff] %v5945_v42  ;;  %v5955_v44 = vld [vmem:[%s7122_s8 + $0x160] sm:$0xff]  ;;  %v5960_v45 = vld [vmem:[%s7122_s8 + $0x168] sm:$0xff] }
  0xa1   :  { %7178 = vst [vmem:[#allocation71_spill] sm:$0xff] %v5950_v43  ;;  %7179 = vst [vmem:[#allocation72_spill] sm:$0xff] %v5955_v44  ;;  %v5965_v46 = vld [vmem:[%s7122_s8 + $0x170] sm:$0xff]  ;;  %v5970_v47 = vld [vmem:[%s7122_s8 + $0x178] sm:$0xff] }
  0xa2   :  { %7180 = vst [vmem:[#allocation73_spill] sm:$0xff] %v5960_v45  ;;  %7181 = vst [vmem:[#allocation74_spill] sm:$0xff] %v5965_v46  ;;  %v5975_v48 = vld [vmem:[%s7122_s8 + $0x180] sm:$0xff]  ;;  %v5980_v49 = vld [vmem:[%s7122_s8 + $0x188] sm:$0xff] }
  0xa3   :  { %7182 = vst [vmem:[#allocation75_spill] sm:$0xff] %v5970_v47  ;;  %7183 = vst [vmem:[#allocation76_spill] sm:$0xff] %v5975_v48  ;;  %v5985_v50 = vld [vmem:[%s7122_s8 + $0x190] sm:$0xff]  ;;  %v5990_v51 = vld [vmem:[%s7122_s8 + $0x198] sm:$0xff] }
  0xa4   :  { %7184 = vst [vmem:[#allocation77_spill] sm:$0xff] %v5980_v49  ;;  %7185 = vst [vmem:[#allocation78_spill] sm:$0xff] %v5985_v50  ;;  %v5995_v52 = vld [vmem:[%s7122_s8 + $0x1a0] sm:$0xff]  ;;  %v6000_v53 = vld [vmem:[%s7122_s8 + $0x1a8] sm:$0xff] }
  0xa5   :  { %7186 = vst [vmem:[#allocation79_spill] sm:$0xff] %v5990_v51  ;;  %7187 = vst [vmem:[#allocation80_spill] sm:$0xff] %v5995_v52  ;;  %v6005_v54 = vld [vmem:[%s7122_s8 + $0x1b0] sm:$0xff]  ;;  %v6010_v55 = vld [vmem:[%s7122_s8 + $0x1b8] sm:$0xff] }
  0xa6   :  { %7188 = vst [vmem:[#allocation81_spill] sm:$0xff] %v6000_v53  ;;  %7189 = vst [vmem:[#allocation82_spill] sm:$0xff] %v6005_v54  ;;  %v6015_v56 = vld [vmem:[%s7122_s8 + $0x1c0] sm:$0xff]  ;;  %v6020_v57 = vld [vmem:[%s7122_s8 + $0x1c8] sm:$0xff]  ;;  %v7127_v54 = vmov 0.0|0.0  }
  0xa7   :  { %7190 = vst [vmem:[#allocation83_spill] sm:$0xff] %v6010_v55  ;;  %7191 = vst [vmem:[#allocation84_spill] sm:$0xff] %v6015_v56  ;;  %v6025_v58 = vld [vmem:[%s7122_s8 + $0x1d0] sm:$0xff]  ;;  %v6030_v59 = vld [vmem:[%s7122_s8 + $0x1d8] sm:$0xff]  ;;  %4405 = vmatprep.subr.bf16.mxu0 %v7127_v54 }
  0xa8   :  { %7192 = vst [vmem:[#allocation85_spill] sm:$0xff] %v6020_v57  ;;  %7193 = vst [vmem:[#allocation86_spill] sm:$0xff] %v6025_v58  ;;  %v6035_v60 = vld [vmem:[%s7122_s8 + $0x1e0] sm:$0xff]  ;;  %v6040_v61 = vld [vmem:[%s7122_s8 + $0x1e8] sm:$0xff] }
  0xa9   :  { %7194 = vst [vmem:[#allocation87_spill] sm:$0xff] %v6030_v59  ;;  %7195 = vst [vmem:[#allocation88_spill] sm:$0xff] %v6035_v60  ;;  %v6045_v62 = vld [vmem:[%s7122_s8 + $0x1f0] sm:$0xff]  ;;  %v6050_v63 = vld [vmem:[%s7122_s8 + $0x1f8] sm:$0xff] }
  0xaa   :  { %7196 = vst [vmem:[#allocation89_spill] sm:$0xff] %v6040_v61  ;;  %7197 = vst [vmem:[#allocation90_spill] sm:$0xff] %v6045_v62  ;;  %v6055_v58 = vld [vmem:[%s7122_s8 + $0x200] sm:$0xff]  ;;  %v6060_v60 = vld [vmem:[%s7122_s8 + $0x208] sm:$0xff] }
  0xab   :  { %7198 = vst [vmem:[#allocation91_spill] sm:$0xff] %v6050_v63  ;;  %7199 = vst [vmem:[#allocation92_spill] sm:$0xff] %v6055_v58  ;;  %v6065_v61 = vld [vmem:[%s7122_s8 + $0x210] sm:$0xff]  ;;  %v6070_v62 = vld [vmem:[%s7122_s8 + $0x218] sm:$0xff] }
  0xac   :  { %7200 = vst [vmem:[#allocation93_spill] sm:$0xff] %v6060_v60  ;;  %7201 = vst [vmem:[#allocation94_spill] sm:$0xff] %v6065_v61  ;;  %v6075_v63 = vld [vmem:[%s7122_s8 + $0x220] sm:$0xff]  ;;  %v6080_v58 = vld [vmem:[%s7122_s8 + $0x228] sm:$0xff] }
  0xad   :  { %7202 = vst [vmem:[#allocation95_spill] sm:$0xff] %v6070_v62  ;;  %7203 = vst [vmem:[#allocation96_spill] sm:$0xff] %v6075_v63  ;;  %v6085_v60 = vld [vmem:[%s7122_s8 + $0x230] sm:$0xff]  ;;  %v6090_v61 = vld [vmem:[%s7122_s8 + $0x238] sm:$0xff] }
  0xae   :  { %7204 = vst [vmem:[#allocation97_spill] sm:$0xff] %v6080_v58  ;;  %7205 = vst [vmem:[#allocation98_spill] sm:$0xff] %v6085_v60  ;;  %v6095_v62 = vld [vmem:[%s7122_s8 + $0x240] sm:$0xff]  ;;  %v6100_v63 = vld [vmem:[%s7122_s8 + $0x248] sm:$0xff] }
  0xaf   :  { %7206 = vst [vmem:[#allocation99_spill] sm:$0xff] %v6090_v61  ;;  %7207 = vst [vmem:[#allocation100_spill] sm:$0xff] %v6095_v62  ;;  %v6105_v58 = vld [vmem:[%s7122_s8 + $0x250] sm:$0xff]  ;;  %v6110_v60 = vld [vmem:[%s7122_s8 + $0x258] sm:$0xff] }
  0xb0   :  { %7208 = vst [vmem:[#allocation101_spill] sm:$0xff] %v6100_v63  ;;  %7209 = vst [vmem:[#allocation102_spill] sm:$0xff] %v6105_v58  ;;  %v6115_v61 = vld [vmem:[%s7122_s8 + $0x260] sm:$0xff]  ;;  %v6120_v62 = vld [vmem:[%s7122_s8 + $0x268] sm:$0xff] }
  0xb1   :  { %7210 = vst [vmem:[#allocation103_spill] sm:$0xff] %v6110_v60  ;;  %7211 = vst [vmem:[#allocation104_spill] sm:$0xff] %v6115_v61  ;;  %v6125_v63 = vld [vmem:[%s7122_s8 + $0x270] sm:$0xff]  ;;  %v6130_v58 = vld [vmem:[%s7122_s8 + $0x278] sm:$0xff] }
  0xb2   :  { %7212 = vst [vmem:[#allocation105_spill] sm:$0xff] %v6120_v62  ;;  %7213 = vst [vmem:[#allocation106_spill] sm:$0xff] %v6125_v63  ;;  %v6135_v60 = vld [vmem:[%s7122_s8 + $0x280] sm:$0xff]  ;;  %v6140_v61 = vld [vmem:[%s7122_s8 + $0x288] sm:$0xff] }
  0xb3   :  { %7214 = vst [vmem:[#allocation107_spill] sm:$0xff] %v6130_v58  ;;  %7215 = vst [vmem:[#allocation108_spill] sm:$0xff] %v6135_v60  ;;  %v6145_v62 = vld [vmem:[%s7122_s8 + $0x290] sm:$0xff]  ;;  %v6150_v63 = vld [vmem:[%s7122_s8 + $0x298] sm:$0xff] }
  0xb4   :  { %7216 = vst [vmem:[#allocation109_spill] sm:$0xff] %v6140_v61  ;;  %7217 = vst [vmem:[#allocation110_spill] sm:$0xff] %v6145_v62  ;;  %v6155_v58 = vld [vmem:[%s7122_s8 + $0x2a0] sm:$0xff]  ;;  %v6160_v60 = vld [vmem:[%s7122_s8 + $0x2a8] sm:$0xff] }
  0xb5   :  { %7218 = vst [vmem:[#allocation111_spill] sm:$0xff] %v6150_v63  ;;  %7219 = vst [vmem:[#allocation112_spill] sm:$0xff] %v6155_v58  ;;  %v6165_v61 = vld [vmem:[%s7122_s8 + $0x2b0] sm:$0xff]  ;;  %v6170_v62 = vld [vmem:[%s7122_s8 + $0x2b8] sm:$0xff] }
  0xb6   :  { %7220 = vst [vmem:[#allocation113_spill] sm:$0xff] %v6160_v60  ;;  %7221 = vst [vmem:[#allocation114_spill] sm:$0xff] %v6165_v61  ;;  %v6175_v63 = vld [vmem:[%s7122_s8 + $0x2c0] sm:$0xff]  ;;  %v6180_v58 = vld [vmem:[%s7122_s8 + $0x2c8] sm:$0xff] }
  0xb7   :  { %7222 = vst [vmem:[#allocation115_spill] sm:$0xff] %v6170_v62  ;;  %7223 = vst [vmem:[#allocation116_spill] sm:$0xff] %v6175_v63  ;;  %v6185_v60 = vld [vmem:[%s7122_s8 + $0x2d0] sm:$0xff]  ;;  %v6190_v61 = vld [vmem:[%s7122_s8 + $0x2d8] sm:$0xff] }
  0xb8   :  { %7224 = vst [vmem:[#allocation117_spill] sm:$0xff] %v6180_v58  ;;  %7225 = vst [vmem:[#allocation118_spill] sm:$0xff] %v6185_v60  ;;  %v6195_v62 = vld [vmem:[%s7122_s8 + $0x2e0] sm:$0xff]  ;;  %v6200_v63 = vld [vmem:[%s7122_s8 + $0x2e8] sm:$0xff] }
  0xb9   :  { %7226 = vst [vmem:[#allocation119_spill] sm:$0xff] %v6190_v61  ;;  %7227 = vst [vmem:[#allocation120_spill] sm:$0xff] %v6195_v62  ;;  %v6205_v58 = vld [vmem:[%s7122_s8 + $0x2f0] sm:$0xff]  ;;  %v6210_v60 = vld [vmem:[%s7122_s8 + $0x2f8] sm:$0xff] }
  0xba   :  { %7228 = vst [vmem:[#allocation121_spill] sm:$0xff] %v6200_v63  ;;  %7229 = vst [vmem:[#allocation122_spill] sm:$0xff] %v6205_v58  ;;  %v409_v61 = vld [vmem:[#allocation5] sm:$0xff]  ;;  %v411_v56 = vld [vmem:[#allocation8] sm:$0xff] }
  0xbb   :  { %7230 = vst [vmem:[#allocation123_spill] sm:$0xff] %v6210_v60  ;;  %v6212_v59 = vld [vmem:[#allocation5 + $0x8] sm:$0xff]  ;;  %v3943_v62 = vmul.f32 -1.442695, %v409_v61  ;;  %v3944_v57 = vmul.f32 -1.442695, %v411_v56 }
  0xbc   :  { %v3945_v63 = vmul.f32 -1.442695, %v6212_v59  ;;  %v6216_v52 = vld [vmem:[#allocation8 + $0x8] sm:$0xff] }
  0xbd   :  { %371 = vsyncadd [#allocation4 + $0x1], 12288  ;;  %5252 = vpow2.f32 %v3943_v62  ;;  %v3946_v58 = vmul.f32 -1.442695, %v6216_v52  ;;  %v374_v55 = vld [vmem:[#allocation11] sm:$0xff]  ;;  %v375_v53 = vld [vmem:[#allocation11 + $0x8] sm:$0xff] }
  0xbe   :  { %5254 = vpow2.f32 %v3944_v57  ;;  %v4406_v60 = vpack.c.bf16 %v375_v53, %v374_v55  ;;  %v376_v62 = vld [vmem:[#allocation11 + $0x10] sm:$0xff]  ;;  %v377_v45 = vld [vmem:[#allocation11 + $0x18] sm:$0xff]  ;;  %v378_v53 = vld [vmem:[#allocation11 + $0x20] sm:$0xff]  ;;  %s5531_s8 = smov 32   ;;  %s5532_s16 = smov 64   ;;  %vm5533_vm0 = vmmov 0  }
  0xbf   :  { %5256 = vpow2.f32 %v3945_v63  ;;  %v4409_v40 = vpack.c.bf16 %v377_v45, %v376_v62  ;;  %v379_v55 = vld [vmem:[#allocation11 + $0x28] sm:$0xff]  ;;  %v439_v62 = vmax.f32 %v6212_v59, 0.0  ;;  %vm485_vm1 = vcmask 261120  }
  0xc0   :  { %5258 = vpow2.f32 %v3946_v58  ;;  %4407 = vmatpush3.bf16.msra.mxu0 %v4406_v60  ;;  %v4412_v57 = vpack.c.bf16 %v379_v55, %v378_v53  ;;  %v437_v58 = vmax.f32 %v409_v61, 0.0  ;;  %v382_v55 = vld [vmem:[#allocation11 + $0x40] sm:$0xff]  ;;  %vm490_vm2 = vcmask 523264  }
  0xc1   :  { %4408 = vmatprep.subr.bf16.mxu0 %v7127_v54  ;;  %vm495_vm3 = vcmask 785408   ;;  %vm568_vm4 = vcmask 1046528   ;;  %vm637_vm5 = vcmask 1045504   ;;  %vm743_vm6 = vcmask 1043456  }
  0xc2   :  { %vm799_vm7 = vcmask 1042432   ;;  %vm1788_vm8 = vcmask 1040384   ;;  %vm1221_vm9 = vcmask 130048  }
  0xc4   :  { %4410 = vmatpush3.bf16.msra.mxu0 %v4409_v40 }
  0xc5   :  { %4411 = vmatprep.subr.bf16.mxu0 %v7127_v54 }
  0xc7   :  { %v5253_v50 = vpop.eup %5252 }
  0xc8   :  { %v5255_v48 = vpop.eup %5254  ;;  %v425_v51 = vadd.f32 1.0, %v5253_v50  ;;  %4413 = vmatpush3.bf16.msra.mxu0 %v4412_v57  ;;  %v438_v50 = vmax.f32 %v411_v56, 0.0  ;;  %v383_v57 = vld [vmem:[#allocation11 + $0x48] sm:$0xff] }
  0xc9   :  { %v5257_v49 = vpop.eup %5256  ;;  %v426_v46 = vadd.f32 1.0, %v5255_v48  ;;  %4414 = vmatprep.subr.bf16.mxu0 %v7127_v54  ;;  %v380_v48 = vld [vmem:[#allocation11 + $0x30] sm:$0xff]  ;;  %v4418_v38 = vpack.c.bf16 %v383_v57, %v382_v55  ;;  %v396_v57 = vld [vmem:[%s7119_s5 + $0x18] sm:$0xff] }
  0xca   :  { %v5259_v44 = vpop.eup %5258  ;;  %5260 = vrcp.f32 %v425_v51  ;;  %v427_v47 = vadd.f32 1.0, %v5257_v49  ;;  %v381_v49 = vld [vmem:[#allocation11 + $0x38] sm:$0xff] }
  0xcb   :  { %5262 = vrcp.f32 %v426_v46  ;;  %v428_v42 = vadd.f32 1.0, %v5259_v44  ;;  %v4415_v60 = vpack.c.bf16 %v381_v49, %v380_v48  ;;  %v384_v49 = vld [vmem:[#allocation11 + $0x50] sm:$0xff] }
  0xcc   :  { %5264 = vrcp.f32 %v427_v47 }
  0xcd   :  { %5266 = vrcp.f32 %v428_v42  ;;  %4416 = vmatpush3.bf16.msra.mxu0 %v4415_v60 }
  0xce   :  { %4417 = vmatprep.subr.bf16.mxu0 %v7127_v54 }
  0xd1   :  { %4419 = vmatpush3.bf16.msra.mxu0 %v4418_v38 }
  0xd2   :  { %4420 = vmatprep.subr.bf16.mxu0 %v7127_v54 }
  0xd4   :  { %v5261_v51 = vpop.eup %5260 }
  0xd5   :  { %v5263_v46 = vpop.eup %5262  ;;  %v441_v44 = vmul.f32 %v5261_v51, %v437_v58  ;;  %v445_v45 = vsub.f32 1.0, %v5261_v51  ;;  %v440_v58 = vmax.f32 %v6216_v52, 0.0  ;;  %v385_v51 = vld [vmem:[#allocation11 + $0x58] sm:$0xff] }
  0xd6   :  { %v5265_v47 = vpop.eup %5264  ;;  %v446_v40 = vsub.f32 1.0, %v5263_v46  ;;  %v442_v63 = vmul.f32 %v5263_v46, %v438_v50  ;;  %v4421_v60 = vpack.c.bf16 %v385_v51, %v384_v49  ;;  %v399_v49 = vld [vmem:[%s7119_s5 + $0x30] sm:$0xff]  ;;  %v400_v51 = vld [vmem:[%s7119_s5 + $0x38] sm:$0xff] }
  0xd7   :  { %v449_v42 = vmul.f32 %v445_v45, %v409_v61  ;;  %v447_v53 = vsub.f32 1.0, %v5265_v47  ;;  %v5267_v43 = vpop.eup %5266  ;;  %v443_v50 = vmul.f32 %v5265_v47, %v439_v62  ;;  %v388_v47 = vld [vmem:[#allocation11 + $0x70] sm:$0xff]  ;;  %v394_v62 = vld [vmem:[%s7119_s5 + $0x8] sm:$0xff] }
  0xd8   :  { %v450_v41 = vmul.f32 %v446_v40, %v411_v56  ;;  %v448_v56 = vsub.f32 1.0, %v5267_v43  ;;  %4422 = vmatpush3.bf16.msra.mxu0 %v4421_v60  ;;  %v389_v40 = vld [vmem:[#allocation11 + $0x78] sm:$0xff]  ;;  %v6292_v60 = vpack.c.bf16 %v400_v51, %v399_v49 }
  0xd9   :  { %v6224_v36 = vadd.f32 %v449_v42, %v441_v44  ;;  %v451_v48 = vmul.f32 %v447_v53, %v6212_v59  ;;  %v386_v44 = vld [vmem:[#allocation11 + $0x60] sm:$0xff]  ;;  %v387_v59 = vld [vmem:[#allocation11 + $0x68] sm:$0xff]  ;;  %4423 = vmatprep.subr.bf16.mxu0 %v7127_v54  ;;  %v7129_v42 = vmov 0.0  }
  0xda   :  { %v6231_v61 = vadd.f32 %v450_v41, %v442_v63  ;;  %v444_v41 = vmul.f32 %v5267_v43, %v440_v58  ;;  %v452_v46 = vmul.f32 %v448_v56, %v6216_v52  ;;  %v4424_v45 = vpack.c.bf16 %v387_v59, %v386_v44  ;;  %4285 = vmatprep.mubr.msk.f32.mxu0 %vm5533_vm0, %v7129_v42  ;;  %v393_v52 = vld [vmem:[%s7119_s5] sm:$0xff]  ;;  %v395_v53 = vld [vmem:[%s7119_s5 + $0x10] sm:$0xff] }
  0xdb   :  { %461 = vrot.lane.b32.xlu0 %v6224_v36, %s5531_s8  ;;  %473 = vrot.lane.b32.xlu1 %v6224_v36, %s5532_s16  ;;  %v6239_v38 = vadd.f32 %v451_v48, %v443_v50  ;;  %v4427_v63 = vpack.c.bf16 %v389_v40, %v388_v47  ;;  %v6265_v55 = vpack.c.bf16 %v394_v62, %v393_v52  ;;  %v397_v50 = vld [vmem:[%s7119_s5 + $0x20] sm:$0xff]  ;;  %v398_v48 = vld [vmem:[%s7119_s5 + $0x28] sm:$0xff]  ;;  %v500_v62 = vlaneseq }
  0xdc   :  { %4425 = vmatpush3.bf16.msra.mxu0 %v4424_v45  ;;  %v6249_v43 = vadd.f32 %v452_v46, %v444_v41  ;;  %v6271_v58 = vpack.c.bf16 %v396_v57, %v395_v53  ;;  %v6282_v56 = vpack.c.bf16 %v398_v48, %v397_v50  ;;  %v401_v41 = vld [vmem:[%s7119_s5 + $0x40] sm:$0xff]  ;;  %v402_v46 = vld [vmem:[%s7119_s5 + $0x48] sm:$0xff]  ;;  %v403_v59 = vld [vmem:[%s7119_s5 + $0x50] sm:$0xff] }
  0xdd   :  { %4426 = vmatprep.subr.bf16.mxu0 %v7127_v54  ;;  %5201 = vmatprep.subr.bf16.mxu1 %v6265_v55  ;;  %v6302_v44 = vpack.c.bf16 %v402_v46, %v401_v41  ;;  %v404_v45 = vld [vmem:[%s7119_s5 + $0x58] sm:$0xff]  ;;  %v405_v40 = vld [vmem:[%s7119_s5 + $0x60] sm:$0xff]  ;;  %v6327_v53 = vshrl.u32 %v500_v62, 7 }
  0xde   :  { %5209 = vmatpush3.bf16.msra.mxu1 %v6265_v55  ;;  %v6312_v47 = vpack.c.bf16 %v404_v45, %v403_v59  ;;  %v372_v50 = vld [vmem:[#allocation10] sm:$0xff] }
  0xdf   :  { %463 = vrot.lane.b32.xlu0 %v6231_v61, %s5531_s8  ;;  %475 = vrot.lane.b32.xlu1 %v6231_v61, %s5532_s16  ;;  %7231 = vst [vmem:[#allocation124_spill] sm:$0xff] %v6327_v53  ;;  %v7126_v57 = vsub.s32 5, %v6327_v53  ;;  %v6331_v48 = vsub.s32 1, %v6327_v53  ;;  %v7131_v49 = vsub.s32 6, %v6327_v53  ;;  %v6339_v41 = vsub.s32 3, %v6327_v53 }
  0xe0   :  { %4428 = vmatpush3.bf16.msra.mxu0 %v4427_v63  ;;  %5202 = vmatprep.subr.bf16.mxu1 %v6271_v58  ;;  %v406_v63 = vld [vmem:[%s7119_s5 + $0x68] sm:$0xff]  ;;  %v7134_v46 = vsub.s32 4, %v6327_v53  ;;  %v6354_v62 = vsub.s32 2, %v6327_v53  ;;  %v6361_v54 = vsub.s32 0, %v6327_v53 }
  0xe1   :  { %4430 = vmatprep.subr.bf16.mxu0 %v6265_v55  ;;  %v6322_v52 = vpack.c.bf16 %v406_v63, %v405_v40  ;;  %v6336_v51 = vrot.slane %v372_v50, %v7126_v57  ;;  %7232 = vst [vmem:[#allocation125_spill] sm:$0xff] %v6339_v41  ;;  %v6343_v59 = vrot.slane %v372_v50, %v6331_v48 }
  0xe2   :  { %5210 = vmatpush3.bf16.msra.mxu1 %v6271_v58  ;;  %v6348_v40 = vrot.slane %v372_v50, %v7131_v49  ;;  %v6351_v63 = vrot.slane %v372_v50, %v6339_v41  ;;  %v6358_v57 = vrot.slane %v372_v50, %v7134_v46  ;;  %v6372_v32 = vrot.slane %v372_v50, %v6354_v62 }
  0xe3   :  { %465 = vrot.lane.b32.xlu0 %v6239_v38, %s5531_s8  ;;  %477 = vrot.lane.b32.xlu1 %v6239_v38, %s5532_s16  ;;  %v550_v45 = vmul.f32 0.0, %v6336_v51  ;;  %v513_v49 = vmul.f32 0.0, %v6343_v59  ;;  %v6380_v30 = vrot.slane %v372_v50, %v6361_v54 }
  0xe4   :  { %5203 = vmatprep.subr.bf16.mxu1 %v6282_v56  ;;  %v559_v42 = vmul.f32 0.0, %v6348_v40  ;;  %v6368_v41 = vmul.f32 0.0, %v6358_v57  ;;  %v532_v37 = vmul.f32 0.0, %v6351_v63  ;;  %v6386_v29 = vmul.f32 0.0, %v6372_v32 }
  0xe5   :  { %v6364_v39 = vrot.slane %v550_v45, 1  ;;  %v6388_v26 = vrot.slane %v513_v49, 1  ;;  %v6392_v24 = vmul.f32 0.0, %v6380_v30 }
  0xe6   :  { %5211 = vmatpush3.bf16.msra.mxu1 %v6282_v56  ;;  %v6383_v31 = vrot.slane %v559_v42, 2  ;;  %v6394_v27 = vrot.slane %v532_v37, 1 }
  0xe7   :  { %467 = vrot.lane.b32.xlu0 %v6249_v43, %s5531_s8  ;;  %479 = vrot.lane.b32.xlu1 %v6249_v43, %s5532_s16  ;;  %v701_v45 = vadd.f32 %v6364_v39, %v6368_v41 }
  0xe8   :  { %5204 = vmatprep.subr.bf16.mxu1 %v6292_v60 }
  0xe9   :  { %v6403_v49 = vadd.f32 %v6383_v31, %v701_v45 }
  0xea   :  { %5212 = vmatpush3.bf16.msra.mxu1 %v6292_v60 }
  0xeb   :  { %5205 = vmatprep.subr.bf16.mxu1 %v6302_v44 }
  0xee   :  { %5213 = vmatpush3.bf16.msra.mxu1 %v6302_v44 }
  0xef   :  { %5206 = vmatprep.subr.bf16.mxu1 %v6312_v47 }
  0xf2   :  { %5214 = vmatpush3.bf16.msra.mxu1 %v6312_v47 }
  0xf3   :  { %5207 = vmatprep.subr.bf16.mxu1 %v6322_v52 }
  0xf6   :  { %5215 = vmatpush3.bf16.msra.mxu1 %v6322_v52 }
 0x14d   :  { %v462_v34 = vpop.permute.xlu0 %461  ;;  %v474_v46 = vpop.permute.xlu1 %473 }
 0x14e   :  { %v486_v33 = vsel %vm485_vm1, %v6224_v36, %v462_v34 }
 0x14f   :  { %v491_v28 = vsel %vm490_vm2, %v486_v33, %v474_v46  ;;  %v7233_v46 = vsub.s32 7, %v6327_v53 }
 0x150   :  { %v496_v35 = vsel %vm495_vm3, %v491_v28, 0.0 }
 0x151   :  { %v514_v34 = vmul.f32 %v6343_v59, %v496_v35  ;;  %v531_v36 = vmul.f32 %v6351_v63, %v496_v35  ;;  %v464_v33 = vpop.permute.xlu0 %463  ;;  %v476_v42 = vpop.permute.xlu1 %475  ;;  %v6400_v25 = vrot.slane %v372_v50, %v7233_v46  ;;  %v523_v28 = vmul.f32 %v6372_v32, %v496_v35 }
 0x152   :  { %v549_v22 = vmul.f32 %v6336_v51, %v496_v35  ;;  %v6408_v37 = vmul.f32 %v6348_v40, %v496_v35  ;;  %v487_v20 = vsel %vm485_vm1, %v6231_v61, %v464_v33  ;;  %v6413_v23 = vmul.f32 %v6358_v57, %v496_v35 }
 0x153   :  { %v570_v21 = vrot.slane %v514_v34, 1  ;;  %v492_v50 = vsel %vm490_vm2, %v487_v20, %v476_v42  ;;  %v505_v46 = vmul.f32 %v6380_v30, %v496_v35  ;;  %v602_v45 = vrot.slane %v531_v36, 1 }
 0x154   :  { %v674_v53 = vrot.slane %v549_v22, 1  ;;  %v707_v18 = vrot.slane %v6408_v37, 2  ;;  %v6419_v16 = vsel %vm495_vm3, %v492_v50, 0.0 }
 0x155   :  { %v6423_v19 = vmul.f32 %v6343_v59, %v6419_v16  ;;  %v6427_v61 = vmul.f32 %v6372_v32, %v6419_v16  ;;  %v6431_v20 = vmul.f32 %v6351_v63, %v6419_v16  ;;  %v6435_v22 = vmul.f32 %v6358_v57, %v6419_v16  ;;  %v466_v35 = vpop.permute.xlu0 %465  ;;  %v478_v34 = vpop.permute.xlu1 %477 }
 0x156   :  { %v6439_v36 = vmul.f32 %v6336_v51, %v6419_v16  ;;  %v6443_v33 = vmul.f32 %v6348_v40, %v6419_v16  ;;  %v488_v42 = vsel %vm485_vm1, %v6239_v38, %v466_v35  ;;  %v571_v37 = vsel %vm568_vm4, %v6388_v26, %v570_v21 }
 0x157   :  { %v605_v17 = vrot.slane %v6431_v20, 1  ;;  %v493_v14 = vsel %vm490_vm2, %v488_v42, %v478_v34  ;;  %v572_v12 = vsel %vm568_vm4, %v570_v21, %v6388_v26  ;;  %v589_v38 = vadd.f32 %v571_v37, %v6392_v24 }
 0x158   :  { %v677_v15 = vrot.slane %v6439_v36, 1  ;;  %v710_v13 = vrot.slane %v6443_v33, 2  ;;  %v6457_v10 = vsel %vm495_vm3, %v493_v14, 0.0  ;;  %v590_v50 = vadd.f32 %v572_v12, %v505_v46 }
 0x159   :  { %v6462_v35 = vmul.f32 %v6343_v59, %v6457_v10  ;;  %v6466_v20 = vmul.f32 %v6372_v32, %v6457_v10  ;;  %v6470_v21 = vmul.f32 %v6351_v63, %v6457_v10  ;;  %v6474_v34 = vmul.f32 %v6358_v57, %v6457_v10  ;;  %v468_v14 = vpop.permute.xlu0 %467  ;;  %v480_v36 = vpop.permute.xlu1 %479 }
 0x15a   :  { %v6478_v33 = vmul.f32 %v6336_v51, %v6457_v10  ;;  %v6482_v42 = vmul.f32 %v6348_v40, %v6457_v10  ;;  %v489_v37 = vsel %vm485_vm1, %v6249_v43, %v468_v14  ;;  %v604_v6 = vsel %vm568_vm4, %v602_v45, %v6394_v27 }
 0x15b   :  { %v494_v9 = vsel %vm490_vm2, %v489_v37, %v480_v36  ;;  %v606_v43 = vsel %vm568_vm4, %v6394_v27, %v605_v17  ;;  %v622_v37 = vadd.f32 %v604_v6, %v523_v28  ;;  %v709_v28 = vsel %vm637_vm5, %v707_v18, %v6383_v31 }
 0x15c   :  { %v6494_v5 = vsel %vm495_vm3, %v494_v9, 0.0  ;;  %v623_v7 = vadd.f32 %v606_v43, %v6386_v29 }
 0x15d   :  { %v6500_v12 = vmul.f32 %v6343_v59, %v6494_v5  ;;  %v6504_v46 = vmul.f32 %v6372_v32, %v6494_v5  ;;  %v6508_v14 = vmul.f32 %v6351_v63, %v6494_v5  ;;  %v6512_v36 = vmul.f32 %v6358_v57, %v6494_v5 }
 0x15e   :  { %v6516_v9 = vmul.f32 %v6336_v51, %v6494_v5  ;;  %v6520_v59 = vmul.f32 %v6348_v40, %v6494_v5  ;;  %v621_v32 = vadd.f32 %v602_v45, %v6386_v29  ;;  %v676_v57 = vsel %vm568_vm4, %v674_v53, %v6364_v39 }
 0x15f   :  { %v639_v2 = vrot.slane %v622_v37, 2  ;;  %v641_v40 = vrot.slane %v623_v7, 2  ;;  %v678_v45 = vsel %vm568_vm4, %v6364_v39, %v677_v15  ;;  %v694_v6 = vadd.f32 %v676_v57, %v6413_v23 }
 0x160   :  { %v638_v11 = vrot.slane %v621_v32, 2  ;;  %v695_v8 = vadd.f32 %v678_v45, %v6368_v41  ;;  %v711_v53 = vsel %vm637_vm5, %v6383_v31, %v710_v13  ;;  %v7234_v51 = vrot.slane %v6423_v19, 1 }
 0x161   :  { %v642_v32 = vsel %vm637_vm5, %v639_v2, %v641_v40  ;;  %v727_v4 = vadd.f32 %v709_v28, %v694_v6  ;;  %v679_v45 = vsel %vm568_vm4, %v677_v15, %v6364_v39  ;;  %v7236_v6 = vrot.slane %v6470_v21, 1 }
 0x162   :  { %v640_v43 = vsel %vm637_vm5, %v638_v11, %v639_v2  ;;  %v574_v7 = vsel %vm568_vm4, %v6388_v26, %v7234_v51  ;;  %v662_v57 = vadd.f32 %v642_v32, %v590_v50  ;;  %v728_v18 = vadd.f32 %v711_v53, %v695_v8 }
 0x163   :  { %v661_v37 = vadd.f32 %v640_v43, %v589_v38  ;;  %v591_v23 = vadd.f32 %v574_v7, %v6392_v24  ;;  %v607_v11 = vsel %vm568_vm4, %v605_v17, %v6394_v27  ;;  %v744_v63 = vrot.slane %v727_v4, 4 }
 0x164   :  { %v624_v0 = vadd.f32 %v607_v11, %v6427_v61  ;;  %v696_v51 = vadd.f32 %v679_v45, %v6435_v22  ;;  %v712_v2 = vsel %vm637_vm5, %v710_v13, %v6383_v31  ;;  %v745_v38 = vrot.slane %v728_v18, 4 }
 0x165   :  { %v506_v50 = vmul.f32 %v6380_v30, %v6419_v16  ;;  %v7235_v8 = vrot.slane %v6423_v19, 1  ;;  %v609_v4 = vsel %vm568_vm4, %v6394_v27, %v7236_v6  ;;  %v767_v15 = vadd.f32 %v744_v63, %v661_v37 }
 0x166   :  { %v643_v61 = vrot.slane %v624_v0, 2  ;;  %v729_v22 = vadd.f32 %v712_v2, %v696_v51  ;;  %v625_v28 = vadd.f32 %v609_v4, %v6386_v29  ;;  %v746_v13 = vsel %vm743_vm6, %v744_v63, %v745_v38 }
 0x167   :  { %v575_v17 = vsel %vm568_vm4, %v7235_v8, %v6388_v26  ;;  %v7237_v16 = vrot.slane %v6478_v33, 1  ;;  %v7238_v53 = vrot.slane %v6482_v42, 2  ;;  %v768_v32 = vadd.f32 %v746_v13, %v662_v57 }
 0x168   :  { %v592_v43 = vadd.f32 %v575_v17, %v506_v50  ;;  %v779_v37 = vadd.f32 %v6400_v25, %v767_v15  ;;  %v644_v0 = vsel %vm637_vm5, %v641_v40, %v643_v61  ;;  %v747_v18 = vrot.slane %v729_v22, 4 }
 0x169   :  { %v681_v19 = vsel %vm568_vm4, %v6364_v39, %v7237_v16  ;;  %v714_v7 = vsel %vm637_vm5, %v6383_v31, %v7238_v53  ;;  %v663_v11 = vadd.f32 %v644_v0, %v591_v23  ;;  %v645_v45 = vrot.slane %v625_v28, 2 }
 0x16a   :  { %v697_v63 = vadd.f32 %v681_v19, %v6368_v41  ;;  %v7239_v51 = vrot.slane %v6462_v35, 1  ;;  %v780_v50 = vadd.f32 %v6400_v25, %v768_v32  ;;  %v800_v8 = vrot.slane %v779_v37, 5 }
 0x16b   :  { %v748_v17 = vsel %vm743_vm6, %v745_v38, %v747_v18  ;;  %v646_v40 = vsel %vm637_vm5, %v643_v61, %v645_v45  ;;  %v7240_v23 = vrot.slane %v6470_v21, 1  ;;  %v682_v38 = vsel %vm568_vm4, %v7237_v16, %v6364_v39 }
 0x16c   :  { %v577_v2 = vsel %vm568_vm4, %v6388_v26, %v7239_v51  ;;  %v769_v6 = vadd.f32 %v748_v17, %v663_v11  ;;  %v730_v4 = vadd.f32 %v714_v7, %v697_v63  ;;  %v801_v22 = vrot.slane %v780_v50, 5 }
 0x16d   :  { %v593_v57 = vadd.f32 %v577_v2, %v6392_v24  ;;  %v610_v15 = vsel %vm568_vm4, %v7240_v23, %v6394_v27  ;;  %v664_v28 = vadd.f32 %v646_v40, %v592_v43  ;;  %v698_v61 = vadd.f32 %v682_v38, %v6474_v34 }
 0x16e   :  { %v626_v13 = vadd.f32 %v610_v15, %v6466_v20  ;;  %v781_v19 = vadd.f32 %v6400_v25, %v769_v6  ;;  %v749_v53 = vrot.slane %v730_v4, 4  ;;  %v7241_v7 = vrot.slane %v6482_v42, 2 }
 0x16f   :  { %v802_v32 = vsel %vm799_vm7, %v800_v8, %v801_v22  ;;  %v507_v20 = vmul.f32 %v6380_v30, %v6457_v10  ;;  %v7242_v33 = vmov %v7239_v51  ;;  %v7243_v42 = vrot.slane %v6508_v14, 1 }
 0x170   :  { %v715_v21 = vsel %vm637_vm5, %v7241_v7, %v6383_v31  ;;  %v647_v43 = vrot.slane %v626_v13, 2  ;;  %v578_v37 = vsel %vm568_vm4, %v7242_v33, %v6388_v26  ;;  %4286 = vmatmul.mubr.f32.vlgmr.msra.gmra.mrb[0].mxu0 %v802_v32  ;;  %v803_v0 = vrot.slane %v781_v19, 5 }
 0x171   :  { %v750_v34 = vsel %vm743_vm6, %v747_v18, %v749_v53  ;;  %v731_v11 = vadd.f32 %v715_v21, %v698_v61  ;;  %v612_v63 = vsel %vm568_vm4, %v6394_v27, %v7243_v42  ;;  %v7244_v51 = vmov 0.0   ;;  %4432 = vmatpush3.bf16.msra.mxu0 %v6265_v55 }
 0x172   :  { %4288 = vmatprep.mubr.msk.f32.mxu0 %vm5533_vm0, %v7244_v51  ;;  %v770_v2 = vadd.f32 %v750_v34, %v664_v28  ;;  %v648_v10 = vsel %vm637_vm5, %v645_v45, %v647_v43  ;;  %v594_v50 = vadd.f32 %v578_v37, %v507_v20  ;;  %v627_v35 = vadd.f32 %v612_v63, %v6386_v29 }
 0x173   :  { %v804_v8 = vsel %vm799_vm7, %v801_v22, %v803_v0  ;;  %v665_v17 = vadd.f32 %v648_v10, %v593_v57  ;;  %v751_v6 = vrot.slane %v731_v11, 4  ;;  %v7245_v18 = vrot.slane %v6516_v9, 1  ;;  %4434 = vmatprep.subr.bf16.mxu0 %v6271_v58 }
 0x174   :  { %v782_v27 = vadd.f32 %v6400_v25, %v770_v2  ;;  %v649_v4 = vrot.slane %v627_v35, 2  ;;  %v7246_v45 = vrot.slane %v6520_v59, 2  ;;  %4289 = vmatmul.mubr.f32.gmra.mrb[2].mxu0 %v804_v8  ;;  %v7247_v15 = vrot.slane %v6500_v12, 1 }
 0x175   :  { %v684_v40 = vsel %vm568_vm4, %v6364_v39, %v7245_v18  ;;  %v752_v57 = vsel %vm743_vm6, %v749_v53, %v751_v6  ;;  %v7248_v22 = vmov %v7243_v42  ;;  %4291 = vmatprep.mubr.msk.f32.mxu0 %vm5533_vm0, %v7244_v51  ;;  %4436 = vmatpush3.bf16.msra.mxu0 %v6271_v58  ;;  %v757_v58 = vrot.slane %v6403_v49, 4 }
 0x176   :  { %v699_v23 = vadd.f32 %v684_v40, %v6368_v41  ;;  %v717_v29 = vsel %vm637_vm5, %v6383_v31, %v7246_v45  ;;  %v580_v55 = vsel %vm568_vm4, %v6388_v26, %v7247_v15  ;;  %v628_v28 = vadd.f32 %v7248_v22, %v6504_v46  ;;  %4438 = vmatprep.subr.bf16.mxu0 %v6282_v56 }
 0x177   :  { %v7249_v41 = vmov %v7245_v18  ;;  %v805_v16 = vrot.slane %v782_v27, 5  ;;  %v771_v38 = vadd.f32 %v752_v57, %v665_v17  ;;  %v650_v19 = vsel %vm637_vm5, %v647_v43, %v649_v4  ;;  %v408_v17 = vld [vmem:[%s7119_s5 + $0x78] sm:$0xff] }
 0x178   :  { %v685_v13 = vsel %vm568_vm4, %v7249_v41, %v6364_v39  ;;  %v732_v53 = vadd.f32 %v717_v29, %v699_v23  ;;  %v666_v61 = vadd.f32 %v650_v19, %v594_v50  ;;  %v595_v26 = vadd.f32 %v580_v55, %v6392_v24 }
 0x179   :  { %v651_v7 = vrot.slane %v628_v28, 2  ;;  %v700_v14 = vadd.f32 %v685_v13, %v6512_v36  ;;  %v806_v46 = vsel %vm799_vm7, %v803_v0, %v805_v16  ;;  %v783_v39 = vadd.f32 %v6400_v25, %v771_v38  ;;  %4440 = vmatpush3.bf16.msra.mxu0 %v6282_v56 }
 0x17a   :  { %v753_v9 = vrot.slane %v732_v53, 4  ;;  %v7250_v21 = vmov %v7246_v45  ;;  %4292 = vmatmul.mubr.f32.gmra.mrb[4].mxu0 %v806_v46  ;;  %v508_v36 = vmul.f32 %v6380_v30, %v6494_v5  ;;  %v7251_v0 = vmov %v7247_v15  ;;  %4442 = vmatprep.subr.bf16.mxu0 %v6292_v60 }
 0x17b   :  { %v718_v32 = vsel %vm637_vm5, %v7250_v21, %v6383_v31  ;;  %v652_v24 = vsel %vm637_vm5, %v649_v4, %v651_v7  ;;  %4294 = vmatprep.mubr.msk.f32.mxu0 %vm5533_vm0, %v7244_v51  ;;  %v807_v20 = vrot.slane %v783_v39, 5 }
 0x17c   :  { %v733_v43 = vadd.f32 %v718_v32, %v700_v14  ;;  %v754_v33 = vsel %vm743_vm6, %v751_v6, %v753_v9  ;;  %v667_v59 = vadd.f32 %v652_v24, %v595_v26  ;;  %v596_v34 = vadd.f32 %v7251_v0, %v508_v36 }
 0x17d   :  { %v772_v37 = vadd.f32 %v754_v33, %v666_v61  ;;  %v808_v11 = vsel %vm799_vm7, %v805_v16, %v807_v20  ;;  %4444 = vmatpush3.bf16.msra.mxu0 %v6292_v60 }
 0x17e   :  { %v755_v31 = vrot.slane %v733_v43, 4  ;;  %4295 = vmatmul.mubr.f32.gmra.mrb[6].mxu0 %v808_v11  ;;  %v668_v49 = vadd.f32 %v651_v7, %v596_v34  ;;  %4446 = vmatprep.subr.bf16.mxu0 %v6302_v44  ;;  %v5535_v43 = vmov 0  }
 0x17f   :  { %v784_v5 = vadd.f32 %v6400_v25, %v772_v37  ;;  %4297 = vmatprep.mubr.msk.f32.mxu0 %vm5533_vm0, %v7244_v51  ;;  %5250 = vset.pattern.permute.xlu0 %v5535_v43 }
 0x180   :  { %v756_v30 = vsel %vm743_vm6, %v753_v9, %v755_v31  ;;  %v758_v42 = vsel %vm743_vm6, %v755_v31, %v757_v58  ;;  %5251 = vset.pattern.permute.xlu1 %v5535_v43 }
 0x181   :  { %v773_v63 = vadd.f32 %v756_v30, %v667_v59  ;;  %v809_v12 = vrot.slane %v784_v5, 5  ;;  %v774_v2 = vadd.f32 %v758_v42, %v668_v49  ;;  %4448 = vmatpush3.bf16.msra.mxu0 %v6302_v44  ;;  %v407_v44 = vld [vmem:[%s7119_s5 + $0x70] sm:$0xff] }
 0x182   :  { %4450 = vmatprep.subr.bf16.mxu0 %v6312_v47  ;;  %v4457_v6 = vpack.c.bf16 %v408_v17, %v407_v44 }
 0x183   :  { %v785_v56 = vadd.f32 %v6400_v25, %v773_v63  ;;  %v810_v10 = vsel %vm799_vm7, %v807_v20, %v809_v12  ;;  %v786_v50 = vadd.f32 %v6400_v25, %v774_v2 }
 0x184   :  { %4298 = vmatmul.mubr.f32.gmra.mrb[8].mxu0 %v810_v10  ;;  %5208 = vmatprep.subr.bf16.mxu1 %v4457_v6 }
 0x185   :  { %v811_v35 = vrot.slane %v785_v56, 5  ;;  %4300 = vmatprep.mubr.msk.f32.mxu0 %vm5533_vm0, %v7244_v51  ;;  %v813_v60 = vrot.slane %v786_v50, 5  ;;  %4452 = vmatpush3.bf16.msra.mxu0 %v6312_v47  ;;  %v6692_v47 = vld [vmem:[#allocation10 + $0x8] sm:$0xff] }
 0x186   :  { %4454 = vmatprep.subr.bf16.mxu0 %v6322_v52  ;;  %5216 = vmatpush3.bf16.msra.mxu1 %v4457_v6  ;;  %v790_v18 = vrot.slane %v6692_v47, %v6361_v54 }
 0x187   :  { %v812_v8 = vsel %vm799_vm7, %v809_v12, %v811_v35  ;;  %v814_v25 = vsel %vm799_vm7, %v811_v35, %v813_v60 }
 0x188   :  { %4301 = vmatmul.mubr.f32.gmra.mrb[10].mxu0 %v812_v8 }
 0x189   :  { %4303 = vmatprep.mubr.msk.f32.mxu0 %vm5533_vm0, %v7244_v51  ;;  %4456 = vmatpush3.bf16.msra.mxu0 %v6322_v52 }
 0x18a   :  { %4458 = vmatprep.subr.bf16.mxu0 %v4457_v6 }
 0x18c   :  { %4304 = vmatmul.mubr.f32.gmra.mrb[12].mxu0 %v814_v25 }
 0x18d   :  { %4460 = vmatpush3.bf16.msra.mxu0 %v4457_v6 }
 0x243   :  { %v888_v40 = vpop.f32.mrb[0].mxu0 }
 0x244   :  { %v6696_v52 = vadd.f32 %v888_v40, %v790_v18  ;;  %v4287_v27 = vpop.f32.mrb[1].mxu0 }
 0x246   :  { %4338 = vmatprep.mubr.f32.mxu0 %v6696_v52  ;;  %v922_v32 = vmul.f32 %v6696_v52, %v6696_v52 }
 0x247   :  { %v893_v4 = vpop.f32.mrb[2].mxu0 }
 0x248   :  { %v894_v23 = vadd.f32 %v893_v4, %v790_v18  ;;  %v4290_v45 = vpop.f32.mrb[3].mxu0 }
 0x24a   :  { %4339 = vmatmul.mubr.f32.vlgmr.msra.gmra.mrb[14].mxu0 %v894_v23  ;;  %v923_v29 = vmul.f32 %v894_v23, %v894_v23 }
 0x24c   :  { %4350 = vmatprep.mubr.f32.mxu1 %v923_v29 }
 0x24d   :  { %v898_v57 = vpop.f32.mrb[4].mxu0 }
 0x24e   :  { %v6699_v15 = vadd.f32 %v898_v57, %v790_v18  ;;  %v4293_v55 = vpop.f32.mrb[5].mxu0 }
 0x250   :  { %4341 = vmatprep.mubr.f32.mxu0 %v6699_v15  ;;  %v924_v22 = vmul.f32 %v6699_v15, %v6699_v15 }
 0x251   :  { %v903_v28 = vpop.f32.mrb[6].mxu0 }
 0x252   :  { %v904_v41 = vadd.f32 %v903_v28, %v790_v18  ;;  %v4296_v13 = vpop.f32.mrb[7].mxu0  ;;  %4351 = vmatmul.mubr.f32.vlgmr.msra.gmra.mrb[0].mxu1 %v924_v22  ;;  %v1129_v28 = vrot.slane %v6692_v47, %v6331_v48 }
 0x253   :  { %v1137_v13 = vrot.slane %v6692_v47, %v6354_v62 }
 0x254   :  { %v925_v16 = vmul.f32 %v904_v41, %v904_v41  ;;  %4342 = vmatmul.mubr.f32.gmra.mrb[16].mxu0 %v904_v41 }
 0x256   :  { %4353 = vmatprep.mubr.f32.mxu1 %v925_v16 }
 0x257   :  { %v908_v38 = vpop.f32.mrb[8].mxu0 }
 0x258   :  { %v6704_v19 = vadd.f32 %v908_v38, %v790_v18  ;;  %v4299_v53 = vpop.f32.mrb[9].mxu0 }
 0x25a   :  { %4344 = vmatprep.mubr.f32.mxu0 %v6704_v19  ;;  %v926_v61 = vmul.f32 %v6704_v19, %v6704_v19 }
 0x25b   :  { %v913_v26 = vpop.f32.mrb[10].mxu0 }
 0x25c   :  { %v914_v7 = vadd.f32 %v913_v26, %v790_v18  ;;  %v4302_v14 = vpop.f32.mrb[11].mxu0  ;;  %4354 = vmatmul.mubr.f32.gmra.mrb[2].mxu1 %v926_v61 }
 0x25e   :  { %v927_v46 = vmul.f32 %v914_v7, %v914_v7  ;;  %4345 = vmatmul.mubr.f32.gmra.mrb[18].mxu0 %v914_v7 }
 0x25f   :  { %v918_v39 = vpop.f32.mrb[12].mxu0 }
 0x260   :  { %v6709_v9 = vadd.f32 %v918_v39, %v790_v18  ;;  %v4305_v21 = vpop.f32.mrb[13].mxu0  ;;  %4356 = vmatprep.mubr.f32.mxu1 %v927_v46 }
 0x262   :  { %4347 = vmatprep.mubr.f32.mxu0 %v6709_v9  ;;  %v928_v24 = vmul.f32 %v6709_v9, %v6709_v9 }
 0x263   :  { %4348 = vmatmul.mubr.f32.gmra.mrb[20].mxu0 %v922_v32 }
 0x264   :  { %4357 = vmatmul.mubr.f32.gmra.mrb[4].mxu1 %v928_v24 }
 0x31d   :  { %v4340_v36 = vpop.f32.mrb[14].mxu0 }
 0x31e   :  { %v995_v58 = vpop.f32.mrb[15].mxu0 }
 0x31f   :  { %v1058_v12 = vmul.f32 %v995_v58, %v995_v58 }
 0x325   :  { %v4352_v20 = vpop.f32.mrb[0].mxu1 }
 0x326   :  { %v1032_v33 = vpop.f32.mrb[1].mxu1 }
 0x327   :  { %v4343_v59 = vpop.f32.mrb[16].mxu0 }
 0x328   :  { %v1004_v37 = vpop.f32.mrb[17].mxu0 }
 0x329   :  { %v1059_v31 = vmul.f32 %v1004_v37, %v1004_v37  ;;  %1077 = vperm.xlu0 %5250, %v1004_v37  }
 0x32b   :  { %v1063_v0 = vsub.f32 %v4352_v20, %v1059_v31 }
 0x32d   :  { %v1067_v34 = vmax.f32 %v1063_v0, 0.0 }
 0x32f   :  { %v4355_v11 = vpop.f32.mrb[2].mxu1  ;;  %v1095_v5 = vadd.f32 1e-05, %v1067_v34 }
 0x330   :  { %v1041_v30 = vpop.f32.mrb[3].mxu1 }
 0x331   :  { %v4346_v49 = vpop.f32.mrb[18].mxu0  ;;  %5268 = vrsqrt.f32 %v1095_v5 }
 0x332   :  { %v1013_v42 = vpop.f32.mrb[19].mxu0  ;;  %v1840_v49 = vld [vmem:[#allocation14 + $0x48] sm:$0xff] }
 0x333   :  { %v1060_v63 = vmul.f32 %v1013_v42, %v1013_v42 }
 0x335   :  { %v1064_v2 = vsub.f32 %v4355_v11, %v1060_v63 }
 0x336   :  { %v4349_v56 = vpop.f32.mrb[20].mxu0 }
 0x337   :  { %v1062_v10 = vsub.f32 %v4349_v56, %v1058_v12  ;;  %v1022_v50 = vpop.f32.mrb[21].mxu0  ;;  %v4358_v35 = vpop.f32.mrb[4].mxu1  ;;  %v1068_v27 = vmax.f32 %v1064_v2, 0.0  ;;  %v1852_v56 = vmul.f32 0.999995, %v1840_v49 }
 0x338   :  { %v1061_v8 = vmul.f32 %v1022_v50, %v1022_v50  ;;  %v1050_v60 = vpop.f32.mrb[5].mxu1  ;;  %1087 = vperm.xlu1 %5251, %v1022_v50  }
 0x339   :  { %v1066_v25 = vmax.f32 %v1062_v10, 0.0  ;;  %v1096_v4 = vadd.f32 1e-05, %v1068_v27 }
 0x33a   :  { %v1065_v44 = vsub.f32 %v4358_v35, %v1061_v8 }
 0x33b   :  { %v1094_v17 = vadd.f32 1e-05, %v1066_v25  ;;  %v5269_v6 = vpop.eup %5268 }
 0x33c   :  { %v1069_v18 = vmax.f32 %v1065_v44, 0.0  ;;  %1109 = vperm.xlu1 %5251, %v5269_v6  }
 0x33d   :  { %5270 = vrsqrt.f32 %v1094_v17  ;;  %v1894_v17 = vrot.slane %v1852_v56, %v6361_v54 }
 0x33e   :  { %v1097_v40 = vadd.f32 1e-05, %v1069_v18 }
 0x340   :  { %5272 = vrsqrt.f32 %v1097_v40  ;;  %1072 = vperm.xlu1 %5251, %v995_v58   ;;  %v1834_v40 = vld [vmem:[#allocation14 + $0x18] sm:$0xff] }
 0x341   :  { %5274 = vrsqrt.f32 %v1096_v4  ;;  %v1954_v4 = vrot.slane %v1840_v49, %v6331_v48 }
 0x347   :  { %v5271_v23 = vpop.eup %5270 }
 0x348   :  { %1104 = vperm.xlu1 %5251, %v5271_v23  }
 0x34a   :  { %v5273_v45 = vpop.eup %5272 }
 0x34b   :  { %1119 = vperm.xlu0 %5250, %v5273_v45   ;;  %v5275_v29 = vpop.eup %5274 }
 0x34f   :  { %1082 = vperm.xlu0 %5250, %v1013_v42  }
 0x353   :  { %1114 = vperm.xlu0 %5250, %v5275_v29   ;;  %v7252_v29 = vmov 0.0|0.0  }
 0x3a8   :  { %v1078_v57 = vpop.permute.xlu0 %1077 }
 0x3a9   :  { %v1091_v22 = vsub.f32 %v6699_v15, %v1078_v57 }
 0x3b7   :  { %v1088_v55 = vpop.permute.xlu1 %1087 }
 0x3b8   :  { %v1093_v15 = vsub.f32 %v6709_v9, %v1088_v55  ;;  %v1846_v55 = vmul.f32 0.999995, %v1834_v40 }
 0x3bb   :  { %v1110_v41 = vpop.permute.xlu1 %1109 }
 0x3bc   :  { %v1123_v16 = vmul.f32 %v1110_v41, %v1091_v22 }
 0x3be   :  { %v1131_v38 = vmul.f32 %v1129_v28, %v1123_v16  ;;  %v1870_v16 = vrot.slane %v1846_v55, %v6361_v54 }
 0x3bf   :  { %v1073_v61 = vpop.permute.xlu1 %1072 }
 0x3c0   :  { %v1139_v53 = vadd.f32 %v1137_v13, %v1131_v38  ;;  %v1090_v7 = vsub.f32 %v6696_v52, %v1073_v61  ;;  %v1930_v61 = vrot.slane %v1834_v40, %v6331_v48 }
 0x3c2   :  { %v6721_v26 = vmax.f32 %v1139_v53, 0.0 }
 0x3c4   :  { %v1792_v46 = vrot.slane %v6721_v26, 4 }
 0x3c6   :  { %v1793_v43 = vmax.f32 %v6721_v26, %v1792_v46 }
 0x3c7   :  { %v1105_v14 = vpop.permute.xlu1 %1104 }
 0x3c8   :  { %v1122_v39 = vmul.f32 %v1105_v14, %v1090_v7  ;;  %v1794_v59 = vrot.slane %v1793_v43, 2 }
 0x3ca   :  { %v1130_v21 = vmul.f32 %v1129_v28, %v1122_v39  ;;  %v1120_v32 = vpop.permute.xlu0 %1119  ;;  %v1795_v5 = vmax.f32 %v1793_v43, %v1794_v59  ;;  %v392_v39 = vld [vmem:[#allocation13 + $0x10] sm:$0xff] }
 0x3cb   :  { %v1125_v24 = vmul.f32 %v1120_v32, %v1093_v15  ;;  %v391_v15 = vld [vmem:[#allocation13 + $0x8] sm:$0xff] }
 0x3cc   :  { %v1138_v47 = vadd.f32 %v1137_v13, %v1130_v21  ;;  %v1796_v2 = vrot.slane %v1795_v5, 1 }
 0x3cd   :  { %v1133_v36 = vmul.f32 %v1129_v28, %v1125_v24 }
 0x3ce   :  { %v6727_v58 = vmax.f32 %v1138_v47, 0.0  ;;  %v1083_v20 = vpop.permute.xlu0 %1082  ;;  %v1797_v44 = vmax.f32 %v1795_v5, %v1796_v2 }
 0x3cf   :  { %v1141_v33 = vadd.f32 %v1137_v13, %v1133_v36  ;;  %v1092_v9 = vsub.f32 %v6704_v19, %v1083_v20 }
 0x3d0   :  { %4363 = vmatprep.mubr.f32.mxu0 %v6727_v58  ;;  %v1752_v52 = vrot.slane %v6727_v58, 4 }
 0x3d1   :  { %v6731_v37 = vmax.f32 %v1141_v33, 0.0 }
 0x3d2   :  { %v1115_v31 = vpop.permute.xlu0 %1114  ;;  %v1753_v30 = vmax.f32 %v6727_v58, %v1752_v52 }
 0x3d3   :  { %v1810_v0 = vrot.slane %v6731_v37, 4  ;;  %v1124_v34 = vmul.f32 %v1115_v31, %v1092_v9  ;;  %v6737_v11 = vpack.c.bf16 %v6731_v37, %v6721_v26 }
 0x3d4   :  { %v1754_v10 = vrot.slane %v1753_v30, 2 }
 0x3d5   :  { %v1811_v42 = vmax.f32 %v6731_v37, %v1810_v0  ;;  %v1132_v63 = vmul.f32 %v1129_v28, %v1124_v34  ;;  %4462 = vmatprep.subr.bf16.mxu0 %v6737_v11  ;;  %4466 = vmatprep.subr.bf16.mxu1 %v6737_v11 }
 0x3d6   :  { %4464 = vmatpush3.bf16.xpose.msra.mxu0 %v6737_v11  ;;  %4468 = vmatpush3.bf16.msra.mxu1 %v6737_v11  ;;  %v1755_v6 = vmax.f32 %v1753_v30, %v1754_v10 }
 0x3d7   :  { %v1812_v19 = vrot.slane %v1811_v42, 2  ;;  %v1140_v12 = vadd.f32 %v1137_v13, %v1132_v63 }
 0x3d8   :  { %v1756_v22 = vrot.slane %v1755_v6, 1 }
 0x3d9   :  { %v1813_v50 = vmax.f32 %v1811_v42, %v1812_v19  ;;  %v6745_v35 = vmax.f32 %v1140_v12, 0.0 }
 0x3da   :  { %v1757_v38 = vmax.f32 %v1755_v6, %v1756_v22 }
 0x3db   :  { %v1814_v8 = vrot.slane %v1813_v50, 1  ;;  %v1770_v60 = vrot.slane %v6745_v35, 4  ;;  %v6750_v25 = vpack.c.bf16 %v6745_v35, %v6727_v58 }
 0x3dd   :  { %v1815_v18 = vmax.f32 %v1813_v50, %v1814_v8  ;;  %v1771_v27 = vmax.f32 %v6745_v35, %v1770_v60  ;;  %4364 = vmatmul.mubr.f32.vlgmr.msra.gmra.mrb[22].mxu0 %v6745_v35  ;;  %4470 = vmatprep.subr.bf16.mxu0 %v6750_v25 }
 0x3de   :  { %4472 = vmatpush3.bf16.msra.mxu0 %v6750_v25 }
 0x3df   :  { %v1828_v23 = vsel %vm1788_vm8, %v1797_v44, %v1815_v18  ;;  %v1772_v45 = vrot.slane %v1771_v27, 2  ;;  %4477 = vmatprep.subr.bf16.mxu0 %v7252_v29 }
 0x3e0   :  { %v1912_v57 = vmul.f32 %v1894_v17, %v1828_v23 }
 0x3e1   :  { %v1773_v28 = vmax.f32 %v1771_v27, %v1772_v45 }
 0x3e2   :  { %v6760_v41 = vadd.f32 %v1954_v4, %v1912_v57 }
 0x3e3   :  { %v1774_v13 = vrot.slane %v1773_v28, 1 }
 0x3e5   :  { %v1775_v53 = vmax.f32 %v1773_v28, %v1774_v13 }
 0x3e7   :  { %v1789_v7 = vsel %vm1788_vm8, %v1757_v38, %v1775_v53 }
 0x3e8   :  { %v1906_v14 = vmul.f32 %v1870_v16, %v1789_v7 }
 0x3ea   :  { %v6765_v46 = vadd.f32 %v1930_v61, %v1906_v14 }
 0x4b0   :  { %v4365_v21 = vpop.f32.mrb[22].mxu0 }
 0x4b1   :  { %v1218_v32 = vadd.f32 %v4365_v21, %v392_v39  ;;  %v1212_v24 = vpop.f32.mrb[23].mxu0 }
 0x4b2   :  { %v1213_v43 = vadd.f32 %v1212_v24, %v391_v15 }
 0x4b3   :  { %v1225_v47 = vsel %vm1221_vm9, %v1218_v32, -inf }
 0x4b4   :  { %1226 = vmax.xlane.f32.xlu0 %v1225_v47  ;;  %v1222_v36 = vsel %vm1221_vm9, %v1213_v43, -inf }
 0x4b5   :  { %1223 = vmax.xlane.f32.xlu1 %v1222_v36  ;;  %v1325_v20 = vmax.f32 %v1222_v36, %v1225_v47 }
 0x4b7   :  { %v1326_v33 = vrot.slane %v1325_v20, 4 }
 0x4b9   :  { %v1327_v59 = vmax.f32 %v1325_v20, %v1326_v33 }
 0x4bb   :  { %v1328_v52 = vrot.slane %v1327_v59, 2 }
 0x4bd   :  { %v1329_v9 = vmax.f32 %v1327_v59, %v1328_v52 }
 0x4bf   :  { %v1330_v31 = vrot.slane %v1329_v9, 1 }
 0x4c1   :  { %v1331_v0 = vmax.f32 %v1329_v9, %v1330_v31  ;;  %v1835_v31 = vld [vmem:[#allocation14 + $0x20] sm:$0xff] }
 0x4c3   :  { %v1332_v34 = vsub.f32 %v1213_v43, %v1331_v0  ;;  %v1333_v5 = vsub.f32 %v1218_v32, %v1331_v0 }
 0x4c5   :  { %v1334_v30 = vmul.f32 1.442695, %v1332_v34  ;;  %v1336_v49 = vmul.f32 1.442695, %v1333_v5 }
 0x4c7   :  { %5276 = vpow2.f32 %v1334_v30  ;;  %v6783_v30 = vld [vmem:[#allocation13] sm:$0xff] }
 0x4c8   :  { %5278 = vpow2.f32 %v1336_v49 }
 0x4d1   :  { %v5277_v10 = vpop.eup %5276 }
 0x4d2   :  { %v5279_v50 = vpop.eup %5278  ;;  %v1338_v17 = vsel %vm1221_vm9, %v5277_v10, 0.0 }
 0x4d3   :  { %v1339_v6 = vsel %vm1221_vm9, %v5279_v50, 0.0 }
 0x4d4   :  { %v1340_v40 = vadd.f32 %v1339_v6, %v1338_v17 }
 0x4d6   :  { %v1341_v27 = vrot.slane %v1340_v40, 4 }
 0x4d8   :  { %v1342_v4 = vadd.f32 %v1341_v27, %v1340_v40 }
 0x4da   :  { %v1343_v23 = vrot.slane %v1342_v4, 2 }
 0x4dc   :  { %v1344_v45 = vadd.f32 %v1343_v23, %v1342_v4  ;;  %v1934_v4 = vrot.slane %v1835_v31, %v6331_v48 }
 0x4de   :  { %v1345_v57 = vrot.slane %v1344_v45, 1 }
 0x4e0   :  { %v1346_v55 = vadd.f32 %v1345_v57, %v1344_v45 }
 0x541   :  { %v1227_v42 = vpop.xlane.xlu0 %1226 }
 0x542   :  { %v1229_v63 = vsub.f32 %v1218_v32, %v1227_v42  ;;  %v1224_v19 = vpop.xlane.xlu1 %1223  ;;  %v1836_v42 = vld [vmem:[#allocation14 + $0x28] sm:$0xff] }
 0x543   :  { %v1228_v12 = vsub.f32 %v1213_v43, %v1224_v19  ;;  %v1847_v19 = vmul.f32 0.999995, %v1835_v31 }
 0x544   :  { %v1232_v2 = vmul.f32 1.442695, %v1229_v63 }
 0x545   :  { %v1230_v56 = vmul.f32 1.442695, %v1228_v12  ;;  %v1874_v17 = vrot.slane %v1847_v19, %v6361_v54 }
 0x546   :  { %5280 = vpow2.f32 %v1232_v2 }
 0x547   :  { %5282 = vpow2.f32 %v1230_v56 }
 0x548   :  { %5284 = vrcp.f32 %v1346_v55  ;;  %v1938_v55 = vrot.slane %v1836_v42, %v6331_v48 }
 0x550   :  { %v5281_v8 = vpop.eup %5280 }
 0x551   :  { %v5283_v60 = vpop.eup %5282  ;;  %v1237_v44 = vsel %vm1221_vm9, %v5281_v8, 0.0 }
 0x552   :  { %1238 = vadd.xlane.f32.xlu1 %v1237_v44  ;;  %v1234_v18 = vsel %vm1221_vm9, %v5283_v60, 0.0  ;;  %v5285_v22 = vpop.eup %5284 }
 0x553   :  { %1235 = vadd.xlane.f32.xlu0 %v1234_v18  ;;  %v1348_v28 = vmul.f32 %v5285_v22, %v5277_v10  ;;  %v1349_v13 = vmul.f32 %v5285_v22, %v5279_v50  ;;  %v1848_v50 = vmul.f32 0.999995, %v1836_v42 }
 0x555   :  { %v1878_v27 = vrot.slane %v1848_v50, %v6361_v54 }
 0x580   :  { %1350 = vxpose.xlu0.b32.start [1/2] (short) (narrow) %v1348_v28, 16 }
 0x584   :  { %1351 = vxpose.xlu0.b32.end [2/2] (short) (narrow) %v1349_v13, 16 }
 0x5df   :  { %v1239_v16 = vpop.xlane.xlu1 %1238 }
 0x5e0   :  { %5286 = vrcp.f32 %v1239_v16  ;;  %v1236_v38 = vpop.xlane.xlu0 %1235 }
 0x5e1   :  { %5288 = vrcp.f32 %v1236_v38 }
 0x5ea   :  { %v5287_v53 = vpop.eup %5286 }
 0x5eb   :  { %v5289_v61 = vpop.eup %5288  ;;  %v1243_v14 = vmul.f32 %v5287_v53, %v5281_v8 }
 0x5ec   :  { %v1241_v7 = vmul.f32 %v5289_v61, %v5283_v60 }
 0x5ee   :  { %4370 = vmatprep.mubr.msk.f32.mxu1 %vm1221_vm9, %v1241_v7 }
 0x5ef   :  { %4371 = vmatmul.mubr.msk.f32.vlgmr.msra.gmra.mrb[6].mxu1 %vm1221_vm9, %v1243_v14 }
 0x5f0   :  { %1534 = vmatprep.mubr.f32.mxu1 %v7244_v51 }
 0x600   :  { %v1366_v39 = vpop.trf.xlu0 }
 0x601   :  { %4377 = vmatprep.mubr.msk.f32.mxu0 %vm1221_vm9, %v1366_v39 }
 0x604   :  { %v1367_v15 = vpop.trf.xlu0 }
 0x605   :  { %4378 = vmatmul.mubr.msk.f32.vlgmr.msra.gmra.mrb[24].mxu0 %vm1221_vm9, %v1367_v15 }
 0x606   :  { %4384 = vmatprep.mubr.msk.f32.mxu0 %vm5533_vm0, %v7244_v51 }
 0x6c2   :  { %v4372_v21 = vpop.f32.mrb[6].mxu1 }
 0x6c3   :  { %v1464_v32 = vmul.f32 %v4372_v21, %v6745_v35  ;;  %v1776_v24 = vrot.slane %v4372_v21, 4  ;;  %v1316_v43 = vpop.f32.mrb[7].mxu1 }
 0x6c4   :  { %v1463_v47 = vmul.f32 %v1316_v43, %v6727_v58  ;;  %v1758_v36 = vrot.slane %v1316_v43, 4  ;;  %v4473_v20 = vpack.c.bf16 %v4372_v21, %v1316_v43 }
 0x6c5   :  { %v1777_v33 = vmax.f32 %v4372_v21, %v1776_v24  ;;  %v1782_v59 = vrot.slane %v1464_v32, 4 }
 0x6c6   :  { %v1759_v52 = vmax.f32 %v1316_v43, %v1758_v36  ;;  %v1764_v9 = vrot.slane %v1463_v47, 4  ;;  %4474 = vmatprep.subr.bf16.mxu1 %v4473_v20  ;;  %v4478_v0 = vpack.c.bf16 %v1464_v32, %v1463_v47 }
 0x6c7   :  { %v1778_v34 = vrot.slane %v1777_v33, 2  ;;  %v1783_v5 = vmax.f32 %v1464_v32, %v1782_v59  ;;  %4476 = vmatpush1.bf16.msra.mxu1 %v6750_v25 }
 0x6c8   :  { %v1760_v35 = vrot.slane %v1759_v52, 2  ;;  %v1765_v49 = vmax.f32 %v1463_v47, %v1764_v9  ;;  %4479 = vmatpush3.bf16.msra.mxu0 %v4478_v0  ;;  %v1841_v47 = vld [vmem:[#allocation14 + $0x50] sm:$0xff] }
 0x6c9   :  { %v1779_v58 = vmax.f32 %v1777_v33, %v1778_v34  ;;  %v1784_v63 = vrot.slane %v1783_v5, 2  ;;  %4484 = vmatprep.subr.bf16.mxu0 %v7252_v29  ;;  %v1958_v50 = vrot.slane %v1841_v47, %v6331_v48 }
 0x6ca   :  { %v1761_v12 = vmax.f32 %v1759_v52, %v1760_v35  ;;  %v1766_v2 = vrot.slane %v1765_v49, 2  ;;  %3951 = vmatmul.mubr.msk.f32.vlgmr.msra.gmra.mrb[8].mxu1 %vm1221_vm9, %v6783_v30 }
 0x6cb   :  { %v1780_v56 = vrot.slane %v1779_v58, 1  ;;  %v1785_v10 = vmax.f32 %v1783_v5, %v1784_v63  ;;  %4385 = vmatmul.mubr.msk.f32.vlgmr.msra.gmra.mrb[26].mxu0 %vm1221_vm9, %v6783_v30  ;;  %1675 = vmatprep.mubr.f32.mxu1 %v7244_v51 }
 0x6cc   :  { %v1762_v25 = vrot.slane %v1761_v12, 1  ;;  %v1767_v8 = vmax.f32 %v1765_v49, %v1766_v2  ;;  %4391 = vmatprep.mubr.msk.f32.mxu0 %vm5533_vm0, %v7244_v51 }
 0x6cd   :  { %v1781_v60 = vmax.f32 %v1779_v58, %v1780_v56  ;;  %v1786_v44 = vrot.slane %v1785_v10, 1 }
 0x6ce   :  { %v1763_v6 = vmax.f32 %v1761_v12, %v1762_v25  ;;  %v1768_v18 = vrot.slane %v1767_v8, 1 }
 0x6cf   :  { %v1787_v40 = vmax.f32 %v1785_v10, %v1786_v44 }
 0x6d0   :  { %v1769_v23 = vmax.f32 %v1767_v8, %v1768_v18  ;;  %v1790_v45 = vsel %vm1788_vm8, %v1763_v6, %v1781_v60 }
 0x6d1   :  { %v1907_v57 = vmul.f32 %v1874_v17, %v1790_v45 }
 0x6d2   :  { %v1791_v22 = vsel %vm1788_vm8, %v1769_v23, %v1787_v40  ;;  %v6820_v40 = vld [vmem:[#allocation14] sm:$0xff] }
 0x6d3   :  { %v1908_v28 = vmul.f32 %v1878_v27, %v1791_v22  ;;  %v6799_v13 = vadd.f32 %v1934_v4, %v1907_v57  ;;  %v6822_v27 = vld [vmem:[#allocation14 + $0x8] sm:$0xff]  ;;  %v6824_v4 = vld [vmem:[#allocation14 + $0x10] sm:$0xff]  ;;  %v6827_v23 = vmul.f32 0.999995, %v6820_v40 }
 0x6d4   :  { %v1844_v45 = vmul.f32 0.999995, %v6822_v27  ;;  %v1845_v57 = vmul.f32 0.999995, %v6824_v4 }
 0x6d5   :  { %v6801_v16 = vadd.f32 %v1938_v55, %v1908_v28  ;;  %v1858_v55 = vrot.slane %v6827_v23, %v6361_v54 }
 0x6d6   :  { %v1862_v22 = vrot.slane %v1844_v45, %v6361_v54  ;;  %v1866_v28 = vrot.slane %v1845_v57, %v6361_v54 }
 0x6d8   :  { %v4379_v38 = vpop.f32.mrb[24].mxu0 }
 0x6d9   :  { %v1466_v53 = vmul.f32 %v4379_v38, %v6731_v37  ;;  %v1816_v61 = vrot.slane %v4379_v38, 4  ;;  %v1454_v7 = vpop.f32.mrb[25].mxu0  ;;  %v1842_v37 = vld [vmem:[#allocation14 + $0x58] sm:$0xff] }
 0x6da   :  { %v1465_v14 = vmul.f32 %v1454_v7, %v6721_v26  ;;  %v1798_v39 = vrot.slane %v1454_v7, 4  ;;  %v4480_v15 = vpack.c.bf16 %v4379_v38, %v1454_v7  ;;  %v1853_v26 = vmul.f32 0.999995, %v1841_v47 }
 0x6db   :  { %v1817_v21 = vmax.f32 %v4379_v38, %v1816_v61  ;;  %v1822_v32 = vrot.slane %v1466_v53, 4  ;;  %v1854_v49 = vmul.f32 0.999995, %v1842_v37  ;;  %v1962_v44 = vrot.slane %v1842_v37, %v6331_v48 }
 0x6dc   :  { %v1799_v24 = vmax.f32 %v1454_v7, %v1798_v39  ;;  %v1804_v43 = vrot.slane %v1465_v14, 4  ;;  %4481 = vmatprep.subr.bf16.mxu1 %v4480_v15  ;;  %v4485_v36 = vpack.c.bf16 %v1466_v53, %v1465_v14  ;;  %v1898_v19 = vrot.slane %v1853_v26, %v6361_v54 }
 0x6dd   :  { %v1818_v20 = vrot.slane %v1817_v21, 2  ;;  %v1823_v33 = vmax.f32 %v1466_v53, %v1822_v32  ;;  %4483 = vmatpush1.bf16.msra.mxu1 %v6737_v11  ;;  %v1902_v10 = vrot.slane %v1854_v49, %v6361_v54  ;;  %v1918_v38 = vrot.slane %v6820_v40, %v6331_v48 }
 0x6de   :  { %v1800_v59 = vrot.slane %v1799_v24, 2  ;;  %v1805_v52 = vmax.f32 %v1465_v14, %v1804_v43  ;;  %4486 = vmatpush3.bf16.msra.mxu0 %v4485_v36  ;;  %v1922_v61 = vrot.slane %v6822_v27, %v6331_v48  ;;  %v1926_v7 = vrot.slane %v6824_v4, %v6331_v48 }
 0x6df   :  { %v1819_v9 = vmax.f32 %v1817_v21, %v1818_v20  ;;  %v1824_v31 = vrot.slane %v1823_v33, 2  ;;  %v1837_v20 = vld [vmem:[#allocation14 + $0x30] sm:$0xff] }
 0x6e0   :  { %v1801_v0 = vmax.f32 %v1799_v24, %v1800_v59  ;;  %v1806_v34 = vrot.slane %v1805_v52, 2  ;;  %3953 = vmatmul.mubr.msk.f32.vlgmr.msra.gmra.mrb[10].mxu1 %vm1221_vm9, %v6783_v30  ;;  %v1839_v59 = vld [vmem:[#allocation14 + $0x40] sm:$0xff] }
 0x6e1   :  { %v1820_v5 = vrot.slane %v1819_v9, 1  ;;  %v1825_v35 = vmax.f32 %v1823_v33, %v1824_v31  ;;  %4392 = vmatmul.mubr.msk.f32.vlgmr.msra.gmra.mrb[28].mxu0 %vm1221_vm9, %v6783_v30  ;;  %v1838_v33 = vld [vmem:[#allocation14 + $0x38] sm:$0xff]  ;;  %v1950_v49 = vrot.slane %v1839_v59, %v6331_v48 }
 0x6e2   :  { %v1802_v42 = vrot.slane %v1801_v0, 1  ;;  %v1807_v11 = vmax.f32 %v1805_v52, %v1806_v34  ;;  %v1849_v52 = vmul.f32 0.999995, %v1837_v20  ;;  %v1850_v37 = vmul.f32 0.999995, %v1838_v33 }
 0x6e3   :  { %v1821_v58 = vmax.f32 %v1819_v9, %v1820_v5  ;;  %v1826_v63 = vrot.slane %v1825_v35, 1  ;;  %v1851_v9 = vmul.f32 0.999995, %v1839_v59  ;;  %v1942_v34 = vrot.slane %v1837_v20, %v6331_v48 }
 0x6e4   :  { %v1803_v12 = vmax.f32 %v1801_v0, %v1802_v42  ;;  %v1808_v2 = vrot.slane %v1807_v11, 1  ;;  %v1882_v31 = vrot.slane %v1849_v52, %v6361_v54  ;;  %v1886_v26 = vrot.slane %v1850_v37, %v6361_v54 }
 0x6e5   :  { %v1827_v56 = vmax.f32 %v1825_v35, %v1826_v63  ;;  %v1890_v0 = vrot.slane %v1851_v9, %v6361_v54  ;;  %v1946_v35 = vrot.slane %v1838_v33, %v6331_v48 }
 0x6e6   :  { %v1809_v25 = vmax.f32 %v1807_v11, %v1808_v2  ;;  %v1829_v8 = vsel %vm1788_vm8, %v1803_v12, %v1821_v58 }
 0x6e7   :  { %v1913_v60 = vmul.f32 %v1898_v19, %v1829_v8 }
 0x6e8   :  { %v1830_v30 = vsel %vm1788_vm8, %v1809_v25, %v1827_v56 }
 0x6e9   :  { %v1914_v17 = vmul.f32 %v1902_v10, %v1830_v30  ;;  %v6816_v6 = vadd.f32 %v1958_v50, %v1913_v60 }
 0x6eb   :  { %v6818_v18 = vadd.f32 %v1962_v44, %v1914_v17 }
 0x79d   :  { %v1536_v53 = vpop.f32.mrb[8].mxu1 }
 0x79e   :  { %v1903_v14 = vmul.f32 %v1858_v55, %v1536_v53  ;;  %v1538_v39 = vpop.f32.mrb[9].mxu1  ;;  %v1607_v15 = vpop.f32.mrb[26].mxu0 }
 0x79f   :  { %v1904_v21 = vmul.f32 %v1862_v22, %v1538_v39  ;;  %v1905_v32 = vmul.f32 %v1866_v28, %v1607_v15  ;;  %v4386_v24 = vpop.f32.mrb[27].mxu0 }
 0x7a0   :  { %v6841_v43 = vadd.f32 %v1918_v38, %v1903_v14 }
 0x7a1   :  { %v1964_v47 = vadd.f32 %v1922_v61, %v1904_v21  ;;  %v6843_v36 = vadd.f32 %v1926_v7, %v1905_v32 }
 0x7b3   :  { %v1677_v5 = vpop.f32.mrb[10].mxu1 }
 0x7b4   :  { %v1909_v42 = vmul.f32 %v1882_v31, %v1677_v5  ;;  %v1679_v11 = vpop.f32.mrb[11].mxu1  ;;  %v1748_v58 = vpop.f32.mrb[28].mxu0 }
 0x7b5   :  { %v1910_v63 = vmul.f32 %v1886_v26, %v1679_v11  ;;  %v1911_v19 = vmul.f32 %v1890_v0, %v1748_v58  ;;  %v4393_v12 = vpop.f32.mrb[29].mxu0 }
 0x7b6   :  { %v6851_v2 = vadd.f32 %v1942_v34, %v1909_v42 }
 0x7b7   :  { %v6853_v56 = vadd.f32 %v1946_v35, %v1910_v63  ;;  %v6855_v10 = vadd.f32 %v1950_v49, %v1911_v19 }
 0x7b8   :  { %5514 = dma.done.wait [#allocation4], 73728 }
 0x7b9   :  { %5515 = vsyncadd [#allocation4], 4294893568 }
 0x7ba   :  { %5516 = dma.done.wait [#allocation4 + $0x1], 12288 }
 0x7bb   :  { %5517 = vsyncadd [#allocation4 + $0x1], 4294955008  ;;  %2635 = vmatprep.mubr.f32.mxu1 %v1964_v47  ;;  %3061 = vmatprep.mubr.f32.mxu0 %v1964_v47  ;;  %v1984_v54 = vld [vmem:[#allocation2 + $0x8] sm:$0xff]  ;;  %v1987_v48 = vld [vmem:[#allocation2 + $0x20] sm:$0xff] }
 0x7bc   :  { %v1983_v50 = vld [vmem:[#allocation2] sm:$0xff]  ;;  %v4487_v25 = vpack.c.bf16 %v1987_v48, %v1984_v54  ;;  %v1986_v8 = vld [vmem:[#allocation2 + $0x18] sm:$0xff]  ;;  %v1993_v44 = vld [vmem:[#allocation2 + $0x50] sm:$0xff] }
 0x7bd   :  { %v1990_v60 = vld [vmem:[#allocation2 + $0x38] sm:$0xff]  ;;  %v4489_v30 = vpack.c.bf16 %v1986_v8, %v1983_v50  ;;  %v1989_v45 = vld [vmem:[#allocation2 + $0x30] sm:$0xff]  ;;  %v1992_v57 = vld [vmem:[#allocation2 + $0x48] sm:$0xff] }
 0x7be   :  { %v4491_v17 = vpack.c.bf16 %v1993_v44, %v1990_v60  ;;  %v1996_v55 = vld [vmem:[#allocation2 + $0x68] sm:$0xff]  ;;  %4488 = vmatprep.subr.bf16.mxu1 %v4487_v25  ;;  %v1999_v22 = vld [vmem:[#allocation2 + $0x80] sm:$0xff]  ;;  %v4493_v28 = vpack.c.bf16 %v1992_v57, %v1989_v45  ;;  %v1998_v61 = vld [vmem:[#allocation2 + $0x78] sm:$0xff] }
 0x7bf   :  { %4490 = vmatpush1.bf16.msra.mxu1 %v4489_v30  ;;  %v4495_v38 = vpack.c.bf16 %v1999_v22, %v1996_v55  ;;  %v1995_v53 = vld [vmem:[#allocation2 + $0x60] sm:$0xff]  ;;  %v2002_v7 = vld [vmem:[#allocation2 + $0x98] sm:$0xff]  ;;  %v2005_v14 = vld [vmem:[#allocation2 + $0xb0] sm:$0xff] }
 0x7c0   :  { %4492 = vmatprep.subr.bf16.mxu1 %v4491_v17  ;;  %v4497_v39 = vpack.c.bf16 %v1998_v61, %v1995_v53  ;;  %v4499_v15 = vpack.c.bf16 %v2005_v14, %v2002_v7  ;;  %v2001_v21 = vld [vmem:[#allocation2 + $0x90] sm:$0xff]  ;;  %v2004_v32 = vld [vmem:[#allocation2 + $0xa8] sm:$0xff]  ;;  %v2011_v47 = vld [vmem:[#allocation2 + $0xe0] sm:$0xff] }
 0x7c1   :  { %v2008_v24 = vld [vmem:[#allocation2 + $0xc8] sm:$0xff]  ;;  %v4501_v20 = vpack.c.bf16 %v2004_v32, %v2001_v21  ;;  %v2007_v59 = vld [vmem:[#allocation2 + $0xc0] sm:$0xff]  ;;  %v2010_v52 = vld [vmem:[#allocation2 + $0xd8] sm:$0xff] }
 0x7c2   :  { %v4503_v33 = vpack.c.bf16 %v2011_v47, %v2008_v24  ;;  %v2014_v37 = vld [vmem:[#allocation2 + $0xf8] sm:$0xff]  ;;  %v2017_v9 = vld [vmem:[#allocation2 + $0x110] sm:$0xff]  ;;  %v4505_v31 = vpack.c.bf16 %v2010_v52, %v2007_v59  ;;  %v2016_v34 = vld [vmem:[#allocation2 + $0x108] sm:$0xff] }
 0x7c3   :  { %4494 = vmatpush1.bf16.msra.mxu1 %v4493_v28  ;;  %v4507_v26 = vpack.c.bf16 %v2017_v9, %v2014_v37  ;;  %v2013_v0 = vld [vmem:[#allocation2 + $0xf0] sm:$0xff]  ;;  %v2020_v5 = vld [vmem:[#allocation2 + $0x128] sm:$0xff]  ;;  %v2023_v35 = vld [vmem:[#allocation2 + $0x140] sm:$0xff] }
 0x7c4   :  { %4496 = vmatprep.subr.bf16.mxu1 %v4495_v38  ;;  %v2033_v49 = vld [vmem:[#allocation2 + $0x190] sm:$0xff]  ;;  %v2036_v42 = vld [vmem:[#allocation2 + $0x1a8] sm:$0xff]  ;;  %v4509_v11 = vpack.c.bf16 %v2016_v34, %v2013_v0  ;;  %v2019_v58 = vld [vmem:[#allocation2 + $0x120] sm:$0xff]  ;;  %v4511_v54 = vpack.c.bf16 %v2023_v35, %v2020_v5 }
 0x7c5   :  { %v4871_v63 = vpack.c.bf16 %v2036_v42, %v2033_v49  ;;  %v1985_v19 = vld [vmem:[#allocation2 + $0x10] sm:$0xff]  ;;  %v1988_v12 = vld [vmem:[#allocation2 + $0x28] sm:$0xff]  ;;  %v2022_v48 = vld [vmem:[#allocation2 + $0x138] sm:$0xff] }
 0x7c6   :  { %v4873_v50 = vpack.c.bf16 %v1988_v12, %v1985_v19  ;;  %v2039_v25 = vld [vmem:[#allocation2 + $0x1c0] sm:$0xff]  ;;  %v2042_v8 = vld [vmem:[#allocation2 + $0x1d8] sm:$0xff]  ;;  %v2029_v44 = vld [vmem:[#allocation2 + $0x170] sm:$0xff]  ;;  %v4513_v57 = vpack.c.bf16 %v2022_v48, %v2019_v58 }
 0x7c7   :  { %4498 = vmatpush1.bf16.msra.mxu1 %v4497_v39  ;;  %v2026_v60 = vld [vmem:[#allocation2 + $0x158] sm:$0xff]  ;;  %4872 = vmatprep.subr.bf16.mxu0 %v4871_v63  ;;  %v4875_v30 = vpack.c.bf16 %v2042_v8, %v2039_v25  ;;  %v1991_v17 = vld [vmem:[#allocation2 + $0x40] sm:$0xff]  ;;  %v2025_v55 = vld [vmem:[#allocation2 + $0x150] sm:$0xff] }
 0x7c8   :  { %4500 = vmatprep.subr.bf16.mxu1 %v4499_v15  ;;  %4874 = vmatpush3.bf16.msra.mxu0 %v4873_v50  ;;  %v1994_v45 = vld [vmem:[#allocation2 + $0x58] sm:$0xff]  ;;  %v2045_v28 = vld [vmem:[#allocation2 + $0x1f0] sm:$0xff]  ;;  %v2048_v38 = vld [vmem:[#allocation2 + $0x208] sm:$0xff]  ;;  %v4515_v53 = vpack.c.bf16 %v2029_v44, %v2026_v60 }
 0x7c9   :  { %4876 = vmatprep.subr.bf16.mxu0 %v4875_v30  ;;  %v4877_v22 = vpack.c.bf16 %v1994_v45, %v1991_v17  ;;  %v2028_v61 = vld [vmem:[#allocation2 + $0x168] sm:$0xff]  ;;  %v4879_v7 = vpack.c.bf16 %v2048_v38, %v2045_v28  ;;  %v1997_v14 = vld [vmem:[#allocation2 + $0x70] sm:$0xff]  ;;  %v2035_v21 = vld [vmem:[#allocation2 + $0x1a0] sm:$0xff] }
 0x7ca   :  { %v2000_v39 = vld [vmem:[#allocation2 + $0x88] sm:$0xff]  ;;  %v2051_v32 = vld [vmem:[#allocation2 + $0x220] sm:$0xff]  ;;  %v2054_v47 = vld [vmem:[#allocation2 + $0x238] sm:$0xff] }
 0x7cb   :  { %4502 = vmatpush1.bf16.msra.mxu1 %v4501_v20  ;;  %v2032_v15 = vld [vmem:[#allocation2 + $0x188] sm:$0xff]  ;;  %v4881_v24 = vpack.c.bf16 %v2000_v39, %v1997_v14  ;;  %v4517_v20 = vpack.c.bf16 %v2028_v61, %v2025_v55  ;;  %v4883_v59 = vpack.c.bf16 %v2054_v47, %v2051_v32  ;;  %v2003_v52 = vld [vmem:[#allocation2 + $0xa0] sm:$0xff]  ;;  %v2006_v37 = vld [vmem:[#allocation2 + $0xb8] sm:$0xff] }
 0x7cc   :  { %4504 = vmatprep.subr.bf16.mxu1 %v4503_v33  ;;  %4878 = vmatpush3.bf16.msra.mxu0 %v4877_v22  ;;  %v2031_v33 = vld [vmem:[#allocation2 + $0x180] sm:$0xff]  ;;  %v4519_v9 = vpack.c.bf16 %v2035_v21, %v2032_v15  ;;  %v2060_v0 = vld [vmem:[#allocation2 + $0x268] sm:$0xff]  ;;  %v2038_v34 = vld [vmem:[#allocation2 + $0x1b8] sm:$0xff]  ;;  %v4885_v35 = vpack.c.bf16 %v2006_v37, %v2003_v52 }
 0x7cd   :  { %4880 = vmatprep.subr.bf16.mxu0 %v4879_v7  ;;  %v2041_v5 = vld [vmem:[#allocation2 + $0x1d0] sm:$0xff]  ;;  %v2012_v63 = vld [vmem:[#allocation2 + $0xe8] sm:$0xff]  ;;  %v2066_v48 = vld [vmem:[#allocation2 + $0x298] sm:$0xff] }
 0x7ce   :  { %v2037_v42 = vld [vmem:[#allocation2 + $0x1b0] sm:$0xff]  ;;  %v4523_v19 = vpack.c.bf16 %v2041_v5, %v2038_v34  ;;  %v2040_v12 = vld [vmem:[#allocation2 + $0x1c8] sm:$0xff]  ;;  %v2047_v25 = vld [vmem:[#allocation2 + $0x200] sm:$0xff] }
 0x7cf   :  { %4506 = vmatpush1.bf16.msra.mxu1 %v4505_v31  ;;  %v2034_v31 = vld [vmem:[#allocation2 + $0x198] sm:$0xff]  ;;  %v2009_v58 = vld [vmem:[#allocation2 + $0xd0] sm:$0xff]  ;;  %v2044_v50 = vld [vmem:[#allocation2 + $0x1e8] sm:$0xff]  ;;  %v4525_v60 = vpack.c.bf16 %v2040_v12, %v2037_v42 }
 0x7d0   :  { %4508 = vmatprep.subr.bf16.mxu1 %v4507_v26  ;;  %v2057_v26 = vld [vmem:[#allocation2 + $0x250] sm:$0xff]  ;;  %4882 = vmatpush3.bf16.msra.mxu0 %v4881_v24  ;;  %v4521_v49 = vpack.c.bf16 %v2034_v31, %v2031_v33  ;;  %v4889_v8 = vpack.c.bf16 %v2012_v63, %v2009_v58  ;;  %v2043_v44 = vld [vmem:[#allocation2 + $0x1e0] sm:$0xff]  ;;  %v2018_v45 = vld [vmem:[#allocation2 + $0x118] sm:$0xff] }
 0x7d1   :  { %4884 = vmatprep.subr.bf16.mxu0 %v4883_v59  ;;  %v2015_v17 = vld [vmem:[#allocation2 + $0x100] sm:$0xff]  ;;  %v2046_v55 = vld [vmem:[#allocation2 + $0x1f8] sm:$0xff]  ;;  %v2069_v22 = vld [vmem:[#allocation2 + $0x2b0] sm:$0xff] }
 0x7d2   :  { %v2072_v28 = vld [vmem:[#allocation2 + $0x2c8] sm:$0xff]  ;;  %v2050_v38 = vld [vmem:[#allocation2 + $0x218] sm:$0xff]  ;;  %v4893_v61 = vpack.c.bf16 %v2018_v45, %v2015_v17  ;;  %v4529_v7 = vpack.c.bf16 %v2046_v55, %v2043_v44  ;;  %v2049_v14 = vld [vmem:[#allocation2 + $0x210] sm:$0xff] }
 0x7d3   :  { %4510 = vmatpush1.bf16.msra.mxu1 %v4509_v11  ;;  %v4887_v11 = vpack.c.bf16 %v2060_v0, %v2057_v26  ;;  %v4895_v39 = vpack.c.bf16 %v2072_v28, %v2069_v22  ;;  %v2021_v15 = vld [vmem:[#allocation2 + $0x130] sm:$0xff]  ;;  %v2024_v21 = vld [vmem:[#allocation2 + $0x148] sm:$0xff]  ;;  %v2075_v47 = vld [vmem:[#allocation2 + $0x2e0] sm:$0xff] }
 0x7d4   :  { %4512 = vmatprep.subr.bf16.mxu1 %v4511_v54  ;;  %v2063_v54 = vld [vmem:[#allocation2 + $0x280] sm:$0xff]  ;;  %4886 = vmatpush3.bf16.msra.mxu0 %v4885_v35  ;;  %v2052_v24 = vld [vmem:[#allocation2 + $0x228] sm:$0xff]  ;;  %v4897_v52 = vpack.c.bf16 %v2024_v21, %v2021_v15  ;;  %v2030_v0 = vld [vmem:[#allocation2 + $0x178] sm:$0xff] }
 0x7d5   :  { %4888 = vmatprep.subr.bf16.mxu0 %v4887_v11  ;;  %v4891_v30 = vpack.c.bf16 %v2066_v48, %v2063_v54  ;;  %v2056_v33 = vld [vmem:[#allocation2 + $0x248] sm:$0xff]  ;;  %v2059_v59 = vld [vmem:[#allocation2 + $0x260] sm:$0xff]  ;;  %v4533_v37 = vpack.c.bf16 %v2052_v24, %v2049_v14  ;;  %v2058_v5 = vld [vmem:[#allocation2 + $0x258] sm:$0xff] }
 0x7d6   :  { %v2027_v26 = vld [vmem:[#allocation2 + $0x160] sm:$0xff]  ;;  %v4535_v34 = vpack.c.bf16 %v2059_v59, %v2056_v33  ;;  %v2129_v35 = vld [vmem:[#allocation2 + $0x490] sm:$0xff]  ;;  %v2062_v42 = vld [vmem:[#allocation2 + $0x278] sm:$0xff] }
 0x7d7   :  { %4514 = vmatpush1.bf16.msra.mxu1 %v4513_v57  ;;  %v4527_v57 = vpack.c.bf16 %v2047_v25, %v2044_v50  ;;  %v2065_v11 = vld [vmem:[#allocation2 + $0x290] sm:$0xff]  ;;  %v4901_v58 = vpack.c.bf16 %v2030_v0, %v2027_v26  ;;  %v2084_v48 = vld [vmem:[#allocation2 + $0x328] sm:$0xff]  ;;  %v2087_v22 = vld [vmem:[#allocation2 + $0x340] sm:$0xff] }
 0x7d8   :  { %4516 = vmatprep.subr.bf16.mxu1 %v4515_v53  ;;  %v2053_v53 = vld [vmem:[#allocation2 + $0x230] sm:$0xff]  ;;  %4890 = vmatpush3.bf16.msra.mxu0 %v4889_v8  ;;  %v4539_v50 = vpack.c.bf16 %v2065_v11, %v2062_v42  ;;  %v2064_v25 = vld [vmem:[#allocation2 + $0x288] sm:$0xff]  ;;  %v2135_v8 = vld [vmem:[#allocation2 + $0x4c0] sm:$0xff] }
 0x7d9   :  { %4892 = vmatprep.subr.bf16.mxu0 %v4891_v30  ;;  %v4531_v32 = vpack.c.bf16 %v2053_v53, %v2050_v38  ;;  %v2081_v54 = vld [vmem:[#allocation2 + $0x310] sm:$0xff]  ;;  %v2068_v44 = vld [vmem:[#allocation2 + $0x2a8] sm:$0xff]  ;;  %v2071_v30 = vld [vmem:[#allocation2 + $0x2c0] sm:$0xff] }
 0x7da   :  { %v4905_v17 = vpack.c.bf16 %v2084_v48, %v2081_v54  ;;  %v2090_v28 = vld [vmem:[#allocation2 + $0x358] sm:$0xff]  ;;  %v4543_v38 = vpack.c.bf16 %v2071_v30, %v2068_v44  ;;  %v2076_v59 = vld [vmem:[#allocation2 + $0x2e8] sm:$0xff] }
 0x7db   :  { %4518 = vmatpush1.bf16.msra.mxu1 %v4517_v20  ;;  %v2078_v20 = vld [vmem:[#allocation2 + $0x2f8] sm:$0xff]  ;;  %v4909_v15 = vpack.c.bf16 %v2090_v28, %v2087_v22  ;;  %v2088_v30 = vld [vmem:[#allocation2 + $0x348] sm:$0xff] }
 0x7dc   :  { %4520 = vmatprep.subr.bf16.mxu1 %v4519_v9  ;;  %4894 = vmatpush3.bf16.msra.mxu0 %v4893_v61  ;;  %v2055_v9 = vld [vmem:[#allocation2 + $0x240] sm:$0xff]  ;;  %v4899_v31 = vpack.c.bf16 %v2078_v20, %v2075_v47  ;;  %v2070_v53 = vld [vmem:[#allocation2 + $0x2b8] sm:$0xff]  ;;  %v2141_v61 = vld [vmem:[#allocation2 + $0x4f0] sm:$0xff] }
 0x7dd   :  { %4896 = vmatprep.subr.bf16.mxu0 %v4895_v39  ;;  %v4537_v63 = vpack.c.bf16 %v2058_v5, %v2055_v9  ;;  %v2074_v14 = vld [vmem:[#allocation2 + $0x2d8] sm:$0xff]  ;;  %v2077_v39 = vld [vmem:[#allocation2 + $0x2f0] sm:$0xff]  ;;  %v2096_v20 = vld [vmem:[#allocation2 + $0x388] sm:$0xff] }
 0x7de   :  { %v2093_v47 = vld [vmem:[#allocation2 + $0x370] sm:$0xff]  ;;  %v4547_v33 = vpack.c.bf16 %v2077_v39, %v2074_v14  ;;  %v2080_v9 = vld [vmem:[#allocation2 + $0x308] sm:$0xff]  ;;  %v2082_v11 = vld [vmem:[#allocation2 + $0x318] sm:$0xff] }
 0x7df   :  { %4522 = vmatpush1.bf16.msra.mxu1 %v4521_v49  ;;  %v2132_v49 = vld [vmem:[#allocation2 + $0x4a8] sm:$0xff]  ;;  %v4913_v26 = vpack.c.bf16 %v2096_v20, %v2093_v47  ;;  %v2094_v39 = vld [vmem:[#allocation2 + $0x378] sm:$0xff]  ;;  %v2097_v20 = vld [vmem:[#allocation2 + $0x390] sm:$0xff] }
 0x7e0   :  { %4524 = vmatprep.subr.bf16.mxu1 %v4523_v19  ;;  %4898 = vmatpush3.bf16.msra.mxu0 %v4897_v52  ;;  %v2061_v19 = vld [vmem:[#allocation2 + $0x270] sm:$0xff]  ;;  %v4903_v12 = vpack.c.bf16 %v2132_v49, %v2129_v35  ;;  %v2147_v52 = vld [vmem:[#allocation2 + $0x520] sm:$0xff]  ;;  %v2102_v49 = vld [vmem:[#allocation2 + $0x3b8] sm:$0xff] }
 0x7e1   :  { %4900 = vmatprep.subr.bf16.mxu0 %v4899_v31  ;;  %v4541_v45 = vpack.c.bf16 %v2064_v25, %v2061_v19  ;;  %v2083_v31 = vld [vmem:[#allocation2 + $0x320] sm:$0xff]  ;;  %v2086_v19 = vld [vmem:[#allocation2 + $0x338] sm:$0xff] }
 0x7e2   :  { %v2099_v35 = vld [vmem:[#allocation2 + $0x3a0] sm:$0xff]  ;;  %v4551_v42 = vpack.c.bf16 %v2083_v31, %v2080_v9  ;;  %v2100_v9 = vld [vmem:[#allocation2 + $0x3a8] sm:$0xff] }
 0x7e3   :  { %4526 = vmatpush1.bf16.msra.mxu1 %v4525_v60  ;;  %v2138_v60 = vld [vmem:[#allocation2 + $0x4d8] sm:$0xff]  ;;  %v4917_v54 = vpack.c.bf16 %v2102_v49, %v2099_v35  ;;  %v2171_v31 = vld [vmem:[#allocation2 + $0x5e0] sm:$0xff] }
 0x7e4   :  { %4528 = vmatprep.subr.bf16.mxu1 %v4527_v57  ;;  %4902 = vmatpush3.bf16.msra.mxu0 %v4901_v58  ;;  %v2067_v57 = vld [vmem:[#allocation2 + $0x2a0] sm:$0xff]  ;;  %v4907_v55 = vpack.c.bf16 %v2138_v60, %v2135_v8  ;;  %v2153_v58 = vld [vmem:[#allocation2 + $0x550] sm:$0xff]  ;;  %v2108_v60 = vld [vmem:[#allocation2 + $0x3e8] sm:$0xff] }
 0x7e5   :  { %4904 = vmatprep.subr.bf16.mxu0 %v4903_v12  ;;  %v4545_v21 = vpack.c.bf16 %v2070_v53, %v2067_v57  ;;  %v2089_v12 = vld [vmem:[#allocation2 + $0x350] sm:$0xff]  ;;  %v2092_v57 = vld [vmem:[#allocation2 + $0x368] sm:$0xff]  ;;  %v2103_v35 = vld [vmem:[#allocation2 + $0x3c0] sm:$0xff] }
 0x7e6   :  { %v2105_v8 = vld [vmem:[#allocation2 + $0x3d0] sm:$0xff]  ;;  %v4555_v44 = vpack.c.bf16 %v2089_v12, %v2086_v19  ;;  %v2228_v12 = vld [vmem:[#allocation2 + $0x7a8] sm:$0xff] }
 0x7e7   :  { %4530 = vmatpush1.bf16.msra.mxu1 %v4529_v7  ;;  %v2144_v7 = vld [vmem:[#allocation2 + $0x508] sm:$0xff]  ;;  %3062 = vmatmul.mubr.f32.vlgmr.msra.gmra.mrb[30].mxu0 %v6841_v43  ;;  %v4921_v22 = vpack.c.bf16 %v2108_v60, %v2105_v8  ;;  %v2225_v19 = vld [vmem:[#allocation2 + $0x790] sm:$0xff] }
 0x7e8   :  { %4532 = vmatprep.subr.bf16.mxu1 %v4531_v32  ;;  %4906 = vmatpush3.bf16.msra.mxu0 %v4905_v17  ;;  %v2073_v32 = vld [vmem:[#allocation2 + $0x2d0] sm:$0xff]  ;;  %v4911_v24 = vpack.c.bf16 %v2144_v7, %v2141_v61  ;;  %v2159_v17 = vld [vmem:[#allocation2 + $0x580] sm:$0xff]  ;;  %v2114_v7 = vld [vmem:[#allocation2 + $0x418] sm:$0xff]  ;;  %v4935_v60 = vpack.c.bf16 %v2228_v12, %v2225_v19 }
 0x7e9   :  { %3131 = vmatprep.mubr.f32.mxu0 %v6765_v46  ;;  %4908 = vmatprep.subr.bf16.mxu0 %v4907_v55  ;;  %v4549_v0 = vpack.c.bf16 %v2076_v59, %v2073_v32  ;;  %v2095_v55 = vld [vmem:[#allocation2 + $0x380] sm:$0xff]  ;;  %v2098_v32 = vld [vmem:[#allocation2 + $0x398] sm:$0xff]  ;;  %v2117_v59 = vld [vmem:[#allocation2 + $0x430] sm:$0xff] }
 0x7ea   :  { %v2111_v61 = vld [vmem:[#allocation2 + $0x400] sm:$0xff]  ;;  %v4559_v14 = vpack.c.bf16 %v2095_v55, %v2092_v57  ;;  %v2109_v8 = vld [vmem:[#allocation2 + $0x3f0] sm:$0xff]  ;;  %v2234_v55 = vld [vmem:[#allocation2 + $0x7d8] sm:$0xff] }
 0x7eb   :  { %4534 = vmatpush1.bf16.msra.mxu1 %v4533_v37  ;;  %v2150_v37 = vld [vmem:[#allocation2 + $0x538] sm:$0xff]  ;;  %v2231_v57 = vld [vmem:[#allocation2 + $0x7c0] sm:$0xff] }
 0x7ec   :  { %4536 = vmatprep.subr.bf16.mxu1 %v4535_v34  ;;  %4910 = vmatpush3.bf16.msra.mxu0 %v4909_v15  ;;  %v2079_v34 = vld [vmem:[#allocation2 + $0x300] sm:$0xff]  ;;  %v4915_v5 = vpack.c.bf16 %v2150_v37, %v2147_v52  ;;  %v2165_v15 = vld [vmem:[#allocation2 + $0x5b0] sm:$0xff]  ;;  %v2120_v52 = vld [vmem:[#allocation2 + $0x448] sm:$0xff] }
 0x7ed   :  { %4912 = vmatprep.subr.bf16.mxu0 %v4911_v24  ;;  %v4553_v48 = vpack.c.bf16 %v2082_v11, %v2079_v34  ;;  %v2101_v24 = vld [vmem:[#allocation2 + $0x3b0] sm:$0xff]  ;;  %v2107_v34 = vld [vmem:[#allocation2 + $0x3e0] sm:$0xff]  ;;  %v2126_v11 = vld [vmem:[#allocation2 + $0x478] sm:$0xff] }
 0x7ee   :  { %v4563_v37 = vpack.c.bf16 %v2101_v24, %v2098_v32  ;;  %v2237_v32 = vld [vmem:[#allocation2 + $0x7f0] sm:$0xff]  ;;  %v2240_v24 = vld [vmem:[#allocation2 + $0x808] sm:$0xff]  ;;  %v2130_v12 = vld [vmem:[#allocation2 + $0x498] sm:$0xff] }
 0x7ef   :  { %4538 = vmatpush1.bf16.msra.mxu1 %v4537_v63  ;;  %v2156_v63 = vld [vmem:[#allocation2 + $0x568] sm:$0xff] }
 0x7f0   :  { %4540 = vmatprep.subr.bf16.mxu1 %v4539_v50  ;;  %4914 = vmatpush3.bf16.msra.mxu0 %v4913_v26  ;;  %v2085_v50 = vld [vmem:[#allocation2 + $0x330] sm:$0xff]  ;;  %v4919_v25 = vpack.c.bf16 %v2156_v63, %v2153_v58  ;;  %v2174_v26 = vld [vmem:[#allocation2 + $0x5f8] sm:$0xff] }
 0x7f1   :  { %4916 = vmatprep.subr.bf16.mxu0 %v4915_v5  ;;  %v4557_v28 = vpack.c.bf16 %v2088_v30, %v2085_v50  ;;  %v4565_v5 = vpack.c.bf16 %v2100_v9, %v2097_v20  ;;  %v4931_v49 = vpack.c.bf16 %v2174_v26, %v2171_v31  ;;  %v2106_v63 = vld [vmem:[#allocation2 + $0x3d8] sm:$0xff]  ;;  %v2180_v30 = vld [vmem:[#allocation2 + $0x628] sm:$0xff] }
 0x7f2   :  { %v2192_v9 = vld [vmem:[#allocation2 + $0x688] sm:$0xff] }
 0x7f3   :  { %4542 = vmatpush1.bf16.msra.mxu1 %v4541_v45  ;;  %v2162_v45 = vld [vmem:[#allocation2 + $0x598] sm:$0xff]  ;;  %v2124_v26 = vld [vmem:[#allocation2 + $0x468] sm:$0xff] }
 0x7f4   :  { %4544 = vmatprep.subr.bf16.mxu1 %v4543_v38  ;;  %4918 = vmatpush3.bf16.msra.mxu0 %v4917_v54  ;;  %v2091_v38 = vld [vmem:[#allocation2 + $0x360] sm:$0xff]  ;;  %v4923_v53 = vpack.c.bf16 %v2162_v45, %v2159_v17  ;;  %v2110_v54 = vld [vmem:[#allocation2 + $0x3f8] sm:$0xff]  ;;  %v2112_v45 = vld [vmem:[#allocation2 + $0x408] sm:$0xff] }
 0x7f5   :  { %4920 = vmatprep.subr.bf16.mxu0 %v4919_v25  ;;  %v4561_v47 = vpack.c.bf16 %v2094_v39, %v2091_v38  ;;  %v4569_v25 = vpack.c.bf16 %v2106_v63, %v2103_v35  ;;  %v2186_v39 = vld [vmem:[#allocation2 + $0x658] sm:$0xff] }
 0x7f6   :  { %v2198_v63 = vld [vmem:[#allocation2 + $0x6b8] sm:$0xff] }
 0x7f7   :  { %4546 = vmatpush1.bf16.msra.mxu1 %v4545_v21  ;;  %v2168_v21 = vld [vmem:[#allocation2 + $0x5c8] sm:$0xff] }
 0x7f8   :  { %4548 = vmatprep.subr.bf16.mxu1 %v4547_v33  ;;  %4922 = vmatpush3.bf16.msra.mxu0 %v4921_v22  ;;  %v4927_v33 = vpack.c.bf16 %v2168_v21, %v2165_v15  ;;  %v2116_v22 = vld [vmem:[#allocation2 + $0x428] sm:$0xff]  ;;  %v2118_v21 = vld [vmem:[#allocation2 + $0x438] sm:$0xff] }
 0x7f9   :  { %4924 = vmatprep.subr.bf16.mxu0 %v4923_v53  ;;  %v4573_v53 = vpack.c.bf16 %v2112_v45, %v2109_v8  ;;  %v2204_v45 = vld [vmem:[#allocation2 + $0x6e8] sm:$0xff] }
 0x7fb   :  { %4550 = vmatpush1.bf16.msra.mxu1 %v4549_v0  ;;  %v2104_v0 = vld [vmem:[#allocation2 + $0x3c8] sm:$0xff] }
 0x7fc   :  { %4552 = vmatprep.subr.bf16.mxu1 %v4551_v42  ;;  %v2123_v42 = vld [vmem:[#allocation2 + $0x460] sm:$0xff]  ;;  %v4567_v58 = vpack.c.bf16 %v2107_v34, %v2104_v0  ;;  %v2246_v34 = vld [vmem:[#allocation2 + $0x838] sm:$0xff] }
 0x7fd   :  { %v4933_v50 = vpack.c.bf16 %v2126_v11, %v2123_v42  ;;  %v2243_v0 = vld [vmem:[#allocation2 + $0x820] sm:$0xff] }
 0x7fe   :  { %2636 = vmatmul.mubr.f32.vlgmr.msra.gmra.mrb[12].mxu1 %v6841_v43  ;;  %v4925_v43 = vpack.c.bf16 %v2114_v7, %v2111_v61  ;;  %v2115_v61 = vld [vmem:[#allocation2 + $0x420] sm:$0xff]  ;;  %v4939_v7 = vpack.c.bf16 %v2234_v55, %v2231_v57  ;;  %v4947_v11 = vpack.c.bf16 %v2246_v34, %v2243_v0  ;;  %v2136_v55 = vld [vmem:[#allocation2 + $0x4c8] sm:$0xff] }
 0x7ff   :  { %4554 = vmatpush1.bf16.msra.mxu1 %v4553_v48  ;;  %2706 = vmatprep.mubr.f32.mxu1 %v6765_v46  ;;  %v4929_v46 = vpack.c.bf16 %v2120_v52, %v2117_v59  ;;  %v2113_v48 = vld [vmem:[#allocation2 + $0x410] sm:$0xff]  ;;  %v4943_v52 = vpack.c.bf16 %v2240_v24, %v2237_v32  ;;  %v2127_v42 = vld [vmem:[#allocation2 + $0x480] sm:$0xff]  ;;  %v2142_v24 = vld [vmem:[#allocation2 + $0x4f8] sm:$0xff] }
 0x800   :  { %4556 = vmatprep.subr.bf16.mxu1 %v4555_v44  ;;  %4926 = vmatpush3.bf16.msra.mxu0 %v4925_v43  ;;  %v2177_v44 = vld [vmem:[#allocation2 + $0x610] sm:$0xff]  ;;  %v4571_v17 = vpack.c.bf16 %v2113_v48, %v2110_v54  ;;  %v2122_v43 = vld [vmem:[#allocation2 + $0x458] sm:$0xff]  ;;  %v2252_v48 = vld [vmem:[#allocation2 + $0x868] sm:$0xff] }
 0x801   :  { %4928 = vmatprep.subr.bf16.mxu0 %v4927_v33  ;;  %v4937_v38 = vpack.c.bf16 %v2180_v30, %v2177_v44  ;;  %v4577_v33 = vpack.c.bf16 %v2118_v21, %v2115_v61  ;;  %v2121_v59 = vld [vmem:[#allocation2 + $0x450] sm:$0xff]  ;;  %v2210_v21 = vld [vmem:[#allocation2 + $0x718] sm:$0xff]  ;;  %v2148_v34 = vld [vmem:[#allocation2 + $0x528] sm:$0xff] }
 0x802   :  { %v2249_v54 = vld [vmem:[#allocation2 + $0x850] sm:$0xff] }
 0x803   :  { %4558 = vmatpush1.bf16.msra.mxu1 %v4557_v28  ;;  %v2119_v28 = vld [vmem:[#allocation2 + $0x440] sm:$0xff]  ;;  %v2133_v44 = vld [vmem:[#allocation2 + $0x4b0] sm:$0xff]  ;;  %v4951_v30 = vpack.c.bf16 %v2252_v48, %v2249_v54  ;;  %v2154_v48 = vld [vmem:[#allocation2 + $0x558] sm:$0xff] }
 0x804   :  { %4560 = vmatprep.subr.bf16.mxu1 %v4559_v14  ;;  %4930 = vmatpush3.bf16.msra.mxu0 %v4929_v46  ;;  %v2183_v14 = vld [vmem:[#allocation2 + $0x640] sm:$0xff]  ;;  %v4575_v15 = vpack.c.bf16 %v2119_v28, %v2116_v22  ;;  %v2128_v46 = vld [vmem:[#allocation2 + $0x488] sm:$0xff]  ;;  %v2258_v28 = vld [vmem:[#allocation2 + $0x898] sm:$0xff] }
 0x805   :  { %4932 = vmatprep.subr.bf16.mxu0 %v4931_v49  ;;  %v4941_v20 = vpack.c.bf16 %v2186_v39, %v2183_v14  ;;  %v4581_v49 = vpack.c.bf16 %v2124_v26, %v2121_v59  ;;  %v2255_v22 = vld [vmem:[#allocation2 + $0x880] sm:$0xff]  ;;  %v2216_v26 = vld [vmem:[#allocation2 + $0x748] sm:$0xff] }
 0x806   :  { %v2139_v14 = vld [vmem:[#allocation2 + $0x4e0] sm:$0xff]  ;;  %v4955_v39 = vpack.c.bf16 %v2258_v28, %v2255_v22  ;;  %v2160_v28 = vld [vmem:[#allocation2 + $0x588] sm:$0xff] }
 0x807   :  { %4562 = vmatpush1.bf16.msra.mxu1 %v4561_v47  ;;  %v2125_v47 = vld [vmem:[#allocation2 + $0x470] sm:$0xff] }
 0x808   :  { %4564 = vmatprep.subr.bf16.mxu1 %v4563_v37  ;;  %4934 = vmatpush3.bf16.msra.mxu0 %v4933_v50  ;;  %v2189_v37 = vld [vmem:[#allocation2 + $0x670] sm:$0xff]  ;;  %v4579_v31 = vpack.c.bf16 %v2125_v47, %v2122_v43  ;;  %v2134_v50 = vld [vmem:[#allocation2 + $0x4b8] sm:$0xff]  ;;  %v2264_v47 = vld [vmem:[#allocation2 + $0x8c8] sm:$0xff] }
 0x809   :  { %4936 = vmatprep.subr.bf16.mxu0 %v4935_v60  ;;  %v4945_v35 = vpack.c.bf16 %v2192_v9, %v2189_v37  ;;  %v4585_v60 = vpack.c.bf16 %v2130_v12, %v2127_v42  ;;  %v2261_v43 = vld [vmem:[#allocation2 + $0x8b0] sm:$0xff]  ;;  %v2222_v12 = vld [vmem:[#allocation2 + $0x778] sm:$0xff] }
 0x80a   :  { %v2145_v37 = vld [vmem:[#allocation2 + $0x510] sm:$0xff]  ;;  %v4959_v9 = vpack.c.bf16 %v2264_v47, %v2261_v43  ;;  %v2166_v47 = vld [vmem:[#allocation2 + $0x5b8] sm:$0xff] }
 0x80b   :  { %4566 = vmatpush1.bf16.msra.mxu1 %v4565_v5  ;;  %3132 = vmatmul.mubr.f32.vlgmr.msra.gmra.mrb[32].mxu0 %v6843_v36  ;;  %v2131_v5 = vld [vmem:[#allocation2 + $0x4a0] sm:$0xff] }
 0x80c   :  { %4568 = vmatprep.subr.bf16.mxu1 %v4567_v58  ;;  %4938 = vmatpush3.bf16.msra.mxu0 %v4937_v38  ;;  %v2195_v58 = vld [vmem:[#allocation2 + $0x6a0] sm:$0xff]  ;;  %v4583_v19 = vpack.c.bf16 %v2131_v5, %v2128_v46  ;;  %v2140_v38 = vld [vmem:[#allocation2 + $0x4e8] sm:$0xff]  ;;  %v2270_v5 = vld [vmem:[#allocation2 + $0x8f8] sm:$0xff] }
 0x80d   :  { %3201 = vmatprep.mubr.f32.mxu0 %v6801_v16  ;;  %4940 = vmatprep.subr.bf16.mxu0 %v4939_v7  ;;  %v4949_v8 = vpack.c.bf16 %v2198_v63, %v2195_v58  ;;  %v4589_v7 = vpack.c.bf16 %v2136_v55, %v2133_v44  ;;  %v2267_v46 = vld [vmem:[#allocation2 + $0x8e0] sm:$0xff]  ;;  %v2276_v55 = vld [vmem:[#allocation2 + $0x928] sm:$0xff] }
 0x80e   :  { %v2151_v58 = vld [vmem:[#allocation2 + $0x540] sm:$0xff]  ;;  %v4963_v63 = vpack.c.bf16 %v2270_v5, %v2267_v46  ;;  %v2172_v5 = vld [vmem:[#allocation2 + $0x5e8] sm:$0xff] }
 0x80f   :  { %4570 = vmatpush1.bf16.msra.mxu1 %v4569_v25  ;;  %v2137_v25 = vld [vmem:[#allocation2 + $0x4d0] sm:$0xff] }
 0x810   :  { %4572 = vmatprep.subr.bf16.mxu1 %v4571_v17  ;;  %4942 = vmatpush3.bf16.msra.mxu0 %v4941_v20  ;;  %v2201_v17 = vld [vmem:[#allocation2 + $0x6d0] sm:$0xff]  ;;  %v4587_v57 = vpack.c.bf16 %v2137_v25, %v2134_v50  ;;  %v2146_v20 = vld [vmem:[#allocation2 + $0x518] sm:$0xff]  ;;  %v2324_v25 = vld [vmem:[#allocation2 + $0xaa8] sm:$0xff] }
 0x811   :  { %4944 = vmatprep.subr.bf16.mxu0 %v4943_v52  ;;  %v4953_v61 = vpack.c.bf16 %v2204_v45, %v2201_v17  ;;  %v4593_v52 = vpack.c.bf16 %v2142_v24, %v2139_v14  ;;  %v2321_v50 = vld [vmem:[#allocation2 + $0xa90] sm:$0xff]  ;;  %v2282_v24 = vld [vmem:[#allocation2 + $0x958] sm:$0xff] }
 0x812   :  { %v2157_v17 = vld [vmem:[#allocation2 + $0x570] sm:$0xff]  ;;  %v4967_v45 = vpack.c.bf16 %v2324_v25, %v2321_v50  ;;  %v2178_v25 = vld [vmem:[#allocation2 + $0x618] sm:$0xff] }
 0x813   :  { %4574 = vmatpush1.bf16.msra.mxu1 %v4573_v53  ;;  %v2143_v53 = vld [vmem:[#allocation2 + $0x500] sm:$0xff] }
 0x814   :  { %4576 = vmatprep.subr.bf16.mxu1 %v4575_v15  ;;  %4946 = vmatpush3.bf16.msra.mxu0 %v4945_v35  ;;  %v2207_v15 = vld [vmem:[#allocation2 + $0x700] sm:$0xff]  ;;  %v4591_v32 = vpack.c.bf16 %v2143_v53, %v2140_v38  ;;  %v2152_v35 = vld [vmem:[#allocation2 + $0x548] sm:$0xff]  ;;  %v2330_v53 = vld [vmem:[#allocation2 + $0xad8] sm:$0xff] }
 0x815   :  { %4948 = vmatprep.subr.bf16.mxu0 %v4947_v11  ;;  %v4957_v59 = vpack.c.bf16 %v2210_v21, %v2207_v15  ;;  %v4597_v11 = vpack.c.bf16 %v2148_v34, %v2145_v37  ;;  %v2327_v38 = vld [vmem:[#allocation2 + $0xac0] sm:$0xff]  ;;  %v2288_v34 = vld [vmem:[#allocation2 + $0x988] sm:$0xff] }
 0x816   :  { %v2163_v15 = vld [vmem:[#allocation2 + $0x5a0] sm:$0xff]  ;;  %v4971_v21 = vpack.c.bf16 %v2330_v53, %v2327_v38  ;;  %v2184_v53 = vld [vmem:[#allocation2 + $0x648] sm:$0xff] }
 0x817   :  { %4578 = vmatpush1.bf16.msra.mxu1 %v4577_v33  ;;  %v2149_v33 = vld [vmem:[#allocation2 + $0x530] sm:$0xff] }
 0x818   :  { %4580 = vmatprep.subr.bf16.mxu1 %v4579_v31  ;;  %4950 = vmatpush3.bf16.msra.mxu0 %v4949_v8  ;;  %v2213_v31 = vld [vmem:[#allocation2 + $0x730] sm:$0xff]  ;;  %v4595_v0 = vpack.c.bf16 %v2149_v33, %v2146_v20  ;;  %v2158_v8 = vld [vmem:[#allocation2 + $0x578] sm:$0xff]  ;;  %v2336_v33 = vld [vmem:[#allocation2 + $0xb08] sm:$0xff] }
 0x819   :  { %4952 = vmatprep.subr.bf16.mxu0 %v4951_v30  ;;  %v4961_v42 = vpack.c.bf16 %v2216_v26, %v2213_v31  ;;  %v4601_v30 = vpack.c.bf16 %v2154_v48, %v2151_v58  ;;  %v2333_v20 = vld [vmem:[#allocation2 + $0xaf0] sm:$0xff]  ;;  %v2294_v48 = vld [vmem:[#allocation2 + $0x9b8] sm:$0xff] }
 0x81a   :  { %v2169_v31 = vld [vmem:[#allocation2 + $0x5d0] sm:$0xff]  ;;  %v4975_v26 = vpack.c.bf16 %v2336_v33, %v2333_v20  ;;  %v2190_v33 = vld [vmem:[#allocation2 + $0x678] sm:$0xff] }
 0x81b   :  { %4582 = vmatpush1.bf16.msra.mxu1 %v4581_v49  ;;  %v2155_v49 = vld [vmem:[#allocation2 + $0x560] sm:$0xff] }
 0x81c   :  { %4584 = vmatprep.subr.bf16.mxu1 %v4583_v19  ;;  %4954 = vmatpush3.bf16.msra.mxu0 %v4953_v61  ;;  %v2219_v19 = vld [vmem:[#allocation2 + $0x760] sm:$0xff]  ;;  %v4599_v54 = vpack.c.bf16 %v2155_v49, %v2152_v35  ;;  %v2164_v61 = vld [vmem:[#allocation2 + $0x5a8] sm:$0xff]  ;;  %v2342_v49 = vld [vmem:[#allocation2 + $0xb38] sm:$0xff] }
 0x81d   :  { %4956 = vmatprep.subr.bf16.mxu0 %v4955_v39  ;;  %v4965_v44 = vpack.c.bf16 %v2222_v12, %v2219_v19  ;;  %v4605_v39 = vpack.c.bf16 %v2160_v28, %v2157_v17  ;;  %v2339_v35 = vld [vmem:[#allocation2 + $0xb20] sm:$0xff]  ;;  %v2300_v28 = vld [vmem:[#allocation2 + $0x9e8] sm:$0xff] }
 0x81e   :  { %v2175_v19 = vld [vmem:[#allocation2 + $0x600] sm:$0xff]  ;;  %v4979_v12 = vpack.c.bf16 %v2342_v49, %v2339_v35  ;;  %v2196_v35 = vld [vmem:[#allocation2 + $0x6a8] sm:$0xff] }
 0x81f   :  { %4586 = vmatpush1.bf16.msra.mxu1 %v4585_v60  ;;  %v2161_v60 = vld [vmem:[#allocation2 + $0x590] sm:$0xff]  ;;  %v2363_v49 = vld [vmem:[#allocation2 + $0xbe0] sm:$0xff] }
 0x820   :  { %4588 = vmatprep.subr.bf16.mxu1 %v4587_v57  ;;  %4958 = vmatpush3.bf16.msra.mxu0 %v4957_v59  ;;  %v2273_v57 = vld [vmem:[#allocation2 + $0x910] sm:$0xff]  ;;  %v4603_v22 = vpack.c.bf16 %v2161_v60, %v2158_v8  ;;  %v2170_v59 = vld [vmem:[#allocation2 + $0x5d8] sm:$0xff]  ;;  %v2348_v60 = vld [vmem:[#allocation2 + $0xb68] sm:$0xff] }
 0x821   :  { %4960 = vmatprep.subr.bf16.mxu0 %v4959_v9  ;;  %v4969_v14 = vpack.c.bf16 %v2276_v55, %v2273_v57  ;;  %v4609_v9 = vpack.c.bf16 %v2166_v47, %v2163_v15  ;;  %v2345_v8 = vld [vmem:[#allocation2 + $0xb50] sm:$0xff]  ;;  %v2306_v47 = vld [vmem:[#allocation2 + $0xa18] sm:$0xff] }
 0x822   :  { %v2181_v57 = vld [vmem:[#allocation2 + $0x630] sm:$0xff]  ;;  %v4983_v55 = vpack.c.bf16 %v2348_v60, %v2345_v8  ;;  %v2420_v60 = vld [vmem:[#allocation2 + $0xda8] sm:$0xff] }
 0x823   :  { %4590 = vmatpush1.bf16.msra.mxu1 %v4589_v7  ;;  %v2167_v7 = vld [vmem:[#allocation2 + $0x5c0] sm:$0xff]  ;;  %v2417_v8 = vld [vmem:[#allocation2 + $0xd90] sm:$0xff] }
 0x824   :  { %4592 = vmatprep.subr.bf16.mxu1 %v4591_v32  ;;  %4962 = vmatpush3.bf16.msra.mxu0 %v4961_v42  ;;  %v2279_v32 = vld [vmem:[#allocation2 + $0x940] sm:$0xff]  ;;  %v4607_v43 = vpack.c.bf16 %v2167_v7, %v2164_v61  ;;  %v2176_v42 = vld [vmem:[#allocation2 + $0x608] sm:$0xff]  ;;  %v2354_v7 = vld [vmem:[#allocation2 + $0xb98] sm:$0xff] }
 0x825   :  { %4964 = vmatprep.subr.bf16.mxu0 %v4963_v63  ;;  %v4973_v37 = vpack.c.bf16 %v2282_v24, %v2279_v32  ;;  %v4613_v63 = vpack.c.bf16 %v2172_v5, %v2169_v31  ;;  %v2351_v61 = vld [vmem:[#allocation2 + $0xb80] sm:$0xff] }
 0x826   :  { %v2187_v32 = vld [vmem:[#allocation2 + $0x660] sm:$0xff]  ;;  %v4987_v24 = vpack.c.bf16 %v2354_v7, %v2351_v61  ;;  %v2426_v7 = vld [vmem:[#allocation2 + $0xdd8] sm:$0xff] }
 0x827   :  { %4594 = vmatpush1.bf16.msra.mxu1 %v4593_v52  ;;  %v2173_v52 = vld [vmem:[#allocation2 + $0x5f0] sm:$0xff]  ;;  %v4625_v31 = vpack.c.bf16 %v2190_v33, %v2187_v32  ;;  %v2423_v61 = vld [vmem:[#allocation2 + $0xdc0] sm:$0xff]  ;;  %v2214_v33 = vld [vmem:[#allocation2 + $0x738] sm:$0xff] }
 0x828   :  { %4596 = vmatprep.subr.bf16.mxu1 %v4595_v0  ;;  %4966 = vmatpush3.bf16.msra.mxu0 %v4965_v44  ;;  %v2285_v0 = vld [vmem:[#allocation2 + $0x970] sm:$0xff]  ;;  %v4611_v46 = vpack.c.bf16 %v2173_v52, %v2170_v59  ;;  %v2182_v44 = vld [vmem:[#allocation2 + $0x638] sm:$0xff]  ;;  %v2360_v52 = vld [vmem:[#allocation2 + $0xbc8] sm:$0xff] }
 0x829   :  { %4968 = vmatprep.subr.bf16.mxu0 %v4967_v45  ;;  %v4977_v58 = vpack.c.bf16 %v2288_v34, %v2285_v0  ;;  %v4617_v45 = vpack.c.bf16 %v2178_v25, %v2175_v19  ;;  %v2357_v59 = vld [vmem:[#allocation2 + $0xbb0] sm:$0xff]  ;;  %v2199_v19 = vld [vmem:[#allocation2 + $0x6c0] sm:$0xff]  ;;  %v2202_v25 = vld [vmem:[#allocation2 + $0x6d8] sm:$0xff] }
 0x82a   :  { %v4991_v0 = vpack.c.bf16 %v2360_v52, %v2357_v59  ;;  %v2309_v34 = vld [vmem:[#allocation2 + $0xa30] sm:$0xff]  ;;  %v2211_v32 = vld [vmem:[#allocation2 + $0x720] sm:$0xff]  ;;  %v2432_v52 = vld [vmem:[#allocation2 + $0xe08] sm:$0xff] }
 0x82b   :  { %4598 = vmatpush1.bf16.msra.mxu1 %v4597_v11  ;;  %3202 = vmatmul.mubr.f32.vlgmr.msra.gmra.mrb[34].mxu0 %v6799_v13  ;;  %v2179_v11 = vld [vmem:[#allocation2 + $0x620] sm:$0xff]  ;;  %v2429_v59 = vld [vmem:[#allocation2 + $0xdf0] sm:$0xff] }
 0x82c   :  { %4600 = vmatprep.subr.bf16.mxu1 %v4599_v54  ;;  %4970 = vmatpush3.bf16.msra.mxu0 %v4969_v14  ;;  %v2291_v54 = vld [vmem:[#allocation2 + $0x9a0] sm:$0xff]  ;;  %v4615_v50 = vpack.c.bf16 %v2179_v11, %v2176_v42  ;;  %v2188_v14 = vld [vmem:[#allocation2 + $0x668] sm:$0xff]  ;;  %v2366_v42 = vld [vmem:[#allocation2 + $0xbf8] sm:$0xff] }
 0x82d   :  { %3271 = vmatprep.mubr.f32.mxu0 %v6853_v56  ;;  %4972 = vmatprep.subr.bf16.mxu0 %v4971_v21  ;;  %v4981_v17 = vpack.c.bf16 %v2294_v48, %v2291_v54  ;;  %v4621_v21 = vpack.c.bf16 %v2184_v53, %v2181_v57  ;;  %v2200_v11 = vld [vmem:[#allocation2 + $0x6c8] sm:$0xff]  ;;  %v2315_v54 = vld [vmem:[#allocation2 + $0xa60] sm:$0xff]  ;;  %v2318_v48 = vld [vmem:[#allocation2 + $0xa78] sm:$0xff] }
 0x82e   :  { %v2205_v57 = vld [vmem:[#allocation2 + $0x6f0] sm:$0xff]  ;;  %v2208_v53 = vld [vmem:[#allocation2 + $0x708] sm:$0xff] }
 0x82f   :  { %4602 = vmatpush1.bf16.msra.mxu1 %v4601_v30  ;;  %v2185_v30 = vld [vmem:[#allocation2 + $0x650] sm:$0xff] }
 0x830   :  { %4604 = vmatprep.subr.bf16.mxu1 %v4603_v22  ;;  %4974 = vmatpush3.bf16.msra.mxu0 %v4973_v37  ;;  %v2297_v22 = vld [vmem:[#allocation2 + $0x9d0] sm:$0xff]  ;;  %v4619_v38 = vpack.c.bf16 %v2185_v30, %v2182_v44  ;;  %v2194_v37 = vld [vmem:[#allocation2 + $0x698] sm:$0xff] }
 0x831   :  { %4976 = vmatprep.subr.bf16.mxu0 %v4975_v26  ;;  %v4985_v15 = vpack.c.bf16 %v2300_v28, %v2297_v22  ;;  %v2193_v26 = vld [vmem:[#allocation2 + $0x690] sm:$0xff]  ;;  %v2206_v44 = vld [vmem:[#allocation2 + $0x6f8] sm:$0xff]  ;;  %v2372_v28 = vld [vmem:[#allocation2 + $0xc28] sm:$0xff] }
 0x832   :  { %v2209_v30 = vld [vmem:[#allocation2 + $0x710] sm:$0xff] }
 0x833   :  { %4606 = vmatpush1.bf16.msra.mxu1 %v4605_v39  ;;  %v2191_v39 = vld [vmem:[#allocation2 + $0x680] sm:$0xff]  ;;  %v2369_v22 = vld [vmem:[#allocation2 + $0xc10] sm:$0xff] }
 0x834   :  { %4608 = vmatprep.subr.bf16.mxu1 %v4607_v43  ;;  %4978 = vmatpush3.bf16.msra.mxu0 %v4977_v58  ;;  %v2303_v43 = vld [vmem:[#allocation2 + $0xa00] sm:$0xff]  ;;  %v4623_v20 = vpack.c.bf16 %v2191_v39, %v2188_v14  ;;  %v2212_v14 = vld [vmem:[#allocation2 + $0x728] sm:$0xff] }
 0x835   :  { %4980 = vmatprep.subr.bf16.mxu0 %v4979_v12  ;;  %v2203_v58 = vld [vmem:[#allocation2 + $0x6e0] sm:$0xff]  ;;  %v4995_v12 = vpack.c.bf16 %v2366_v42, %v2363_v49  ;;  %v2438_v42 = vld [vmem:[#allocation2 + $0xe38] sm:$0xff] }
 0x836   :  { %v2215_v39 = vld [vmem:[#allocation2 + $0x740] sm:$0xff] }
 0x837   :  { %4610 = vmatpush1.bf16.msra.mxu1 %v4609_v9  ;;  %v2197_v9 = vld [vmem:[#allocation2 + $0x6b0] sm:$0xff]  ;;  %v2435_v49 = vld [vmem:[#allocation2 + $0xe20] sm:$0xff] }
 0x838   :  { %4612 = vmatprep.subr.bf16.mxu1 %v4611_v46  ;;  %4982 = vmatpush3.bf16.msra.mxu0 %v4981_v17  ;;  %v2312_v46 = vld [vmem:[#allocation2 + $0xa48] sm:$0xff]  ;;  %v4627_v5 = vpack.c.bf16 %v2197_v9, %v2194_v37  ;;  %v4997_v17 = vpack.c.bf16 %v2318_v48, %v2315_v54  ;;  %v2218_v37 = vld [vmem:[#allocation2 + $0x758] sm:$0xff]  ;;  %v2221_v9 = vld [vmem:[#allocation2 + $0x770] sm:$0xff] }
 0x839   :  { %4984 = vmatprep.subr.bf16.mxu0 %v4983_v55  ;;  %v4999_v55 = vpack.c.bf16 %v2420_v60, %v2417_v8  ;;  %v2387_v54 = vld [vmem:[#allocation2 + $0xca0] sm:$0xff]  ;;  %v2390_v48 = vld [vmem:[#allocation2 + $0xcb8] sm:$0xff]  ;;  %v2441_v8 = vld [vmem:[#allocation2 + $0xe50] sm:$0xff] }
 0x83a   :  { %v2444_v60 = vld [vmem:[#allocation2 + $0xe68] sm:$0xff] }
 0x83b   :  { %4614 = vmatpush1.bf16.msra.mxu1 %v4613_v63  ;;  %v4629_v63 = vpack.c.bf16 %v2196_v35, %v2193_v26  ;;  %v2217_v26 = vld [vmem:[#allocation2 + $0x750] sm:$0xff]  ;;  %v2220_v35 = vld [vmem:[#allocation2 + $0x768] sm:$0xff] }
 0x83c   :  { %4616 = vmatprep.subr.bf16.mxu1 %v4615_v50  ;;  %4986 = vmatpush3.bf16.msra.mxu0 %v4985_v15  ;;  %v4631_v50 = vpack.c.bf16 %v2203_v58, %v2200_v11  ;;  %v5001_v15 = vpack.c.bf16 %v2372_v28, %v2369_v22  ;;  %v2224_v11 = vld [vmem:[#allocation2 + $0x788] sm:$0xff]  ;;  %v2227_v58 = vld [vmem:[#allocation2 + $0x7a0] sm:$0xff]  ;;  %v2393_v22 = vld [vmem:[#allocation2 + $0xcd0] sm:$0xff] }
 0x83d   :  { %4988 = vmatprep.subr.bf16.mxu0 %v4987_v24  ;;  %v5003_v24 = vpack.c.bf16 %v2426_v7, %v2423_v61  ;;  %v2396_v28 = vld [vmem:[#allocation2 + $0xce8] sm:$0xff]  ;;  %v2447_v61 = vld [vmem:[#allocation2 + $0xe80] sm:$0xff]  ;;  %v2450_v7 = vld [vmem:[#allocation2 + $0xe98] sm:$0xff] }
 0x83e   :  { %2707 = vmatmul.mubr.f32.vlgmr.msra.gmra.mrb[12].mxu1 %v6843_v36  ;;  %v4989_v36 = vpack.c.bf16 %v2306_v47, %v2303_v43  ;;  %v2375_v43 = vld [vmem:[#allocation2 + $0xc40] sm:$0xff]  ;;  %v2378_v47 = vld [vmem:[#allocation2 + $0xc58] sm:$0xff] }
 0x83f   :  { %4618 = vmatpush1.bf16.msra.mxu1 %v4617_v45  ;;  %2777 = vmatprep.mubr.f32.mxu1 %v6801_v16  ;;  %v4993_v16 = vpack.c.bf16 %v2312_v46, %v2309_v34  ;;  %v4633_v45 = vpack.c.bf16 %v2202_v25, %v2199_v19  ;;  %v2381_v34 = vld [vmem:[#allocation2 + $0xc70] sm:$0xff]  ;;  %v2384_v46 = vld [vmem:[#allocation2 + $0xc88] sm:$0xff]  ;;  %v2223_v19 = vld [vmem:[#allocation2 + $0x780] sm:$0xff] }
 0x840   :  { %4620 = vmatprep.subr.bf16.mxu1 %v4619_v38  ;;  %4990 = vmatpush3.bf16.msra.mxu0 %v4989_v36  ;;  %v4635_v38 = vpack.c.bf16 %v2209_v30, %v2206_v44  ;;  %v5005_v36 = vpack.c.bf16 %v2378_v47, %v2375_v43  ;;  %v2226_v25 = vld [vmem:[#allocation2 + $0x798] sm:$0xff]  ;;  %v2233_v30 = vld [vmem:[#allocation2 + $0x7d0] sm:$0xff]  ;;  %v2399_v43 = vld [vmem:[#allocation2 + $0xd00] sm:$0xff] }
 0x841   :  { %4992 = vmatprep.subr.bf16.mxu0 %v4991_v0  ;;  %v5007_v0 = vpack.c.bf16 %v2432_v52, %v2429_v59  ;;  %v2230_v44 = vld [vmem:[#allocation2 + $0x7b8] sm:$0xff]  ;;  %v2453_v59 = vld [vmem:[#allocation2 + $0xeb0] sm:$0xff]  ;;  %v2456_v52 = vld [vmem:[#allocation2 + $0xec8] sm:$0xff] }
 0x842   :  { %v2402_v47 = vld [vmem:[#allocation2 + $0xd18] sm:$0xff] }
 0x843   :  { %4622 = vmatpush1.bf16.msra.mxu1 %v4621_v21  ;;  %v4637_v21 = vpack.c.bf16 %v2208_v53, %v2205_v57  ;;  %v2229_v57 = vld [vmem:[#allocation2 + $0x7b0] sm:$0xff]  ;;  %v2232_v53 = vld [vmem:[#allocation2 + $0x7c8] sm:$0xff] }
 0x844   :  { %4624 = vmatprep.subr.bf16.mxu1 %v4623_v20  ;;  %4994 = vmatpush3.bf16.msra.mxu0 %v4993_v16  ;;  %v4639_v20 = vpack.c.bf16 %v2215_v39, %v2212_v14  ;;  %v5009_v16 = vpack.c.bf16 %v2384_v46, %v2381_v34  ;;  %v2236_v14 = vld [vmem:[#allocation2 + $0x7e8] sm:$0xff]  ;;  %v2239_v39 = vld [vmem:[#allocation2 + $0x800] sm:$0xff]  ;;  %v2405_v34 = vld [vmem:[#allocation2 + $0xd30] sm:$0xff] }
 0x845   :  { %4996 = vmatprep.subr.bf16.mxu0 %v4995_v12  ;;  %v5011_v12 = vpack.c.bf16 %v2438_v42, %v2435_v49  ;;  %v2408_v46 = vld [vmem:[#allocation2 + $0xd48] sm:$0xff]  ;;  %v2459_v49 = vld [vmem:[#allocation2 + $0xee0] sm:$0xff]  ;;  %v2462_v42 = vld [vmem:[#allocation2 + $0xef8] sm:$0xff] }
 0x847   :  { %4626 = vmatpush1.bf16.msra.mxu1 %v4625_v31  ;;  %v4641_v31 = vpack.c.bf16 %v2214_v33, %v2211_v32  ;;  %v2235_v32 = vld [vmem:[#allocation2 + $0x7e0] sm:$0xff]  ;;  %v2238_v33 = vld [vmem:[#allocation2 + $0x7f8] sm:$0xff] }
 0x848   :  { %4628 = vmatprep.subr.bf16.mxu1 %v4627_v5  ;;  %4998 = vmatpush3.bf16.msra.mxu0 %v4997_v17  ;;  %v4643_v5 = vpack.c.bf16 %v2221_v9, %v2218_v37  ;;  %v5013_v17 = vpack.c.bf16 %v2390_v48, %v2387_v54  ;;  %v2242_v37 = vld [vmem:[#allocation2 + $0x818] sm:$0xff]  ;;  %v2245_v9 = vld [vmem:[#allocation2 + $0x830] sm:$0xff]  ;;  %v2411_v54 = vld [vmem:[#allocation2 + $0xd60] sm:$0xff] }
 0x849   :  { %5000 = vmatprep.subr.bf16.mxu0 %v4999_v55  ;;  %v5015_v55 = vpack.c.bf16 %v2444_v60, %v2441_v8  ;;  %v2414_v48 = vld [vmem:[#allocation2 + $0xd78] sm:$0xff]  ;;  %v2513_v8 = vld [vmem:[#allocation2 + $0x1090] sm:$0xff]  ;;  %v2516_v60 = vld [vmem:[#allocation2 + $0x10a8] sm:$0xff] }
 0x84b   :  { %4630 = vmatpush1.bf16.msra.mxu1 %v4629_v63  ;;  %3272 = vmatmul.mubr.f32.vlgmr.msra.gmra.mrb[36].mxu0 %v6851_v2  ;;  %v4645_v63 = vpack.c.bf16 %v2220_v35, %v2217_v26  ;;  %v2241_v26 = vld [vmem:[#allocation2 + $0x810] sm:$0xff]  ;;  %v2244_v35 = vld [vmem:[#allocation2 + $0x828] sm:$0xff] }
 0x84c   :  { %4632 = vmatprep.subr.bf16.mxu1 %v4631_v50  ;;  %5002 = vmatpush3.bf16.msra.mxu0 %v5001_v15  ;;  %v4647_v50 = vpack.c.bf16 %v2227_v58, %v2224_v11  ;;  %v5017_v15 = vpack.c.bf16 %v2396_v28, %v2393_v22  ;;  %v2248_v11 = vld [vmem:[#allocation2 + $0x848] sm:$0xff]  ;;  %v2251_v58 = vld [vmem:[#allocation2 + $0x860] sm:$0xff]  ;;  %v2465_v22 = vld [vmem:[#allocation2 + $0xf10] sm:$0xff] }
 0x84d   :  { %3341 = vmatprep.mubr.f32.mxu0 %v6760_v41  ;;  %5004 = vmatprep.subr.bf16.mxu0 %v5003_v24  ;;  %v5019_v24 = vpack.c.bf16 %v2450_v7, %v2447_v61  ;;  %v2468_v28 = vld [vmem:[#allocation2 + $0xf28] sm:$0xff]  ;;  %v2519_v61 = vld [vmem:[#allocation2 + $0x10c0] sm:$0xff]  ;;  %v2522_v7 = vld [vmem:[#allocation2 + $0x10d8] sm:$0xff] }
 0x84f   :  { %4634 = vmatpush1.bf16.msra.mxu1 %v4633_v45  ;;  %v4649_v45 = vpack.c.bf16 %v2226_v25, %v2223_v19  ;;  %v2247_v19 = vld [vmem:[#allocation2 + $0x840] sm:$0xff]  ;;  %v2250_v25 = vld [vmem:[#allocation2 + $0x858] sm:$0xff] }
 0x850   :  { %4636 = vmatprep.subr.bf16.mxu1 %v4635_v38  ;;  %5006 = vmatpush3.bf16.msra.mxu0 %v5005_v36  ;;  %v4651_v38 = vpack.c.bf16 %v2233_v30, %v2230_v44  ;;  %v5021_v36 = vpack.c.bf16 %v2402_v47, %v2399_v43  ;;  %v2254_v44 = vld [vmem:[#allocation2 + $0x878] sm:$0xff]  ;;  %v2257_v30 = vld [vmem:[#allocation2 + $0x890] sm:$0xff]  ;;  %v2471_v43 = vld [vmem:[#allocation2 + $0xf40] sm:$0xff] }
 0x851   :  { %5008 = vmatprep.subr.bf16.mxu0 %v5007_v0  ;;  %v5023_v0 = vpack.c.bf16 %v2456_v52, %v2453_v59  ;;  %v2474_v47 = vld [vmem:[#allocation2 + $0xf58] sm:$0xff]  ;;  %v2525_v59 = vld [vmem:[#allocation2 + $0x10f0] sm:$0xff]  ;;  %v2528_v52 = vld [vmem:[#allocation2 + $0x1108] sm:$0xff] }
 0x853   :  { %4638 = vmatpush1.bf16.msra.mxu1 %v4637_v21  ;;  %v4653_v21 = vpack.c.bf16 %v2232_v53, %v2229_v57  ;;  %v2253_v57 = vld [vmem:[#allocation2 + $0x870] sm:$0xff]  ;;  %v2256_v53 = vld [vmem:[#allocation2 + $0x888] sm:$0xff] }
 0x854   :  { %4640 = vmatprep.subr.bf16.mxu1 %v4639_v20  ;;  %5010 = vmatpush3.bf16.msra.mxu0 %v5009_v16  ;;  %v4655_v20 = vpack.c.bf16 %v2239_v39, %v2236_v14  ;;  %v5025_v16 = vpack.c.bf16 %v2408_v46, %v2405_v34  ;;  %v2260_v14 = vld [vmem:[#allocation2 + $0x8a8] sm:$0xff]  ;;  %v2263_v39 = vld [vmem:[#allocation2 + $0x8c0] sm:$0xff]  ;;  %v2477_v34 = vld [vmem:[#allocation2 + $0xf70] sm:$0xff] }
 0x855   :  { %5012 = vmatprep.subr.bf16.mxu0 %v5011_v12  ;;  %v5027_v12 = vpack.c.bf16 %v2462_v42, %v2459_v49  ;;  %v2480_v46 = vld [vmem:[#allocation2 + $0xf88] sm:$0xff]  ;;  %v2531_v49 = vld [vmem:[#allocation2 + $0x1120] sm:$0xff]  ;;  %v2534_v42 = vld [vmem:[#allocation2 + $0x1138] sm:$0xff] }
 0x857   :  { %4642 = vmatpush1.bf16.msra.mxu1 %v4641_v31  ;;  %v4657_v31 = vpack.c.bf16 %v2238_v33, %v2235_v32  ;;  %v2259_v32 = vld [vmem:[#allocation2 + $0x8a0] sm:$0xff]  ;;  %v2262_v33 = vld [vmem:[#allocation2 + $0x8b8] sm:$0xff] }
 0x858   :  { %4644 = vmatprep.subr.bf16.mxu1 %v4643_v5  ;;  %5014 = vmatpush3.bf16.msra.mxu0 %v5013_v17  ;;  %v4659_v5 = vpack.c.bf16 %v2245_v9, %v2242_v37  ;;  %v5029_v17 = vpack.c.bf16 %v2414_v48, %v2411_v54  ;;  %v2266_v37 = vld [vmem:[#allocation2 + $0x8d8] sm:$0xff]  ;;  %v2269_v9 = vld [vmem:[#allocation2 + $0x8f0] sm:$0xff]  ;;  %v2483_v54 = vld [vmem:[#allocation2 + $0xfa0] sm:$0xff] }
 0x859   :  { %5016 = vmatprep.subr.bf16.mxu0 %v5015_v55  ;;  %v5031_v55 = vpack.c.bf16 %v2516_v60, %v2513_v8  ;;  %v2486_v48 = vld [vmem:[#allocation2 + $0xfb8] sm:$0xff]  ;;  %v2537_v8 = vld [vmem:[#allocation2 + $0x1150] sm:$0xff]  ;;  %v2540_v60 = vld [vmem:[#allocation2 + $0x1168] sm:$0xff] }
 0x85b   :  { %4646 = vmatpush1.bf16.msra.mxu1 %v4645_v63  ;;  %v4661_v63 = vpack.c.bf16 %v2244_v35, %v2241_v26  ;;  %v2265_v26 = vld [vmem:[#allocation2 + $0x8d0] sm:$0xff]  ;;  %v2268_v35 = vld [vmem:[#allocation2 + $0x8e8] sm:$0xff] }
 0x85c   :  { %4648 = vmatprep.subr.bf16.mxu1 %v4647_v50  ;;  %5018 = vmatpush3.bf16.msra.mxu0 %v5017_v15  ;;  %v4663_v50 = vpack.c.bf16 %v2251_v58, %v2248_v11  ;;  %v5033_v15 = vpack.c.bf16 %v2468_v28, %v2465_v22  ;;  %v2272_v11 = vld [vmem:[#allocation2 + $0x908] sm:$0xff]  ;;  %v2275_v58 = vld [vmem:[#allocation2 + $0x920] sm:$0xff]  ;;  %v2489_v22 = vld [vmem:[#allocation2 + $0xfd0] sm:$0xff] }
 0x85d   :  { %5020 = vmatprep.subr.bf16.mxu0 %v5019_v24  ;;  %v5035_v24 = vpack.c.bf16 %v2522_v7, %v2519_v61  ;;  %v2492_v28 = vld [vmem:[#allocation2 + $0xfe8] sm:$0xff]  ;;  %v2543_v61 = vld [vmem:[#allocation2 + $0x1180] sm:$0xff]  ;;  %v2546_v7 = vld [vmem:[#allocation2 + $0x1198] sm:$0xff] }
 0x85f   :  { %4650 = vmatpush1.bf16.msra.mxu1 %v4649_v45  ;;  %v4665_v45 = vpack.c.bf16 %v2250_v25, %v2247_v19  ;;  %v2271_v19 = vld [vmem:[#allocation2 + $0x900] sm:$0xff]  ;;  %v2274_v25 = vld [vmem:[#allocation2 + $0x918] sm:$0xff] }
 0x860   :  { %4652 = vmatprep.subr.bf16.mxu1 %v4651_v38  ;;  %5022 = vmatpush3.bf16.msra.mxu0 %v5021_v36  ;;  %v4667_v38 = vpack.c.bf16 %v2257_v30, %v2254_v44  ;;  %v5037_v36 = vpack.c.bf16 %v2474_v47, %v2471_v43  ;;  %v2278_v44 = vld [vmem:[#allocation2 + $0x938] sm:$0xff]  ;;  %v2281_v30 = vld [vmem:[#allocation2 + $0x950] sm:$0xff]  ;;  %v2495_v43 = vld [vmem:[#allocation2 + $0x1000] sm:$0xff] }
 0x861   :  { %5024 = vmatprep.subr.bf16.mxu0 %v5023_v0  ;;  %v5039_v0 = vpack.c.bf16 %v2528_v52, %v2525_v59  ;;  %v2498_v47 = vld [vmem:[#allocation2 + $0x1018] sm:$0xff]  ;;  %v2549_v59 = vld [vmem:[#allocation2 + $0x11b0] sm:$0xff]  ;;  %v2552_v52 = vld [vmem:[#allocation2 + $0x11c8] sm:$0xff] }
 0x863   :  { %4654 = vmatpush1.bf16.msra.mxu1 %v4653_v21  ;;  %v4669_v21 = vpack.c.bf16 %v2256_v53, %v2253_v57  ;;  %v2277_v57 = vld [vmem:[#allocation2 + $0x930] sm:$0xff]  ;;  %v2280_v53 = vld [vmem:[#allocation2 + $0x948] sm:$0xff] }
 0x864   :  { %4656 = vmatprep.subr.bf16.mxu1 %v4655_v20  ;;  %5026 = vmatpush3.bf16.msra.mxu0 %v5025_v16  ;;  %v4671_v20 = vpack.c.bf16 %v2263_v39, %v2260_v14  ;;  %v5041_v16 = vpack.c.bf16 %v2480_v46, %v2477_v34  ;;  %v2284_v14 = vld [vmem:[#allocation2 + $0x968] sm:$0xff]  ;;  %v2287_v39 = vld [vmem:[#allocation2 + $0x980] sm:$0xff] }
 0x865   :  { %5028 = vmatprep.subr.bf16.mxu0 %v5027_v12  ;;  %v5043_v12 = vpack.c.bf16 %v2534_v42, %v2531_v49  ;;  %v2504_v34 = vld [vmem:[#allocation2 + $0x1048] sm:$0xff]  ;;  %v2558_v49 = vld [vmem:[#allocation2 + $0x11f8] sm:$0xff] }
 0x866   :  { %v2296_v42 = vld [vmem:[#allocation2 + $0x9c8] sm:$0xff] }
 0x867   :  { %4658 = vmatpush1.bf16.msra.mxu1 %v4657_v31  ;;  %v4673_v31 = vpack.c.bf16 %v2262_v33, %v2259_v32  ;;  %v2283_v32 = vld [vmem:[#allocation2 + $0x960] sm:$0xff]  ;;  %v2286_v33 = vld [vmem:[#allocation2 + $0x978] sm:$0xff] }
 0x868   :  { %4660 = vmatprep.subr.bf16.mxu1 %v4659_v5  ;;  %5030 = vmatpush3.bf16.msra.mxu0 %v5029_v17  ;;  %v4675_v5 = vpack.c.bf16 %v2269_v9, %v2266_v37  ;;  %v5045_v17 = vpack.c.bf16 %v2486_v48, %v2483_v54  ;;  %v2290_v37 = vld [vmem:[#allocation2 + $0x998] sm:$0xff]  ;;  %v2293_v9 = vld [vmem:[#allocation2 + $0x9b0] sm:$0xff]  ;;  %v2295_v54 = vld [vmem:[#allocation2 + $0x9c0] sm:$0xff] }
 0x869   :  { %5032 = vmatprep.subr.bf16.mxu0 %v5031_v55  ;;  %v5047_v55 = vpack.c.bf16 %v2540_v60, %v2537_v8  ;;  %v4691_v46 = vpack.c.bf16 %v2293_v9, %v2290_v37  ;;  %v2298_v48 = vld [vmem:[#allocation2 + $0x9d8] sm:$0xff]  ;;  %v2325_v9 = vld [vmem:[#allocation2 + $0xab0] sm:$0xff] }
 0x86a   :  { %v4697_v60 = vpack.c.bf16 %v2298_v48, %v2295_v54  ;;  %v2346_v54 = vld [vmem:[#allocation2 + $0xb58] sm:$0xff] }
 0x86b   :  { %4662 = vmatpush1.bf16.msra.mxu1 %v4661_v63  ;;  %3342 = vmatmul.mubr.f32.vlgmr.msra.gmra.mrb[38].mxu0 %v6855_v10  ;;  %v4677_v63 = vpack.c.bf16 %v2268_v35, %v2265_v26  ;;  %v5055_v26 = vpack.c.bf16 %v2552_v52, %v2549_v59  ;;  %v2555_v35 = vld [vmem:[#allocation2 + $0x11e0] sm:$0xff]  ;;  %v2329_v59 = vld [vmem:[#allocation2 + $0xad0] sm:$0xff]  ;;  %v2350_v48 = vld [vmem:[#allocation2 + $0xb78] sm:$0xff] }
 0x86c   :  { %4664 = vmatprep.subr.bf16.mxu1 %v4663_v50  ;;  %5034 = vmatpush3.bf16.msra.mxu0 %v5033_v15  ;;  %v4679_v50 = vpack.c.bf16 %v2275_v58, %v2272_v11  ;;  %v5049_v15 = vpack.c.bf16 %v2492_v28, %v2489_v22  ;;  %v2299_v11 = vld [vmem:[#allocation2 + $0x9e0] sm:$0xff] }
 0x86d   :  { %3411 = vmatprep.mubr.f32.mxu0 %v6818_v18  ;;  %5036 = vmatprep.subr.bf16.mxu0 %v5035_v24  ;;  %v5051_v24 = vpack.c.bf16 %v2546_v7, %v2543_v61  ;;  %v2307_v28 = vld [vmem:[#allocation2 + $0xa20] sm:$0xff]  ;;  %v2317_v61 = vld [vmem:[#allocation2 + $0xa70] sm:$0xff] }
 0x86f   :  { %4666 = vmatpush1.bf16.msra.mxu1 %v4665_v45  ;;  %v4681_v45 = vpack.c.bf16 %v2274_v25, %v2271_v19  ;;  %v2510_v19 = vld [vmem:[#allocation2 + $0x1078] sm:$0xff]  ;;  %v2305_v25 = vld [vmem:[#allocation2 + $0xa10] sm:$0xff] }
 0x870   :  { %4668 = vmatprep.subr.bf16.mxu1 %v4667_v38  ;;  %5038 = vmatpush3.bf16.msra.mxu0 %v5037_v36  ;;  %v4683_v38 = vpack.c.bf16 %v2281_v30, %v2278_v44  ;;  %v4689_v36 = vpack.c.bf16 %v2286_v33, %v2283_v32  ;;  %v2301_v30 = vld [vmem:[#allocation2 + $0x9f0] sm:$0xff]  ;;  %v2323_v32 = vld [vmem:[#allocation2 + $0xaa0] sm:$0xff]  ;;  %v2326_v33 = vld [vmem:[#allocation2 + $0xab8] sm:$0xff] }
 0x871   :  { %5040 = vmatprep.subr.bf16.mxu0 %v5039_v0  ;;  %v2501_v0 = vld [vmem:[#allocation2 + $0x1030] sm:$0xff]  ;;  %v4715_v37 = vpack.c.bf16 %v2329_v59, %v2326_v33 }
 0x873   :  { %4670 = vmatpush1.bf16.msra.mxu1 %v4669_v21  ;;  %v4685_v21 = vpack.c.bf16 %v2280_v53, %v2277_v57  ;;  %v2311_v57 = vld [vmem:[#allocation2 + $0xa40] sm:$0xff]  ;;  %v2314_v53 = vld [vmem:[#allocation2 + $0xa58] sm:$0xff] }
 0x874   :  { %4672 = vmatprep.subr.bf16.mxu1 %v4671_v20  ;;  %5042 = vmatpush3.bf16.msra.mxu0 %v5041_v16  ;;  %v4687_v20 = vpack.c.bf16 %v2287_v39, %v2284_v14  ;;  %v5059_v16 = vpack.c.bf16 %v2558_v49, %v2555_v35  ;;  %v4707_v14 = vpack.c.bf16 %v2317_v61, %v2314_v53  ;;  %v2313_v39 = vld [vmem:[#allocation2 + $0xa50] sm:$0xff] }
 0x875   :  { %5044 = vmatprep.subr.bf16.mxu0 %v5043_v12  ;;  %v4695_v12 = vpack.c.bf16 %v2299_v11, %v2296_v42  ;;  %v2341_v35 = vld [vmem:[#allocation2 + $0xb30] sm:$0xff] }
 0x876   :  { %v2337_v11 = vld [vmem:[#allocation2 + $0xb10] sm:$0xff] }
 0x877   :  { %4674 = vmatpush1.bf16.msra.mxu1 %v4673_v31  ;;  %v2289_v31 = vld [vmem:[#allocation2 + $0x990] sm:$0xff] }
 0x878   :  { %4676 = vmatprep.subr.bf16.mxu1 %v4675_v5  ;;  %5046 = vmatpush3.bf16.msra.mxu0 %v5045_v17  ;;  %v2292_v5 = vld [vmem:[#allocation2 + $0x9a8] sm:$0xff] }
 0x879   :  { %5048 = vmatprep.subr.bf16.mxu0 %v5047_v55  ;;  %v4693_v58 = vpack.c.bf16 %v2292_v5, %v2289_v31  ;;  %v2304_v17 = vld [vmem:[#allocation2 + $0xa08] sm:$0xff]  ;;  %v2335_v31 = vld [vmem:[#allocation2 + $0xb00] sm:$0xff]  ;;  %v2338_v5 = vld [vmem:[#allocation2 + $0xb18] sm:$0xff] }
 0x87a   :  { %v4701_v55 = vpack.c.bf16 %v2304_v17, %v2301_v30  ;;  %v4723_v42 = vpack.c.bf16 %v2341_v35, %v2338_v5  ;;  %v2356_v30 = vld [vmem:[#allocation2 + $0xba8] sm:$0xff]  ;;  %v2359_v17 = vld [vmem:[#allocation2 + $0xbc0] sm:$0xff] }
 0x87b   :  { %4678 = vmatpush1.bf16.msra.mxu1 %v4677_v63  ;;  %v2507_v63 = vld [vmem:[#allocation2 + $0x1060] sm:$0xff] }
 0x87c   :  { %4680 = vmatprep.subr.bf16.mxu1 %v4679_v50  ;;  %5050 = vmatpush3.bf16.msra.mxu0 %v5049_v15  ;;  %v2302_v50 = vld [vmem:[#allocation2 + $0x9f8] sm:$0xff]  ;;  %v5061_v8 = vpack.c.bf16 %v2510_v19, %v2507_v63  ;;  %v2316_v15 = vld [vmem:[#allocation2 + $0xa68] sm:$0xff] }
 0x87d   :  { %5052 = vmatprep.subr.bf16.mxu0 %v5051_v24  ;;  %v4699_v44 = vpack.c.bf16 %v2305_v25, %v2302_v50  ;;  %v4709_v24 = vpack.c.bf16 %v2316_v15, %v2313_v39  ;;  %v2353_v50 = vld [vmem:[#allocation2 + $0xb90] sm:$0xff]  ;;  %v2368_v39 = vld [vmem:[#allocation2 + $0xc08] sm:$0xff]  ;;  %v2371_v15 = vld [vmem:[#allocation2 + $0xc20] sm:$0xff] }
 0x87e   :  { %2778 = vmatmul.mubr.f32.vlgmr.msra.gmra.mrb[12].mxu1 %v6799_v13  ;;  %v5053_v13 = vpack.c.bf16 %v2498_v47, %v2495_v43  ;;  %v2319_v47 = vld [vmem:[#allocation2 + $0xa80] sm:$0xff] }
 0x87f   :  { %4682 = vmatpush1.bf16.msra.mxu1 %v4681_v45  ;;  %2848 = vmatprep.mubr.f32.mxu1 %v6853_v56  ;;  %v5057_v56 = vpack.c.bf16 %v2504_v34, %v2501_v0  ;;  %v2308_v45 = vld [vmem:[#allocation2 + $0xa28] sm:$0xff]  ;;  %v2331_v34 = vld [vmem:[#allocation2 + $0xae0] sm:$0xff] }
 0x880   :  { %4684 = vmatprep.subr.bf16.mxu1 %v4683_v38  ;;  %5054 = vmatpush3.bf16.msra.mxu0 %v5053_v13  ;;  %v4703_v22 = vpack.c.bf16 %v2311_v57, %v2308_v45  ;;  %v2310_v38 = vld [vmem:[#allocation2 + $0xa38] sm:$0xff]  ;;  %v2328_v13 = vld [vmem:[#allocation2 + $0xac8] sm:$0xff]  ;;  %v4735_v57 = vpack.c.bf16 %v2359_v17, %v2356_v30  ;;  %v2407_v30 = vld [vmem:[#allocation2 + $0xd40] sm:$0xff] }
 0x881   :  { %5056 = vmatprep.subr.bf16.mxu0 %v5055_v26  ;;  %v4705_v7 = vpack.c.bf16 %v2310_v38, %v2307_v28  ;;  %v4717_v26 = vpack.c.bf16 %v2328_v13, %v2325_v9  ;;  %v2362_v28 = vld [vmem:[#allocation2 + $0xbd8] sm:$0xff]  ;;  %v2365_v38 = vld [vmem:[#allocation2 + $0xbf0] sm:$0xff]  ;;  %v2380_v9 = vld [vmem:[#allocation2 + $0xc68] sm:$0xff] }
 0x882   :  { %v4739_v61 = vpack.c.bf16 %v2365_v38, %v2362_v28  ;;  %v2383_v13 = vld [vmem:[#allocation2 + $0xc80] sm:$0xff]  ;;  %v2413_v28 = vld [vmem:[#allocation2 + $0xd70] sm:$0xff] }
 0x883   :  { %4686 = vmatpush1.bf16.msra.mxu1 %v4685_v21  ;;  %v2320_v21 = vld [vmem:[#allocation2 + $0xa88] sm:$0xff] }
 0x884   :  { %4688 = vmatprep.subr.bf16.mxu1 %v4687_v20  ;;  %5058 = vmatpush3.bf16.msra.mxu0 %v5057_v56  ;;  %v4711_v43 = vpack.c.bf16 %v2323_v32, %v2320_v21  ;;  %v2322_v20 = vld [vmem:[#allocation2 + $0xa98] sm:$0xff]  ;;  %v2340_v56 = vld [vmem:[#allocation2 + $0xb28] sm:$0xff]  ;;  %v4743_v32 = vpack.c.bf16 %v2371_v15, %v2368_v39  ;;  %v2419_v39 = vld [vmem:[#allocation2 + $0xda0] sm:$0xff] }
 0x885   :  { %5060 = vmatprep.subr.bf16.mxu0 %v5059_v16  ;;  %v4713_v52 = vpack.c.bf16 %v2322_v20, %v2319_v47  ;;  %v2347_v16 = vld [vmem:[#allocation2 + $0xb60] sm:$0xff]  ;;  %v4725_v63 = vpack.c.bf16 %v2340_v56, %v2337_v11  ;;  %v2374_v47 = vld [vmem:[#allocation2 + $0xc38] sm:$0xff]  ;;  %v2377_v20 = vld [vmem:[#allocation2 + $0xc50] sm:$0xff] }
 0x886   :  { %v4747_v59 = vpack.c.bf16 %v2377_v20, %v2374_v47  ;;  %v2392_v56 = vld [vmem:[#allocation2 + $0xcc8] sm:$0xff]  ;;  %v2425_v47 = vld [vmem:[#allocation2 + $0xdd0] sm:$0xff] }
 0x887   :  { %4690 = vmatpush1.bf16.msra.mxu1 %v4689_v36  ;;  %v2332_v36 = vld [vmem:[#allocation2 + $0xae8] sm:$0xff] }
 0x888   :  { %4692 = vmatprep.subr.bf16.mxu1 %v4691_v46  ;;  %5062 = vmatpush3.bf16.msra.mxu0 %v5061_v8  ;;  %v4719_v0 = vpack.c.bf16 %v2335_v31, %v2332_v36  ;;  %v2334_v46 = vld [vmem:[#allocation2 + $0xaf8] sm:$0xff]  ;;  %v4731_v8 = vpack.c.bf16 %v2353_v50, %v2350_v48  ;;  %v4751_v31 = vpack.c.bf16 %v2383_v13, %v2380_v9  ;;  %v2401_v48 = vld [vmem:[#allocation2 + $0xd10] sm:$0xff]  ;;  %v2431_v9 = vld [vmem:[#allocation2 + $0xe00] sm:$0xff] }
 0x889   :  { %v4721_v49 = vpack.c.bf16 %v2334_v46, %v2331_v34  ;;  %v2386_v34 = vld [vmem:[#allocation2 + $0xc98] sm:$0xff]  ;;  %v2389_v46 = vld [vmem:[#allocation2 + $0xcb0] sm:$0xff] }
 0x88a   :  { %v4755_v35 = vpack.c.bf16 %v2389_v46, %v2386_v34  ;;  %v2434_v34 = vld [vmem:[#allocation2 + $0xe18] sm:$0xff]  ;;  %v2437_v46 = vld [vmem:[#allocation2 + $0xe30] sm:$0xff] }
 0x88b   :  { %4694 = vmatpush1.bf16.msra.mxu1 %v4693_v58  ;;  %3412 = vmatmul.mubr.f32.vlgmr.msra.gmra.mrb[40].mxu0 %v6816_v6  ;;  %v2344_v58 = vld [vmem:[#allocation2 + $0xb48] sm:$0xff] }
 0x88c   :  { %4696 = vmatprep.subr.bf16.mxu1 %v4695_v12  ;;  %v4727_v19 = vpack.c.bf16 %v2347_v16, %v2344_v58  ;;  %v2343_v12 = vld [vmem:[#allocation2 + $0xb40] sm:$0xff] }
 0x88d   :  { %v4729_v25 = vpack.c.bf16 %v2346_v54, %v2343_v12  ;;  %v2395_v58 = vld [vmem:[#allocation2 + $0xce0] sm:$0xff]  ;;  %v2394_v12 = vld [vmem:[#allocation2 + $0xcd8] sm:$0xff] }
 0x88e   :  { %v2398_v54 = vld [vmem:[#allocation2 + $0xcf8] sm:$0xff] }
 0x88f   :  { %4698 = vmatpush1.bf16.msra.mxu1 %v4697_v60  ;;  %v2349_v60 = vld [vmem:[#allocation2 + $0xb70] sm:$0xff] }
 0x890   :  { %4700 = vmatprep.subr.bf16.mxu1 %v4699_v44  ;;  %v2352_v44 = vld [vmem:[#allocation2 + $0xb88] sm:$0xff] }
 0x891   :  { %v4733_v45 = vpack.c.bf16 %v2352_v44, %v2349_v60  ;;  %v2400_v60 = vld [vmem:[#allocation2 + $0xd08] sm:$0xff] }
 0x892   :  { %v2404_v44 = vld [vmem:[#allocation2 + $0xd28] sm:$0xff] }
 0x893   :  { %4702 = vmatpush1.bf16.msra.mxu1 %v4701_v55  ;;  %v2355_v55 = vld [vmem:[#allocation2 + $0xba0] sm:$0xff] }
 0x894   :  { %4704 = vmatprep.subr.bf16.mxu1 %v4703_v22  ;;  %v2358_v22 = vld [vmem:[#allocation2 + $0xbb8] sm:$0xff] }
 0x895   :  { %v4737_v53 = vpack.c.bf16 %v2358_v22, %v2355_v55  ;;  %v2406_v55 = vld [vmem:[#allocation2 + $0xd38] sm:$0xff] }
 0x896   :  { %v2410_v22 = vld [vmem:[#allocation2 + $0xd58] sm:$0xff] }
 0x897   :  { %4706 = vmatpush1.bf16.msra.mxu1 %v4705_v7  ;;  %v2361_v7 = vld [vmem:[#allocation2 + $0xbd0] sm:$0xff] }
 0x898   :  { %4708 = vmatprep.subr.bf16.mxu1 %v4707_v14  ;;  %v2364_v14 = vld [vmem:[#allocation2 + $0xbe8] sm:$0xff] }
 0x899   :  { %v4741_v21 = vpack.c.bf16 %v2364_v14, %v2361_v7  ;;  %v2412_v7 = vld [vmem:[#allocation2 + $0xd68] sm:$0xff] }
 0x89a   :  { %v2416_v14 = vld [vmem:[#allocation2 + $0xd88] sm:$0xff] }
 0x89b   :  { %4710 = vmatpush1.bf16.msra.mxu1 %v4709_v24  ;;  %v2367_v24 = vld [vmem:[#allocation2 + $0xc00] sm:$0xff] }
 0x89c   :  { %4712 = vmatprep.subr.bf16.mxu1 %v4711_v43  ;;  %v2370_v43 = vld [vmem:[#allocation2 + $0xc18] sm:$0xff] }
 0x89d   :  { %v4745_v33 = vpack.c.bf16 %v2370_v43, %v2367_v24  ;;  %v2418_v24 = vld [vmem:[#allocation2 + $0xd98] sm:$0xff] }
 0x89e   :  { %v2422_v43 = vld [vmem:[#allocation2 + $0xdb8] sm:$0xff] }
 0x89f   :  { %4714 = vmatpush1.bf16.msra.mxu1 %v4713_v52  ;;  %v2373_v52 = vld [vmem:[#allocation2 + $0xc30] sm:$0xff] }
 0x8a0   :  { %4716 = vmatprep.subr.bf16.mxu1 %v4715_v37  ;;  %v2376_v37 = vld [vmem:[#allocation2 + $0xc48] sm:$0xff] }
 0x8a1   :  { %v4749_v36 = vpack.c.bf16 %v2376_v37, %v2373_v52  ;;  %v2424_v52 = vld [vmem:[#allocation2 + $0xdc8] sm:$0xff] }
 0x8a2   :  { %v2428_v37 = vld [vmem:[#allocation2 + $0xde8] sm:$0xff] }
 0x8a3   :  { %4718 = vmatpush1.bf16.msra.mxu1 %v4717_v26  ;;  %v2379_v26 = vld [vmem:[#allocation2 + $0xc60] sm:$0xff] }
 0x8a4   :  { %4720 = vmatprep.subr.bf16.mxu1 %v4719_v0  ;;  %v2382_v0 = vld [vmem:[#allocation2 + $0xc78] sm:$0xff] }
 0x8a5   :  { %v4753_v5 = vpack.c.bf16 %v2382_v0, %v2379_v26  ;;  %v2430_v26 = vld [vmem:[#allocation2 + $0xdf8] sm:$0xff]  ;;  %v2570_v0 = vrot.slane %v6824_v4, %v6354_v62  ;;  %v2439_v4 = vld [vmem:[#allocation2 + $0xe40] sm:$0xff] }
 0x8a7   :  { %4722 = vmatpush1.bf16.msra.mxu1 %v4721_v49  ;;  %v2385_v49 = vld [vmem:[#allocation2 + $0xc90] sm:$0xff] }
 0x8a8   :  { %4724 = vmatprep.subr.bf16.mxu1 %v4723_v42  ;;  %v2388_v42 = vld [vmem:[#allocation2 + $0xca8] sm:$0xff] }
 0x8ab   :  { %4726 = vmatpush1.bf16.msra.mxu1 %v4725_v63  ;;  %v4759_v63 = vpack.c.bf16 %v2395_v58, %v2392_v56  ;;  %v2440_v58 = vld [vmem:[#allocation2 + $0xe48] sm:$0xff] }
 0x8ac   :  { %4728 = vmatprep.subr.bf16.mxu1 %v4727_v19  ;;  %v2391_v19 = vld [vmem:[#allocation2 + $0xcc0] sm:$0xff] }
 0x8ad   :  { %v4761_v50 = vpack.c.bf16 %v2394_v12, %v2391_v19 }
 0x8af   :  { %4730 = vmatpush1.bf16.msra.mxu1 %v4729_v25  ;;  %v4763_v25 = vpack.c.bf16 %v2401_v48, %v2398_v54  ;;  %v2442_v54 = vld [vmem:[#allocation2 + $0xe58] sm:$0xff] }
 0x8b0   :  { %4732 = vmatprep.subr.bf16.mxu1 %v4731_v8  ;;  %v2397_v8 = vld [vmem:[#allocation2 + $0xcf0] sm:$0xff] }
 0x8b1   :  { %v4765_v17 = vpack.c.bf16 %v2400_v60, %v2397_v8  ;;  %v4793_v8 = vpack.c.bf16 %v2442_v54, %v2439_v4  ;;  %v2469_v54 = vld [vmem:[#allocation2 + $0xf30] sm:$0xff] }
 0x8b3   :  { %4734 = vmatpush1.bf16.msra.mxu1 %v4733_v45  ;;  %v4767_v45 = vpack.c.bf16 %v2407_v30, %v2404_v44  ;;  %v2448_v44 = vld [vmem:[#allocation2 + $0xe88] sm:$0xff] }
 0x8b4   :  { %4736 = vmatprep.subr.bf16.mxu1 %v4735_v57  ;;  %v2403_v57 = vld [vmem:[#allocation2 + $0xd20] sm:$0xff]  ;;  %v2452_v30 = vld [vmem:[#allocation2 + $0xea8] sm:$0xff] }
 0x8b5   :  { %v4769_v38 = vpack.c.bf16 %v2406_v55, %v2403_v57  ;;  %v7253_v57 = vld [vmem:[#allocation30_spill] sm:$0xff]  ;;  %v7254_v55 = vld [vmem:[#allocation31_spill] sm:$0xff] }
 0x8b7   :  { %4738 = vmatpush1.bf16.msra.mxu1 %v4737_v53  ;;  %v4771_v53 = vpack.c.bf16 %v2413_v28, %v2410_v22  ;;  %v5065_v22 = vpack.c.bf16 %v7254_v55, %v7253_v57  ;;  %v7255_v28 = vld [vmem:[#allocation33_spill] sm:$0xff] }
 0x8b8   :  { %4740 = vmatprep.subr.bf16.mxu1 %v4739_v61  ;;  %v2409_v61 = vld [vmem:[#allocation2 + $0xd50] sm:$0xff] }
 0x8b9   :  { %v4773_v15 = vpack.c.bf16 %v2412_v7, %v2409_v61 }
 0x8ba   :  { %v4070_v11 = vpop.f32.mrb[30].mxu0 }
 0x8bb   :  { %4742 = vmatpush1.bf16.msra.mxu1 %v4741_v21  ;;  %v4775_v21 = vpack.c.bf16 %v2419_v39, %v2416_v14  ;;  %v2451_v14 = vld [vmem:[#allocation2 + $0xea0] sm:$0xff]  ;;  %v2454_v39 = vld [vmem:[#allocation2 + $0xeb8] sm:$0xff] }
 0x8bc   :  { %4744 = vmatprep.subr.bf16.mxu1 %v4743_v32  ;;  %v2415_v32 = vld [vmem:[#allocation2 + $0xd80] sm:$0xff] }
 0x8bd   :  { %v4777_v20 = vpack.c.bf16 %v2418_v24, %v2415_v32  ;;  %v7257_v32 = vld [vmem:[#allocation32_spill] sm:$0xff]  ;;  %v7258_v24 = vld [vmem:[#allocation34_spill] sm:$0xff] }
 0x8be   :  { %2849 = vmatmul.mubr.f32.vlgmr.msra.gmra.mrb[12].mxu1 %v6851_v2  ;;  %v4071_v2 = vpop.f32.mrb[31].mxu0 }
 0x8bf   :  { %4746 = vmatpush1.bf16.msra.mxu1 %v4745_v33  ;;  %2919 = vmatprep.mubr.f32.mxu1 %v6760_v41  ;;  %v6876_v16 = vadd.f32 %v4071_v2, %v4070_v11  ;;  %v4757_v41 = vpack.c.bf16 %v2388_v42, %v2385_v49  ;;  %v4779_v33 = vpack.c.bf16 %v2425_v47, %v2422_v43  ;;  %v2433_v49 = vld [vmem:[#allocation2 + $0xe10] sm:$0xff]  ;;  %v2436_v42 = vld [vmem:[#allocation2 + $0xe28] sm:$0xff]  ;;  %v2443_v2 = vld [vmem:[#allocation2 + $0xe60] sm:$0xff] }
 0x8c0   :  { %4748 = vmatprep.subr.bf16.mxu1 %v4747_v59  ;;  %v2421_v59 = vld [vmem:[#allocation2 + $0xdb0] sm:$0xff]  ;;  %v4789_v19 = vpack.c.bf16 %v2436_v42, %v2433_v49  ;;  %v4791_v12 = vpack.c.bf16 %v2443_v2, %v2440_v58  ;;  %v5069_v43 = vpack.c.bf16 %v7258_v24, %v7257_v32  ;;  %v2466_v49 = vld [vmem:[#allocation2 + $0xf18] sm:$0xff] }
 0x8c1   :  { %v4781_v13 = vpack.c.bf16 %v2424_v52, %v2421_v59  ;;  %v3064_v11 = vadd.f32 %v6876_v16, %v2570_v0  ;;  %v2445_v16 = vld [vmem:[#allocation2 + $0xe70] sm:$0xff]  ;;  %v2460_v52 = vld [vmem:[#allocation2 + $0xee8] sm:$0xff]  ;;  %v7264_v0 = vld [vmem:[#allocation43_spill] sm:$0xff] }
 0x8c2   :  { %v4797_v61 = vpack.c.bf16 %v2448_v44, %v2445_v16  ;;  %v2457_v59 = vld [vmem:[#allocation2 + $0xed0] sm:$0xff]  ;;  %v2470_v42 = vld [vmem:[#allocation2 + $0xf38] sm:$0xff] }
 0x8c3   :  { %4750 = vmatpush1.bf16.msra.mxu1 %v4749_v36  ;;  %v4783_v36 = vpack.c.bf16 %v2431_v9, %v2428_v37  ;;  %v2464_v37 = vld [vmem:[#allocation2 + $0xf08] sm:$0xff]  ;;  %v2467_v9 = vld [vmem:[#allocation2 + $0xf20] sm:$0xff]  ;;  %v7266_v58 = vld [vmem:[#allocation42_spill] sm:$0xff] }
 0x8c4   :  { %4752 = vmatprep.subr.bf16.mxu1 %v4751_v31  ;;  %v2427_v31 = vld [vmem:[#allocation2 + $0xde0] sm:$0xff]  ;;  %v7270_v16 = vld [vmem:[#allocation46_spill] sm:$0xff] }
 0x8c5   :  { %v2481_v24 = vld [vmem:[#allocation2 + $0xf90] sm:$0xff] }
 0x8c7   :  { %4754 = vmatpush1.bf16.msra.mxu1 %v4753_v5  ;;  %v4785_v5 = vpack.c.bf16 %v2430_v26, %v2427_v31  ;;  %v7263_v26 = vld [vmem:[#allocation41_spill] sm:$0xff] }
 0x8c8   :  { %4756 = vmatprep.subr.bf16.mxu1 %v4755_v35  ;;  %v4787_v35 = vpack.c.bf16 %v2437_v46, %v2434_v34  ;;  %v5075_v34 = vpack.c.bf16 %v7264_v0, %v7263_v26  ;;  %v4805_v46 = vpack.c.bf16 %v2460_v52, %v2457_v59  ;;  %v2487_v26 = vld [vmem:[#allocation2 + $0xfc0] sm:$0xff]  ;;  %v2490_v0 = vld [vmem:[#allocation2 + $0xfd8] sm:$0xff] }
 0x8cb   :  { %4758 = vmatpush1.bf16.msra.mxu1 %v4757_v41 }
 0x8cc   :  { %4760 = vmatprep.subr.bf16.mxu1 %v4759_v63 }
 0x8cf   :  { %4762 = vmatpush1.bf16.msra.mxu1 %v4761_v50  ;;  %v2446_v50 = vld [vmem:[#allocation2 + $0xe78] sm:$0xff] }
 0x8d0   :  { %4764 = vmatprep.subr.bf16.mxu1 %v4763_v25  ;;  %v2449_v25 = vld [vmem:[#allocation2 + $0xe90] sm:$0xff] }
 0x8d1   :  { %v4795_v60 = vpack.c.bf16 %v2449_v25, %v2446_v50  ;;  %v2472_v50 = vld [vmem:[#allocation2 + $0xf48] sm:$0xff] }
 0x8d2   :  { %v2476_v25 = vld [vmem:[#allocation2 + $0xf68] sm:$0xff]  ;;  %v4813_v57 = vpack.c.bf16 %v2472_v50, %v2469_v54  ;;  %v7286_v54 = vld [vmem:[#allocation62_spill] sm:$0xff] }
 0x8d3   :  { %4766 = vmatpush1.bf16.msra.mxu1 %v4765_v17  ;;  %v2455_v17 = vld [vmem:[#allocation2 + $0xec0] sm:$0xff] }
 0x8d4   :  { %4768 = vmatprep.subr.bf16.mxu1 %v4767_v45  ;;  %v5063_v45 = vpack.c.bf16 %v5750_v3, %v5740_v1  ;;  %v4799_v7 = vpack.c.bf16 %v2455_v17, %v2452_v30  ;;  %v7259_v1 = vld [vmem:[#allocation37_spill] sm:$0xff]  ;;  %v7260_v3 = vld [vmem:[#allocation39_spill] sm:$0xff] }
 0x8d5   :  { %v5071_v47 = vpack.c.bf16 %v7260_v3, %v7259_v1  ;;  %v7271_v30 = vld [vmem:[#allocation49_spill] sm:$0xff]  ;;  %v7272_v17 = vld [vmem:[#allocation51_spill] sm:$0xff] }
 0x8d6   :  { %5064 = vmatprep.subr.bf16.mxu0 %v5063_v45  ;;  %v5083_v45 = vpack.c.bf16 %v7272_v17, %v7271_v30  ;;  %v2488_v1 = vld [vmem:[#allocation2 + $0xfc8] sm:$0xff]  ;;  %v2491_v3 = vld [vmem:[#allocation2 + $0xfe0] sm:$0xff]  ;;  %v2502_v17 = vld [vmem:[#allocation2 + $0x1038] sm:$0xff] }
 0x8d7   :  { %4770 = vmatpush1.bf16.msra.mxu1 %v4769_v38  ;;  %v7256_v38 = vld [vmem:[#allocation35_spill] sm:$0xff]  ;;  %5066 = vmatpush1.bf16.msra.mxu0 %v5065_v22 }
 0x8d8   :  { %4772 = vmatprep.subr.bf16.mxu1 %v4771_v53  ;;  %v5067_v53 = vpack.c.bf16 %v7256_v38, %v7255_v28  ;;  %v2475_v22 = vld [vmem:[#allocation2 + $0xf60] sm:$0xff]  ;;  %v2478_v28 = vld [vmem:[#allocation2 + $0xf78] sm:$0xff] }
 0x8d9   :  { %v2482_v38 = vld [vmem:[#allocation2 + $0xf98] sm:$0xff]  ;;  %v2499_v30 = vld [vmem:[#allocation2 + $0x1020] sm:$0xff] }
 0x8da   :  { %5068 = vmatprep.subr.bf16.mxu0 %v5067_v53  ;;  %v2485_v53 = vld [vmem:[#allocation2 + $0xfb0] sm:$0xff] }
 0x8db   :  { %4774 = vmatpush1.bf16.msra.mxu1 %v4773_v15  ;;  %v2458_v15 = vld [vmem:[#allocation2 + $0xed8] sm:$0xff]  ;;  %5070 = vmatpush1.bf16.msra.mxu0 %v5069_v43  ;;  %v4819_v32 = vpack.c.bf16 %v2485_v53, %v2482_v38  ;;  %v7291_v38 = vld [vmem:[#allocation69_spill] sm:$0xff] }
 0x8dc   :  { %4776 = vmatprep.subr.bf16.mxu1 %v4775_v21  ;;  %v2461_v21 = vld [vmem:[#allocation2 + $0xef0] sm:$0xff]  ;;  %5072 = vmatprep.subr.bf16.mxu0 %v5071_v47  ;;  %v7292_v53 = vld [vmem:[#allocation71_spill] sm:$0xff] }
 0x8de   :  { %v4105_v56 = vpop.f32.mrb[32].mxu0 }
 0x8df   :  { %4778 = vmatpush1.bf16.msra.mxu1 %v4777_v20  ;;  %v4106_v41 = vpop.f32.mrb[33].mxu0  ;;  %v4801_v20 = vpack.c.bf16 %v2454_v39, %v2451_v14  ;;  %v7276_v39 = vld [vmem:[#allocation55_spill] sm:$0xff] }
 0x8e0   :  { %4780 = vmatprep.subr.bf16.mxu1 %v4779_v33  ;;  %v4107_v63 = vadd.f32 %v4106_v41, %v4105_v56  ;;  %v4803_v33 = vpack.c.bf16 %v2461_v21, %v2458_v15  ;;  %v7265_v56 = vld [vmem:[#allocation40_spill] sm:$0xff]  ;;  %v7267_v41 = vld [vmem:[#allocation45_spill] sm:$0xff]  ;;  %v4817_v21 = vpack.c.bf16 %v2478_v28, %v2475_v22  ;;  %v7290_v22 = vld [vmem:[#allocation66_spill] sm:$0xff] }
 0x8e1   :  { %v5077_v2 = vpack.c.bf16 %v7266_v58, %v7265_v56  ;;  %v7284_v56 = vld [vmem:[#allocation63_spill] sm:$0xff] }
 0x8e2   :  { %v6881_v48 = vadd.f32 %v4107_v63, %v3064_v11  ;;  %v2473_v11 = vld [vmem:[#allocation2 + $0xf50] sm:$0xff]  ;;  %v7268_v63 = vld [vmem:[#allocation47_spill] sm:$0xff] }
 0x8e3   :  { %4782 = vmatpush1.bf16.msra.mxu1 %v4781_v13  ;;  %v7261_v13 = vld [vmem:[#allocation36_spill] sm:$0xff]  ;;  %v4811_v4 = vpack.c.bf16 %v2473_v11, %v2470_v42  ;;  %v7283_v11 = vld [vmem:[#allocation61_spill] sm:$0xff] }
 0x8e4   :  { %4784 = vmatprep.subr.bf16.mxu1 %v4783_v36  ;;  %v7262_v36 = vld [vmem:[#allocation38_spill] sm:$0xff]  ;;  %v5095_v58 = vpack.c.bf16 %v7284_v56, %v7283_v11  ;;  %v2532_v56 = vld [vmem:[#allocation2 + $0x1128] sm:$0xff] }
 0x8e5   :  { %v5073_v31 = vpack.c.bf16 %v7262_v36, %v7261_v13  ;;  %v2529_v11 = vld [vmem:[#allocation2 + $0x1110] sm:$0xff] }
 0x8e7   :  { %4786 = vmatpush1.bf16.msra.mxu1 %v4785_v5  ;;  %v4807_v5 = vpack.c.bf16 %v2467_v9, %v2464_v37  ;;  %5074 = vmatpush1.bf16.msra.mxu0 %v5073_v31  ;;  %v7279_v37 = vld [vmem:[#allocation57_spill] sm:$0xff]  ;;  %v7280_v9 = vld [vmem:[#allocation59_spill] sm:$0xff]  ;;  %v4823_v31 = vpack.c.bf16 %v2491_v3, %v2488_v1 }
 0x8e8   :  { %4788 = vmatprep.subr.bf16.mxu1 %v4787_v35  ;;  %v2463_v35 = vld [vmem:[#allocation2 + $0xf00] sm:$0xff]  ;;  %5076 = vmatprep.subr.bf16.mxu0 %v5075_v34  ;;  %v5091_v13 = vpack.c.bf16 %v7280_v9, %v7279_v37  ;;  %v2517_v37 = vld [vmem:[#allocation2 + $0x10b0] sm:$0xff]  ;;  %v2520_v9 = vld [vmem:[#allocation2 + $0x10c8] sm:$0xff] }
 0x8e9   :  { %v2511_v3 = vld [vmem:[#allocation2 + $0x1080] sm:$0xff] }
 0x8eb   :  { %4790 = vmatpush1.bf16.msra.mxu1 %v4789_v19  ;;  %v5079_v19 = vpack.c.bf16 %v7268_v63, %v7267_v41  ;;  %5078 = vmatpush1.bf16.msra.mxu0 %v5077_v2  ;;  %v4825_v2 = vpack.c.bf16 %v2490_v0, %v2487_v26  ;;  %v2493_v63 = vld [vmem:[#allocation2 + $0xff0] sm:$0xff]  ;;  %v2523_v0 = vld [vmem:[#allocation2 + $0x10e0] sm:$0xff] }
 0x8ec   :  { %4792 = vmatprep.subr.bf16.mxu1 %v4791_v12  ;;  %v4809_v12 = vpack.c.bf16 %v2466_v49, %v2463_v35  ;;  %v7281_v35 = vld [vmem:[#allocation56_spill] sm:$0xff]  ;;  %v7282_v49 = vld [vmem:[#allocation58_spill] sm:$0xff] }
 0x8ed   :  { %5080 = vmatprep.subr.bf16.mxu0 %v5079_v19  ;;  %v5093_v42 = vpack.c.bf16 %v7282_v49, %v7281_v35  ;;  %v2496_v19 = vld [vmem:[#allocation2 + $0x1008] sm:$0xff]  ;;  %v2533_v35 = vld [vmem:[#allocation2 + $0x1130] sm:$0xff] }
 0x8ef   :  { %4794 = vmatpush1.bf16.msra.mxu1 %v4793_v8  ;;  %v2479_v8 = vld [vmem:[#allocation2 + $0xf80] sm:$0xff] }
 0x8f0   :  { %4796 = vmatprep.subr.bf16.mxu1 %v4795_v60  ;;  %v7269_v60 = vld [vmem:[#allocation44_spill] sm:$0xff]  ;;  %v4815_v55 = vpack.c.bf16 %v2479_v8, %v2476_v25  ;;  %v7287_v25 = vld [vmem:[#allocation65_spill] sm:$0xff]  ;;  %v7288_v8 = vld [vmem:[#allocation67_spill] sm:$0xff] }
 0x8f1   :  { %v5081_v44 = vpack.c.bf16 %v7270_v16, %v7269_v60  ;;  %v5099_v60 = vpack.c.bf16 %v7288_v8, %v7287_v25  ;;  %v4829_v16 = vpack.c.bf16 %v2496_v19, %v2493_v63  ;;  %v2542_v25 = vld [vmem:[#allocation2 + $0x1178] sm:$0xff]  ;;  %v2545_v8 = vld [vmem:[#allocation2 + $0x1190] sm:$0xff] }
 0x8f3   :  { %4798 = vmatpush1.bf16.msra.mxu1 %v4797_v61  ;;  %5082 = vmatpush1.bf16.msra.mxu0 %v5081_v44  ;;  %v7273_v61 = vld [vmem:[#allocation48_spill] sm:$0xff] }
 0x8f4   :  { %4800 = vmatprep.subr.bf16.mxu1 %v4799_v7  ;;  %v7274_v7 = vld [vmem:[#allocation50_spill] sm:$0xff]  ;;  %5084 = vmatprep.subr.bf16.mxu0 %v5083_v45 }
 0x8f5   :  { %v5085_v14 = vpack.c.bf16 %v7274_v7, %v7273_v61  ;;  %v2506_v45 = vld [vmem:[#allocation2 + $0x1058] sm:$0xff]  ;;  %v5103_v61 = vpack.c.bf16 %v7292_v53, %v7291_v38  ;;  %v4833_v7 = vpack.c.bf16 %v2502_v17, %v2499_v30  ;;  %v2544_v30 = vld [vmem:[#allocation2 + $0x1188] sm:$0xff]  ;;  %v2557_v53 = vld [vmem:[#allocation2 + $0x11f0] sm:$0xff] }
 0x8f6   :  { %v2548_v17 = vld [vmem:[#allocation2 + $0x11a8] sm:$0xff]  ;;  %v2554_v38 = vld [vmem:[#allocation2 + $0x11d8] sm:$0xff] }
 0x8f7   :  { %4802 = vmatpush1.bf16.msra.mxu1 %v4801_v20  ;;  %5086 = vmatpush1.bf16.msra.mxu0 %v5085_v14  ;;  %v7277_v20 = vld [vmem:[#allocation52_spill] sm:$0xff] }
 0x8f8   :  { %4804 = vmatprep.subr.bf16.mxu1 %v4803_v33  ;;  %v7278_v33 = vld [vmem:[#allocation54_spill] sm:$0xff] }
 0x8f9   :  { %v5089_v59 = vpack.c.bf16 %v7278_v33, %v7277_v20  ;;  %v2518_v20 = vld [vmem:[#allocation2 + $0x10b8] sm:$0xff]  ;;  %v2521_v33 = vld [vmem:[#allocation2 + $0x10d0] sm:$0xff] }
 0x8fb   :  { %4806 = vmatpush1.bf16.msra.mxu1 %v4805_v46  ;;  %v2494_v46 = vld [vmem:[#allocation2 + $0xff8] sm:$0xff] }
 0x8fc   :  { %4808 = vmatprep.subr.bf16.mxu1 %v4807_v5  ;;  %v2497_v5 = vld [vmem:[#allocation2 + $0x1010] sm:$0xff] }
 0x8fd   :  { %v4827_v41 = vpack.c.bf16 %v2497_v5, %v2494_v46  ;;  %v2526_v46 = vld [vmem:[#allocation2 + $0x10f8] sm:$0xff] }
 0x8fe   :  { %2920 = vmatmul.mubr.f32.vlgmr.msra.gmra.mrb[12].mxu1 %v6855_v10  ;;  %v7275_v10 = vld [vmem:[#allocation53_spill] sm:$0xff]  ;;  %v4140_v43 = vpop.f32.mrb[34].mxu0  ;;  %v2530_v5 = vld [vmem:[#allocation2 + $0x1118] sm:$0xff]  ;;  %v4849_v49 = vpack.c.bf16 %v2526_v46, %v2523_v0 }
 0x8ff   :  { %4810 = vmatpush1.bf16.msra.mxu1 %v4809_v12  ;;  %2990 = vmatprep.mubr.f32.mxu1 %v6818_v18  ;;  %v5087_v15 = vpack.c.bf16 %v7276_v39, %v7275_v10  ;;  %v2484_v18 = vld [vmem:[#allocation2 + $0xfa8] sm:$0xff]  ;;  %v4141_v47 = vpop.f32.mrb[35].mxu0  ;;  %v2505_v10 = vld [vmem:[#allocation2 + $0x1050] sm:$0xff]  ;;  %v7304_v0 = vld [vmem:[#allocation83_spill] sm:$0xff] }
 0x900   :  { %4812 = vmatprep.subr.bf16.mxu1 %v4811_v4  ;;  %v4142_v52 = vadd.f32 %v4141_v47, %v4140_v43  ;;  %v4821_v36 = vpack.c.bf16 %v2484_v18, %v2481_v24  ;;  %v2500_v12 = vld [vmem:[#allocation2 + $0x1028] sm:$0xff]  ;;  %v2503_v4 = vld [vmem:[#allocation2 + $0x1040] sm:$0xff]  ;;  %v7294_v24 = vld [vmem:[#allocation70_spill] sm:$0xff] }
 0x901   :  { %5088 = vmatprep.subr.bf16.mxu0 %v5087_v15  ;;  %v4831_v44 = vpack.c.bf16 %v2503_v4, %v2500_v12  ;;  %v2508_v39 = vld [vmem:[#allocation2 + $0x1068] sm:$0xff]  ;;  %v2514_v47 = vld [vmem:[#allocation2 + $0x1098] sm:$0xff]  ;;  %v4853_v12 = vpack.c.bf16 %v2532_v56, %v2529_v11 }
 0x902   :  { %v6916_v34 = vadd.f32 %v4142_v52, %v6881_v48  ;;  %5090 = vmatpush1.bf16.msra.mxu0 %v5089_v59  ;;  %v7285_v48 = vld [vmem:[#allocation60_spill] sm:$0xff]  ;;  %v4837_v43 = vpack.c.bf16 %v2508_v39, %v2505_v10  ;;  %v4841_v59 = vpack.c.bf16 %v2514_v47, %v2511_v3  ;;  %v4843_v52 = vpack.c.bf16 %v2521_v33, %v2518_v20  ;;  %v7295_v3 = vld [vmem:[#allocation73_spill] sm:$0xff]  ;;  %v7296_v47 = vld [vmem:[#allocation75_spill] sm:$0xff] }
 0x903   :  { %4814 = vmatpush1.bf16.msra.mxu1 %v4813_v57  ;;  %5092 = vmatprep.subr.bf16.mxu0 %v5091_v13  ;;  %v5097_v50 = vpack.c.bf16 %v7286_v54, %v7285_v48  ;;  %v2509_v57 = vld [vmem:[#allocation2 + $0x1070] sm:$0xff]  ;;  %v2512_v15 = vld [vmem:[#allocation2 + $0x1088] sm:$0xff]  ;;  %v2535_v48 = vld [vmem:[#allocation2 + $0x1140] sm:$0xff]  ;;  %v5107_v20 = vpack.c.bf16 %v7296_v47, %v7295_v3 }
 0x904   :  { %4816 = vmatprep.subr.bf16.mxu1 %v4815_v55  ;;  %v7289_v55 = vld [vmem:[#allocation64_spill] sm:$0xff]  ;;  %v4835_v14 = vpack.c.bf16 %v2509_v57, %v2506_v45  ;;  %v2538_v54 = vld [vmem:[#allocation2 + $0x1158] sm:$0xff]  ;;  %v7323_v3 = vld [vmem:[#allocation101_spill] sm:$0xff] }
 0x905   :  { %v5101_v28 = vpack.c.bf16 %v7290_v22, %v7289_v55  ;;  %v2524_v13 = vld [vmem:[#allocation2 + $0x10e8] sm:$0xff]  ;;  %v2551_v45 = vld [vmem:[#allocation2 + $0x11c0] sm:$0xff] }
 0x906   :  { %5094 = vmatpush1.bf16.msra.mxu0 %v5093_v42  ;;  %v4851_v42 = vpack.c.bf16 %v2533_v35, %v2530_v5  ;;  %v4863_v55 = vpack.c.bf16 %v2551_v45, %v2548_v17  ;;  %v2547_v22 = vld [vmem:[#allocation2 + $0x11a0] sm:$0xff]  ;;  %v7306_v35 = vld [vmem:[#allocation82_spill] sm:$0xff] }
 0x907   :  { %4818 = vmatpush1.bf16.msra.mxu1 %v4817_v21  ;;  %5096 = vmatprep.subr.bf16.mxu0 %v5095_v58  ;;  %v2515_v21 = vld [vmem:[#allocation2 + $0x10a0] sm:$0xff] }
 0x908   :  { %4820 = vmatprep.subr.bf16.mxu1 %v4819_v32  ;;  %v7293_v32 = vld [vmem:[#allocation68_spill] sm:$0xff]  ;;  %v4839_v1 = vpack.c.bf16 %v2515_v21, %v2512_v15  ;;  %v7308_v11 = vld [vmem:[#allocation87_spill] sm:$0xff] }
 0x909   :  { %v5105_v18 = vpack.c.bf16 %v7294_v24, %v7293_v32  ;;  %v7297_v33 = vld [vmem:[#allocation72_spill] sm:$0xff]  ;;  %v7324_v47 = vld [vmem:[#allocation103_spill] sm:$0xff] }
 0x90a   :  { %5098 = vmatpush1.bf16.msra.mxu0 %v5097_v50  ;;  %v7305_v5 = vld [vmem:[#allocation80_spill] sm:$0xff] }
 0x90b   :  { %4822 = vmatpush1.bf16.msra.mxu1 %v4821_v36  ;;  %5100 = vmatprep.subr.bf16.mxu0 %v5099_v60  ;;  %v2527_v36 = vld [vmem:[#allocation2 + $0x1100] sm:$0xff]  ;;  %v4857_v60 = vpack.c.bf16 %v2538_v54, %v2535_v48  ;;  %v7314_v48 = vld [vmem:[#allocation90_spill] sm:$0xff] }
 0x90c   :  { %4824 = vmatprep.subr.bf16.mxu1 %v4823_v31  ;;  %v4845_v31 = vpack.c.bf16 %v2520_v9, %v2517_v37  ;;  %v4847_v26 = vpack.c.bf16 %v2527_v36, %v2524_v13  ;;  %v7299_v37 = vld [vmem:[#allocation77_spill] sm:$0xff]  ;;  %v7300_v9 = vld [vmem:[#allocation79_spill] sm:$0xff]  ;;  %v7301_v13 = vld [vmem:[#allocation76_spill] sm:$0xff] }
 0x90d   :  { %v7302_v36 = vld [vmem:[#allocation78_spill] sm:$0xff] }
 0x90e   :  { %5102 = vmatpush1.bf16.msra.mxu0 %v5101_v28  ;;  %v2550_v28 = vld [vmem:[#allocation2 + $0x11b8] sm:$0xff] }
 0x90f   :  { %4826 = vmatpush1.bf16.msra.mxu1 %v4825_v2  ;;  %5104 = vmatprep.subr.bf16.mxu0 %v5103_v61  ;;  %v2536_v2 = vld [vmem:[#allocation2 + $0x1148] sm:$0xff]  ;;  %v4867_v61 = vpack.c.bf16 %v2557_v53, %v2554_v38 }
 0x910   :  { %4828 = vmatprep.subr.bf16.mxu1 %v4827_v41  ;;  %v2539_v41 = vld [vmem:[#allocation2 + $0x1160] sm:$0xff] }
 0x911   :  { %v4855_v4 = vpack.c.bf16 %v2539_v41, %v2536_v2  ;;  %v7310_v2 = vld [vmem:[#allocation86_spill] sm:$0xff] }
 0x912   :  { %5106 = vmatpush1.bf16.msra.mxu0 %v5105_v18 }
 0x913   :  { %4830 = vmatpush1.bf16.msra.mxu1 %v4829_v16  ;;  %v4859_v16 = vpack.c.bf16 %v2545_v8, %v2542_v25  ;;  %5108 = vmatprep.subr.bf16.mxu0 %v5107_v20  ;;  %v7316_v25 = vld [vmem:[#allocation95_spill] sm:$0xff]  ;;  %v5135_v20 = vpack.c.bf16 %v7324_v47, %v7323_v3  ;;  %v3706_v47 = vld [vmem:[%s7123_s9 + $0x68] sm:$0xff] }
 0x914   :  { %4832 = vmatprep.subr.bf16.mxu1 %v4831_v44  ;;  %v2541_v44 = vld [vmem:[#allocation2 + $0x1170] sm:$0xff]  ;;  %v3705_v3 = vld [vmem:[%s7123_s9 + $0x60] sm:$0xff] }
 0x915   :  { %v4861_v57 = vpack.c.bf16 %v2544_v30, %v2541_v44 }
 0x917   :  { %4834 = vmatpush1.bf16.msra.mxu1 %v4833_v7  ;;  %v2553_v7 = vld [vmem:[#allocation2 + $0x11d0] sm:$0xff] }
 0x918   :  { %4836 = vmatprep.subr.bf16.mxu1 %v4835_v14  ;;  %v2556_v14 = vld [vmem:[#allocation2 + $0x11e8] sm:$0xff] }
 0x919   :  { %v4869_v10 = vpack.c.bf16 %v2556_v14, %v2553_v7  ;;  %v7317_v7 = vld [vmem:[#allocation92_spill] sm:$0xff]  ;;  %v7318_v14 = vld [vmem:[#allocation94_spill] sm:$0xff] }
 0x91b   :  { %4838 = vmatpush1.bf16.msra.mxu1 %v4837_v43 }
 0x91c   :  { %4840 = vmatprep.subr.bf16.mxu1 %v4839_v1 }
 0x91e   :  { %v4175_v58 = vpop.f32.mrb[36].mxu0 }
 0x91f   :  { %4842 = vmatpush1.bf16.msra.mxu1 %v4841_v59  ;;  %v4176_v63 = vpop.f32.mrb[37].mxu0  ;;  %v7298_v59 = vld [vmem:[#allocation74_spill] sm:$0xff] }
 0x920   :  { %4844 = vmatprep.subr.bf16.mxu1 %v4843_v52  ;;  %v4177_v19 = vadd.f32 %v4176_v63, %v4175_v58  ;;  %v5109_v52 = vpack.c.bf16 %v7298_v59, %v7297_v33  ;;  %v7309_v58 = vld [vmem:[#allocation84_spill] sm:$0xff]  ;;  %v7311_v63 = vld [vmem:[#allocation89_spill] sm:$0xff]  ;;  %v7326_v59 = vld [vmem:[#allocation102_spill] sm:$0xff] }
 0x921   :  { %v5121_v41 = vpack.c.bf16 %v7310_v2, %v7309_v58  ;;  %v7325_v33 = vld [vmem:[#allocation100_spill] sm:$0xff]  ;;  %v7336_v58 = vld [vmem:[#allocation115_spill] sm:$0xff] }
 0x922   :  { %v3274_v50 = vadd.f32 %v4177_v19, %v6916_v34  ;;  %v4865_v34 = vpack.c.bf16 %v2550_v28, %v2547_v22  ;;  %5110 = vmatpush1.bf16.msra.mxu0 %v5109_v52  ;;  %v7312_v19 = vld [vmem:[#allocation91_spill] sm:$0xff]  ;;  %v5137_v52 = vpack.c.bf16 %v7326_v59, %v7325_v33  ;;  %v3707_v33 = vld [vmem:[%s7123_s9 + $0x70] sm:$0xff] }
 0x923   :  { %4846 = vmatpush1.bf16.msra.mxu1 %v4845_v31  ;;  %v5113_v31 = vpack.c.bf16 %v7302_v36, %v7301_v13  ;;  %v7329_v36 = vld [vmem:[#allocation104_spill] sm:$0xff]  ;;  %v3708_v59 = vld [vmem:[%s7123_s9 + $0x78] sm:$0xff] }
 0x924   :  { %4848 = vmatprep.subr.bf16.mxu1 %v4847_v26  ;;  %v7303_v26 = vld [vmem:[#allocation81_spill] sm:$0xff] }
 0x925   :  { %v5115_v46 = vpack.c.bf16 %v7304_v0, %v7303_v26 }
 0x927   :  { %4850 = vmatpush1.bf16.msra.mxu1 %v4849_v49  ;;  %v5117_v49 = vpack.c.bf16 %v7306_v35, %v7305_v5  ;;  %v7332_v5 = vld [vmem:[#allocation111_spill] sm:$0xff] }
 0x928   :  { %4852 = vmatprep.subr.bf16.mxu1 %v4851_v42  ;;  %v7307_v42 = vld [vmem:[#allocation85_spill] sm:$0xff] }
 0x929   :  { %v5119_v56 = vpack.c.bf16 %v7308_v11, %v7307_v42  ;;  %v7334_v42 = vld [vmem:[#allocation110_spill] sm:$0xff] }
 0x92b   :  { %4854 = vmatpush1.bf16.msra.mxu1 %v4853_v12  ;;  %v5123_v12 = vpack.c.bf16 %v7312_v19, %v7311_v63  ;;  %v7338_v63 = vld [vmem:[#allocation114_spill] sm:$0xff] }
 0x92c   :  { %4856 = vmatprep.subr.bf16.mxu1 %v4855_v4  ;;  %v7313_v4 = vld [vmem:[#allocation88_spill] sm:$0xff] }
 0x92d   :  { %v5125_v54 = vpack.c.bf16 %v7314_v48, %v7313_v4  ;;  %v7340_v4 = vld [vmem:[#allocation119_spill] sm:$0xff] }
 0x92f   :  { %4858 = vmatpush1.bf16.msra.mxu1 %v4857_v60  ;;  %v2562_v60 = vrot.slane %v6820_v40, %v6354_v62 }
 0x930   :  { %4860 = vmatprep.subr.bf16.mxu1 %v4859_v16  ;;  %v2566_v16 = vrot.slane %v6822_v27, %v6354_v62 }
 0x933   :  { %4862 = vmatpush1.bf16.msra.mxu1 %v4861_v57 }
 0x934   :  { %4864 = vmatprep.subr.bf16.mxu1 %v4863_v55 }
 0x937   :  { %4866 = vmatpush1.bf16.msra.mxu1 %v4865_v34 }
 0x938   :  { %4868 = vmatprep.subr.bf16.mxu1 %v4867_v61 }
 0x93b   :  { %4870 = vmatpush1.bf16.msra.mxu1 %v4869_v10  ;;  %v5129_v10 = vpack.c.bf16 %v7318_v14, %v7317_v7  ;;  %v3697_v7 = vld [vmem:[%s7123_s9 + $0x20] sm:$0xff]  ;;  %v3698_v14 = vld [vmem:[%s7123_s9 + $0x28] sm:$0xff] }
 0x93e   :  { %2991 = vmatmul.mubr.f32.vlgmr.msra.gmra.mrb[12].mxu1 %v6816_v6  ;;  %v4210_v39 = vpop.f32.mrb[38].mxu0  ;;  %v5111_v6 = vpack.c.bf16 %v7300_v9, %v7299_v37  ;;  %v7327_v9 = vld [vmem:[#allocation105_spill] sm:$0xff] }
 0x93f   :  { %v4211_v15 = vpop.f32.mrb[39].mxu0 }
 0x940   :  { %v4212_v21 = vadd.f32 %v4211_v15, %v4210_v39  ;;  %5112 = vmatprep.subr.bf16.mxu0 %v5111_v6  ;;  %v7319_v39 = vld [vmem:[#allocation97_spill] sm:$0xff]  ;;  %v7320_v15 = vld [vmem:[#allocation99_spill] sm:$0xff] }
 0x941   :  { %5114 = vmatpush1.bf16.msra.mxu0 %v5113_v31  ;;  %v7328_v6 = vld [vmem:[#allocation107_spill] sm:$0xff]  ;;  %v7330_v31 = vld [vmem:[#allocation106_spill] sm:$0xff] }
 0x942   :  { %v3344_v32 = vadd.f32 %v4212_v21, %v3274_v50  ;;  %5116 = vmatprep.subr.bf16.mxu0 %v5115_v46  ;;  %v7315_v50 = vld [vmem:[#allocation93_spill] sm:$0xff]  ;;  %v5131_v21 = vpack.c.bf16 %v7320_v15, %v7319_v39  ;;  %v5139_v13 = vpack.c.bf16 %v7328_v6, %v7327_v9  ;;  %v5141_v26 = vpack.c.bf16 %v7330_v31, %v7329_v36  ;;  %v3701_v15 = vld [vmem:[%s7123_s9 + $0x40] sm:$0xff]  ;;  %v3712_v36 = vld [vmem:[%s7123_s9 + $0x98] sm:$0xff] }
 0x943   :  { %v5127_v8 = vpack.c.bf16 %v7316_v25, %v7315_v50  ;;  %v7331_v46 = vld [vmem:[#allocation109_spill] sm:$0xff]  ;;  %v7342_v50 = vld [vmem:[#allocation118_spill] sm:$0xff] }
 0x944   :  { %v5143_v35 = vpack.c.bf16 %v7332_v5, %v7331_v46  ;;  %v3710_v9 = vld [vmem:[%s7123_s9 + $0x88] sm:$0xff]  ;;  %v3715_v5 = vld [vmem:[%s7123_s9 + $0xb0] sm:$0xff] }
 0x945   :  { %5118 = vmatpush1.bf16.msra.mxu0 %v5117_v49  ;;  %v7333_v49 = vld [vmem:[#allocation108_spill] sm:$0xff] }
 0x946   :  { %5120 = vmatprep.subr.bf16.mxu0 %v5119_v56  ;;  %v5145_v11 = vpack.c.bf16 %v7334_v42, %v7333_v49  ;;  %v7335_v56 = vld [vmem:[#allocation113_spill] sm:$0xff] }
 0x947   :  { %v5147_v2 = vpack.c.bf16 %v7336_v58, %v7335_v56  ;;  %v7347_v42 = vld [vmem:[#allocation125_spill] sm:$0xff] }
 0x948   :  { %v3538_v56 = vrot.slane %v6822_v27, %v7347_v42 }
 0x949   :  { %5122 = vmatpush1.bf16.msra.mxu0 %v5121_v41  ;;  %v7337_v41 = vld [vmem:[#allocation112_spill] sm:$0xff] }
 0x94a   :  { %5124 = vmatprep.subr.bf16.mxu0 %v5123_v12  ;;  %v5149_v19 = vpack.c.bf16 %v7338_v63, %v7337_v41  ;;  %v7339_v12 = vld [vmem:[#allocation117_spill] sm:$0xff] }
 0x94b   :  { %v5151_v48 = vpack.c.bf16 %v7340_v4, %v7339_v12 }
 0x94d   :  { %5126 = vmatpush1.bf16.msra.mxu0 %v5125_v54  ;;  %v7341_v54 = vld [vmem:[#allocation116_spill] sm:$0xff] }
 0x94e   :  { %5128 = vmatprep.subr.bf16.mxu0 %v5127_v8  ;;  %v5153_v25 = vpack.c.bf16 %v7342_v50, %v7341_v54  ;;  %v7343_v8 = vld [vmem:[#allocation121_spill] sm:$0xff] }
 0x95e   :  { %v4245_v24 = vpop.f32.mrb[40].mxu0 }
 0x95f   :  { %v4246_v18 = vpop.f32.mrb[41].mxu0 }
 0x960   :  { %v4247_v43 = vadd.f32 %v4246_v18, %v4245_v24  ;;  %v7321_v24 = vld [vmem:[#allocation96_spill] sm:$0xff]  ;;  %v7322_v18 = vld [vmem:[#allocation98_spill] sm:$0xff] }
 0x962   :  { %v6934_v1 = vadd.f32 %v4247_v43, %v3344_v32  ;;  %v5133_v43 = vpack.c.bf16 %v7322_v18, %v7321_v24  ;;  %v3703_v24 = vld [vmem:[%s7123_s9 + $0x50] sm:$0xff]  ;;  %v3704_v18 = vld [vmem:[%s7123_s9 + $0x58] sm:$0xff] }
 0x964   :  { %v3422_v37 = vmin.f32 %v6934_v1, 0.0  ;;  %vm3419_vm12 = vcmp.gt.f32.partialorder %v6934_v1, 0.0 }
 0x966   :  { %v3427_v0 = vmul.f32 1.442695, %v3422_v37  ;;  %v3709_v37 = vld [vmem:[%s7123_s9 + $0x80] sm:$0xff] }
 0x967   :  { %v5184_v6 = vpack.c.bf16 %v3710_v9, %v3709_v37 }
 0xa11   :  { %v2992_v44 = vpop.f32.mrb[12].mxu1 }
 0xa12   :  { %v5217_v30 = vadd.f32 %v2992_v44, %v2562_v60  ;;  %v2994_v17 = vpop.f32.mrb[13].mxu1  ;;  %v7344_v60 = vld [vmem:[#allocation123_spill] sm:$0xff] }
 0xa13   :  { %v5218_v45 = vadd.f32 %v2994_v17, %v2566_v16  ;;  %v5155_v16 = vpack.c.bf16 %v7344_v60, %v7343_v8  ;;  %v7346_v17 = vld [vmem:[#allocation122_spill] sm:$0xff] }
 0xa14   :  { %v3420_v57 = vmin.f32 %v5217_v30, 0.0  ;;  %vm3417_vm11 = vcmp.gt.f32.partialorder %v5217_v30, 0.0 }
 0xa15   :  { %v3421_v55 = vmin.f32 %v5218_v45, 0.0  ;;  %vm3418_vm10 = vcmp.gt.f32.partialorder %v5218_v45, 0.0 }
 0xa16   :  { %v3423_v22 = vmul.f32 1.442695, %v3420_v57  ;;  %v3693_v57 = vld [vmem:[%s7123_s9] sm:$0xff] }
 0xa17   :  { %v3425_v28 = vmul.f32 1.442695, %v3421_v55  ;;  %v3694_v55 = vld [vmem:[%s7123_s9 + $0x8] sm:$0xff] }
 0xa18   :  { %5290 = vpow2.f32 %v3423_v22 }
 0xa19   :  { %5292 = vpow2.f32 %v3425_v28  ;;  %v5160_v28 = vpack.c.bf16 %v3694_v55, %v3693_v57  ;;  %v7348_v55 = vld [vmem:[#allocation124_spill] sm:$0xff] }
 0xa1a   :  { %5294 = vpow2.f32 %v3427_v0  ;;  %v3714_v0 = vld [vmem:[%s7123_s9 + $0xa8] sm:$0xff] }
 0xa22   :  { %v5291_v38 = vpop.eup %5290 }
 0xa23   :  { %v5293_v53 = vpop.eup %5292  ;;  %v3955_v34 = vadd.f32 -1.0, %v5291_v38  ;;  %v3695_v38 = vld [vmem:[%s7123_s9 + $0x10] sm:$0xff] }
 0xa24   :  { %v3956_v61 = vadd.f32 -1.0, %v5293_v53  ;;  %v5295_v44 = vpop.eup %5294  ;;  %v3696_v53 = vld [vmem:[%s7123_s9 + $0x18] sm:$0xff] }
 0xa25   :  { %v3432_v32 = vsel %vm3417_vm11, %v5217_v30, %v3955_v34  ;;  %v7345_v30 = vld [vmem:[#allocation120_spill] sm:$0xff]  ;;  %v3957_v22 = vadd.f32 -1.0, %v5295_v44  ;;  %v3811_v44 = vld [vmem:[#allocation16 + $0x8] sm:$0xff] }
 0xa26   :  { %v3433_v62 = vsel %vm3418_vm10, %v5218_v45, %v3956_v61  ;;  %v5157_v45 = vpack.c.bf16 %v7346_v17, %v7345_v30  ;;  %v5163_v61 = vpack.c.bf16 %v3696_v53, %v3695_v38  ;;  %v3812_v30 = vld [vmem:[#allocation16 + $0x10] sm:$0xff]  ;;  %v7350_v38 = vsub.s32 5, %v7348_v55 }
 0xa27   :  { %3603 = vmatprep.mubr.f32.mxu0 %v3433_v62  ;;  %v3434_v34 = vsel %vm3419_vm12, %v6934_v1, %v3957_v22  ;;  %v3699_v1 = vld [vmem:[%s7123_s9 + $0x30] sm:$0xff]  ;;  %v3700_v62 = vld [vmem:[%s7123_s9 + $0x38] sm:$0xff]  ;;  %v7349_v22 = vsub.s32 4, %v7348_v55 }
 0xa28   :  { %3604 = vmatmul.mubr.f32.vlgmr.msra.gmra.mrb[42].mxu0 %v3432_v32  ;;  %v5169_v39 = vpack.c.bf16 %v3700_v62, %v3699_v1  ;;  %v3797_v53 = vrot.slane %v6827_v23, %v7350_v38  ;;  %v7352_v23 = vsub.s32 7, %v7348_v55 }
 0xa29   :  { %5130 = vmatpush1.bf16.msra.mxu0 %v5129_v10  ;;  %3674 = vmatprep.mubr.f32.mxu0 %v7244_v51  ;;  %v5166_v10 = vpack.c.bf16 %v3698_v14, %v3697_v7 }
 0xa2a   :  { %5132 = vmatprep.subr.bf16.mxu0 %v5131_v21  ;;  %v3702_v21 = vld [vmem:[%s7123_s9 + $0x48] sm:$0xff] }
 0xa2b   :  { %v5172_v32 = vpack.c.bf16 %v3702_v21, %v3701_v15 }
 0xa2d   :  { %5134 = vmatpush1.bf16.msra.mxu0 %v5133_v43  ;;  %v5175_v43 = vpack.c.bf16 %v3704_v18, %v3703_v24 }
 0xa2e   :  { %5136 = vmatprep.subr.bf16.mxu0 %v5135_v20  ;;  %v5178_v20 = vpack.c.bf16 %v3706_v47, %v3705_v3 }
 0xa31   :  { %5138 = vmatpush1.bf16.msra.mxu0 %v5137_v52  ;;  %v5181_v52 = vpack.c.bf16 %v3708_v59, %v3707_v33 }
 0xa32   :  { %5140 = vmatprep.subr.bf16.mxu0 %v5139_v13  ;;  %v3711_v13 = vld [vmem:[%s7123_s9 + $0x90] sm:$0xff] }
 0xa33   :  { %v5187_v31 = vpack.c.bf16 %v3712_v36, %v3711_v13 }
 0xa35   :  { %5142 = vmatpush1.bf16.msra.mxu0 %v5141_v26  ;;  %v3713_v26 = vld [vmem:[%s7123_s9 + $0xa0] sm:$0xff] }
 0xa36   :  { %5144 = vmatprep.subr.bf16.mxu0 %v5143_v35  ;;  %v5190_v46 = vpack.c.bf16 %v3714_v0, %v3713_v26  ;;  %v3716_v35 = vld [vmem:[%s7123_s9 + $0xb8] sm:$0xff]  ;;  %s5536_s9 = smov [#allocation17]  }
 0xa37   :  { %v5193_v49 = vpack.c.bf16 %v3716_v35, %v3715_v5  ;;  %s3910_s12 = sshll.u32 %s5536_s9, 4  ;;  %s3911_s12 = int_to_ptr.vmem [resolvable:$true] %s3910_s12 }
 0xa38   :  { %s5484_s2 = scalar_lea.vmem %s3911_s12, 32  ;;  %p5489_p9 = scmp.lt.s32.totalorder %s3911_s12, %s3911_s12 }
 0xa39   :  { %5146 = vmatpush1.bf16.msra.mxu0 %v5145_v11  ;;  %v3534_v11 = vrot.slane %v6820_v40, %v7347_v42  ;;  %p5485_p8 = scmp.ne.s32.totalorder %s3911_s12, %s5484_s2  ;;  %p5490_p10 = scmp.lt.s32.totalorder %s5484_s2, %s5484_s2 }
 0xa3a   :  { %5148 = vmatprep.subr.bf16.mxu0 %v5147_v2 }
 0xa3b   :  { %p5491_p11 = por %p5490_p10, %p5489_p9 }
 0xa3d   :  { %5150 = vmatpush1.bf16.msra.mxu0 %v5149_v19  ;;  %p5492_p12 = pnand %p5491_p11, %p5485_p8 }
 0xa3e   :  { %5152 = vmatprep.subr.bf16.mxu0 %v5151_v48 }
 0xa41   :  { %5154 = vmatpush1.bf16.msra.mxu0 %v5153_v25 }
 0xa42   :  { %5156 = vmatprep.subr.bf16.mxu0 %v5155_v16  ;;  %v3810_v16 = vld [vmem:[#allocation16] sm:$0xff] }
 0xa43   :  { %v5196_v17 = vpack.c.bf16 %v3811_v44, %v3810_v16 }
 0xa45   :  { %5158 = vmatpush1.bf16.msra.mxu0 %v5157_v45  ;;  %v3813_v45 = vld [vmem:[#allocation16 + $0x18] sm:$0xff] }
 0xa46   :  { %5159 = vmatprep.subr.bf16.mxu0 %v7252_v29  ;;  %v5199_v57 = vpack.c.bf16 %v3813_v45, %v3812_v30 }
 0xa48   :  { %3675 = vmatmul.mubr.f32.vlgmr.msra.gmra.mrb[42].mxu0 %v3434_v34 }
 0xa49   :  { %5161 = vmatpush1.bf16.msra.mxu0 %v5160_v28  ;;  %v3720_v28 = vrot.slane %v6820_v40, %v7349_v22 }
 0xa4a   :  { %5162 = vmatprep.subr.bf16.mxu0 %v7252_v29 }
 0xa4d   :  { %5164 = vmatpush1.bf16.msra.mxu0 %v5163_v61  ;;  %v7351_v61 = vsub.s32 6, %v7348_v55 }
 0xa4e   :  { %5165 = vmatprep.subr.bf16.mxu0 %v7252_v29 }
 0xa4f   :  { %v3802_v7 = vrot.slane %v6820_v40, %v7351_v61 }
 0xa51   :  { %5167 = vmatpush1.bf16.msra.mxu0 %v5166_v10 }
 0xa52   :  { %5168 = vmatprep.subr.bf16.mxu0 %v7252_v29 }
 0xa55   :  { %5170 = vmatpush1.bf16.msra.mxu0 %v5169_v39 }
 0xa56   :  { %5171 = vmatprep.subr.bf16.mxu0 %v7252_v29 }
 0xa59   :  { %5173 = vmatpush1.bf16.msra.mxu0 %v5172_v32  ;;  %v3817_v32 = vrot.slane %v6820_v40, %v7352_v23 }
 0xa5a   :  { %5174 = vmatprep.subr.bf16.mxu0 %v7252_v29 }
 0xa5d   :  { %5176 = vmatpush1.bf16.msra.mxu0 %v5175_v43 }
 0xa5e   :  { %5177 = vmatprep.subr.bf16.mxu0 %v7252_v29 }
 0xa61   :  { %5179 = vmatpush1.bf16.msra.mxu0 %v5178_v20 }
 0xa62   :  { %5180 = vmatprep.subr.bf16.mxu0 %v7252_v29 }
 0xa65   :  { %5182 = vmatpush1.bf16.msra.mxu0 %v5181_v52 }
 0xa66   :  { %5183 = vmatprep.subr.bf16.mxu0 %v7252_v29 }
 0xa69   :  { %5185 = vmatpush1.bf16.msra.mxu0 %v5184_v6 }
 0xa6a   :  { %5186 = vmatprep.subr.bf16.mxu0 %v7252_v29 }
 0xa6d   :  { %5188 = vmatpush1.bf16.msra.mxu0 %v5187_v31 }
 0xa6e   :  { %5189 = vmatprep.subr.bf16.mxu0 %v7252_v29 }
 0xa71   :  { %5191 = vmatpush1.bf16.msra.mxu0 %v5190_v46 }
 0xa72   :  { %5192 = vmatprep.subr.bf16.mxu0 %v7252_v29 }
 0xa75   :  { %5194 = vmatpush1.bf16.msra.mxu0 %v5193_v49 }
 0xa76   :  { %5195 = vmatprep.subr.bf16.mxu0 %v7252_v29 }
 0xb1b   :  { %v3676_v58 = vpop.f32.mrb[42].mxu0 }
 0xb1c   :  { %v5219_v2 = vadd.f32 %v3676_v58, %v3534_v11  ;;  %v3678_v41 = vpop.f32.mrb[43].mxu0 }
 0xb1d   :  { %v5220_v63 = vadd.f32 %v3678_v41, %v3538_v56 }
 0xb1e   :  { %v3683_v19 = vmin.f32 %v5219_v2, 0.0  ;;  %vm3681_vm14 = vcmp.gt.f32.partialorder %v5219_v2, 0.0 }
 0xb1f   :  { %v3684_v12 = vmin.f32 %v5220_v63, 0.0  ;;  %vm3682_vm13 = vcmp.gt.f32.partialorder %v5220_v63, 0.0 }
 0xb20   :  { %v3685_v4 = vmul.f32 1.442695, %v3683_v19 }
 0xb21   :  { %v3687_v48 = vmul.f32 1.442695, %v3684_v12 }
 0xb22   :  { %5296 = vpow2.f32 %v3685_v4 }
 0xb23   :  { %5298 = vpow2.f32 %v3687_v48 }
 0xb2c   :  { %v5297_v54 = vpop.eup %5296 }
 0xb2d   :  { %v5299_v50 = vpop.eup %5298  ;;  %v3958_v25 = vadd.f32 -1.0, %v5297_v54 }
 0xb2e   :  { %v3959_v8 = vadd.f32 -1.0, %v5299_v50 }
 0xb2f   :  { %v3691_v27 = vsel %vm3681_vm14, %v5219_v2, %v3958_v25 }
 0xb30   :  { %v3692_v60 = vsel %vm3682_vm13, %v5220_v63, %v3959_v8 }
 0xb31   :  { %3960 = vmatprep.mubr.msk.f32.mxu0 %vm490_vm2, %v3692_v60 }
 0xb32   :  { %3789 = vmatmul.mubr.f32.vlgmr.msra.gmra.mrb[44].mxu0 %v3691_v27 }
 0xb33   :  { %4402 = vmatprep.mubr.msk.f32.mxu0 %vm5533_vm0, %v7244_v51  ;;  %5197 = vmatpush3.bf16.msra.mxu0 %v5196_v17 }
 0xb34   :  { %5198 = vmatprep.subr.bf16.mxu0 %v7252_v29 }
 0xb37   :  { %5200 = vmatpush3.bf16.msra.mxu0 %v5199_v57 }
 0xc05   :  { %v3790_v34 = vpop.f32.mrb[44].mxu0 }
 0xc06   :  { %v3791_v51 = vadd.f32 %v3790_v34, %v3720_v28  ;;  %v3792_v14 = vpop.f32.mrb[45].mxu0 }
 0xc08   :  { %v3798_v10 = vmul.f32 %v3797_v53, %v3791_v51 }
 0xc0a   :  { %v3803_v1 = vadd.f32 %v3802_v7, %v3798_v10 }
 0xc0c   :  { %v3805_v62 = vmin.f32 %v3803_v1, 0.0  ;;  %vm3804_vm15 = vcmp.gt.f32.partialorder %v3803_v1, 0.0 }
 0xc0e   :  { %v3806_v29 = vmul.f32 1.442695, %v3805_v62 }
 0xc10   :  { %5300 = vpow2.f32 %v3806_v29 }
 0xc1a   :  { %v5301_v39 = vpop.eup %5300 }
 0xc1b   :  { %v3961_v15 = vadd.f32 -1.0, %v5301_v39 }
 0xc1d   :  { %v3809_v21 = vsel %vm3804_vm15, %v3803_v1, %v3961_v15 }
 0xc1e   :  { %4403 = vmatmul.mubr.msk.f32.vlgmr.msra.gmra.mrb[46].mxu0 %vm485_vm1, %v3809_v21 }
 0xcf1   :  { %v3887_v24 = vpop.f32.mrb[46].mxu0 }
 0xcf2   :  { %v3888_v18 = vadd.f32 %v3887_v24, %v3817_v32  ;;  %v4404_v43 = vpop.f32.mrb[47].mxu0 }
 0xcf4   :  { %v3892_v3 = vmin.f32 %v3888_v18, 0.0  ;;  %vm3891_vm0 = vcmp.gt.f32.partialorder %v3888_v18, 0.0 }
 0xcf6   :  { %v3893_v47 = vmul.f32 1.442695, %v3892_v3 }
 0xcf8   :  { %5302 = vpow2.f32 %v3893_v47 }
 0xd02   :  { %v5303_v20 = vpop.eup %5302 }
 0xd03   :  { %v3963_v33 = vadd.f32 -1.0, %v5303_v20 }
 0xd05   :  { %v3896_v59 = vsel %vm3891_vm0, %v3888_v18, %v3963_v33 }
 0xd06   :  { %v3964_v52 = vmul.f32 -1.442695, %v3896_v59 }
 0xd08   :  { %5304 = vpow2.f32 %v3964_v52 }
 0xd12   :  { %v5305_v37 = vpop.eup %5304 }
 0xd13   :  { %v3900_v9 = vadd.f32 1.0, %v5305_v37 }
 0xd15   :  { %5306 = vrcp.f32 %v3900_v9 }
 0xd1f   :  { %v5307_v6 = vpop.eup %5306 }
 0xd20   :  { %3903 = vst [vmem:[#allocation17] sm:$0x3] %v5307_v6 }
 0xd21   :  { %5495 = shalt.err (!%p5492_p12)
}
 0xd22   :  { %s5496_s8 = scalar_lea.hbm %s7125_s11, 32 }
 0xd23   :  { %p5497_p13 = scmp.ne.s32.totalorder %s7125_s11, %s5496_s8  ;;  %p5500_p0 = scmp.lt.u32.totalorder %s5496_s8, %s7125_s11 }
 0xd25   :  { %p5502_p1 = pnand %p5500_p0, %p5497_p13 }
 0xd27   :  { %5505 = shalt.err (!%p5502_p1)
}
 0xd28   :  { %3913 = dma.vmem_to_hbm [thread:$0]  %s3911_s12, 32, %s7125_s11, [#allocation7]  }
 0xd29   :  { %5518 = dma.done.wait [#allocation7], 32  }
 0xd2a   :  { %5519 = vsyncadd [#allocation7], 4294967264 }
 0xd2b   :  { %3917 = vsyncpa [#allocation6], 1 }
 0xd2c   :  { %3918 = vsyncpa [#allocation9], 1 }
 0xd2d   :  { %3919 = vsyncpa [#allocation12], 1 }
 0xd2e   :  { %3920 = vsyncpa [#allocation15], 1 }
 0xd2f   :  { %3921 = vsyncpa [#allocation7], 1 }
 0xd30   :  { %3922 = vsyncmov [#allocation4] }
 0xd33   :  { %s3923_s7 = vpop.sfrf %3922 }
 0xd34   :  { %p3965_p2 = scmp.ne.s32.totalorder %s3923_s7, 0 }
 0xd36   :  { %3927 = shalt.err (%p3965_p2)  }
 0xd37   :  { %3929 = vsyncmov [#allocation4 + $0x1] }
 0xd3a   :  { %s3930_s21 = vpop.sfrf %3929 }
 0xd3b   :  { %p3966_p3 = scmp.ne.s32.totalorder %s3930_s21, 0 }
 0xd3d   :  { %3934 = shalt.err (%p3966_p3)  }

</bundles_post_ra>
